<compile_context>
chip_gen: v6e
topology: v6e:2x2x1
jax: 0.10.0
libtpu: 0.0.40
codegen_flags: <defaults>
</compile_context>

<pallas_src>
import functools

import jax
import jax.numpy as jnp
from jax.experimental import pallas as pl
from jax.experimental.pallas import tpu as pltpu

# ---- model dimensions (small demo sizes consistent with the module) ----
HID = 32                      # background field hidden width
FEAT = 32                     # radiance_feature_dim (config default 256; small for demo)
MODALITIES = {"rgb": 3, "semantics": 4}
C_RGB = MODALITIES["rgb"]
C_SEM = MODALITIES["semantics"]
C_PAD = 8                     # fused head output rows, padded to 8 sublanes
EPS = 1e-10                   # matches nerfstudio-style get_weights_from_alphas epsilon


def _stable_softplus(x):
    # overflow-safe softplus: max(x,0) + log(1 + exp(-|x|))
    return jnp.maximum(x, 0.0) + jnp.log(1.0 + jnp.exp(-jnp.abs(x)))


def _background_kernel(pts_ref, dir_ref, up_ref,
                       w1t_ref, b1_ref, w2at_ref, b2a_ref, wdt_ref,
                       w3t_ref, b3_ref, wht_ref, whut_ref, bh_ref,
                       out_ref, *, tr, s):
    f32 = jnp.float32
    bf16 = jnp.bfloat16

    def mm(w, x):
        return jnp.dot(w, x, preferred_element_type=f32)

    pts = pts_ref[...]                 # (4, s*tr) bf16: rows = x, y, z, delta
    dirs = dir_ref[...]                # (3, tr)   bf16, one column per ray
    ups = up_ref[...]                  # (3, tr)   bf16, one column per ray

    # ---- background field MLP (features in sublanes, points in lanes) ----
    # w1t has a zero column for the delta row, so feeding the whole slab is exact.
    h = jnp.maximum(mm(w1t_ref[...], pts) + b1_ref[...], 0.0)          # (HID, s*tr) f32

    # w2 fused with the density projection: last output row is sigma_raw.
    feat_aug = mm(w2at_ref[...], h.astype(bf16)) + b2a_ref[...]        # (FEAT+1, s*tr)
    feat = feat_aug[:FEAT, :]                                          # (FEAT, s*tr)
    sigma = _stable_softplus(feat_aug[FEAT:FEAT + 1, :])               # (1, s*tr) density
    delta = pts.astype(f32)[3:4, :]                                    # (1, s*tr)
    alpha = 1.0 - jnp.exp(-sigma * delta)                              # (1, s*tr)

    # ---- per-ray contributions, computed once and broadcast over samples ----
    dir_c = mm(wdt_ref[...], dirs)                                     # (FEAT, tr)
    up_c = mm(whut_ref[...], ups)                                      # (C_PAD, tr)
    dir_b = jnp.concatenate([dir_c] * s, axis=1)                       # (FEAT, s*tr)
    up_b = jnp.concatenate([up_c] * s, axis=1)                         # (C_PAD, s*tr)

    g = mm(w3t_ref[...], feat.astype(bf16)) + b3_ref[...]              # (FEAT, s*tr)
    rad = jnp.maximum(g + dir_b, 0.0)                                  # (FEAT, s*tr)

    # ---- fused modality heads: rows [rgb(3) | semantics(4) | pad(1)] ----
    head = mm(wht_ref[...], rad.astype(bf16)) + up_b + bh_ref[...]     # (C_PAD, s*tr)
    colors = pl.reciprocal(1.0 + jnp.exp(-head), approx=True)          # sigmoid (EUP)

    # ---- alphas -> exclusive-cumprod transmittance -> weighted sum over samples ----
    trans = jnp.ones((1, tr), f32)
    acc = jnp.zeros((C_PAD, tr), f32)
    for si in range(s):                      # S is small & static; lane-aligned slices
        a = alpha[:, si * tr:(si + 1) * tr]                            # (1, tr)
        w = trans * a
        acc = acc + w * colors[:, si * tr:(si + 1) * tr]
        trans = trans * (1.0 - a + EPS)

    out_ref[...] = acc                                                 # (C_PAD, tr) lane-dense


def pack_params(p):
    """Fuse / transpose / bf16-cast the natural-layout params for the kernel."""
    bf = lambda a: a.astype(jnp.bfloat16)
    w1t = jnp.concatenate([p["w1"].T, jnp.zeros((HID, 1), jnp.float32)], axis=1)   # (HID, 4)
    w2at = jnp.concatenate([p["w2"].T, p["wsig"].reshape(1, HID)], axis=0)         # (FEAT+1, HID)
    b2a = jnp.concatenate([p["b2"], p["bsig"].reshape(1)]).reshape(FEAT + 1, 1)
    wht = jnp.concatenate([p["wrgb"].T, p["wsem"].T,
                           jnp.zeros((C_PAD - C_RGB - C_SEM, FEAT), jnp.float32)], axis=0)
    whut = jnp.concatenate([p["wrgb_up"].T, p["wsem_up"].T,
                            jnp.zeros((C_PAD - C_RGB - C_SEM, 3), jnp.float32)], axis=0)
    bh = jnp.concatenate([p["brgb"], p["bsem"],
                          jnp.zeros((C_PAD - C_RGB - C_SEM,), jnp.float32)]).reshape(C_PAD, 1)
    return dict(
        w1t=bf(w1t), b1=p["b1"].reshape(HID, 1),
        w2at=bf(w2at), b2a=b2a,
        wdt=bf(p["wd"].T), w3t=bf(p["w3"].T), b3=p["b3"].reshape(FEAT, 1),
        wht=bf(wht), whut=bf(whut), bh=bh)


def background_model_forward(positions, directions, up_directions, deltas, params,
                             *, tr=256):
    """positions: (R,S,3) f32; deltas: (R,S) f32; directions/up_directions: (R,3) f32
    (per-ray; the module's per-sample directions are constant along S)."""
    R, S, _ = positions.shape
    assert tr % 128 == 0 and R % tr == 0, "tr must be a multiple of 128 dividing R"
    r_tiles = R // tr
    n_cols = r_tiles * S * tr

    # pack [x, y, z, delta] feature-major, sample-major inside each ray tile:
    #   column = tile*(S*tr) + sample*tr + ray_local
    pts = jnp.concatenate([positions, deltas[..., None]], axis=-1)      # (R, S, 4)
    pts = (pts.reshape(r_tiles, tr, S, 4)
              .transpose(3, 0, 2, 1)
              .reshape(4, n_cols)
              .astype(jnp.bfloat16))
    dirsT = directions.T.astype(jnp.bfloat16)                           # (3, R)
    upsT = up_directions.T.astype(jnp.bfloat16)                         # (3, R)

    kp = pack_params(params)
    weight_order = ["w1t", "b1", "w2at", "b2a", "wdt", "w3t", "b3", "wht", "whut", "bh"]
    weights = [kp[k] for k in weight_order]

    pts_spec = pl.BlockSpec((4, S * tr), lambda i: (0, i))
    ray_spec = pl.BlockSpec((3, tr), lambda i: (0, i))
    full_spec = lambda a: pl.BlockSpec(a.shape, lambda i: (0, 0))

    kernel = functools.partial(_background_kernel, tr=tr, s=S)

    out = pl.pallas_call(
        kernel,
        out_shape=jax.ShapeDtypeStruct((C_PAD, R), jnp.float32),
        grid=(r_tiles,),
        in_specs=[pts_spec, ray_spec, ray_spec] + [full_spec(w) for w in weights],
        out_specs=pl.BlockSpec((C_PAD, tr), lambda i: (0, i)),
        compiler_params=pltpu.CompilerParams(dimension_semantics=("parallel",)),
    )(pts, dirsT, upsT, *weights)

    outT = out.T                                                        # (R, C_PAD) tiny
    return {"rgb": outT[:, :C_RGB], "semantics": outT[:, C_RGB:C_RGB + C_SEM]}


# ---- deterministic parameter init (synthetic, no checkpoint) ----
def init_params(key):
    ks = jax.random.split(key, 9)
    n = lambda k, shape, s: jax.random.normal(k, shape, jnp.float32) * s
    return dict(
        w1=n(ks[0], (3, HID), 0.5),
        b1=jnp.zeros((HID,), jnp.float32),
        wsig=n(ks[1], (HID,), 0.3),
        bsig=jnp.full((1,), 0.1, jnp.float32),
        w2=n(ks[2], (HID, FEAT), 0.3),
        b2=jnp.zeros((FEAT,), jnp.float32),
        wd=n(ks[3], (3, FEAT), 0.3),
        w3=n(ks[4], (FEAT, FEAT), 0.3),
        b3=jnp.zeros((FEAT,), jnp.float32),
        wrgb=n(ks[5], (FEAT, C_RGB), 0.3),
        wrgb_up=n(ks[6], (3, C_RGB), 0.3),
        brgb=jnp.zeros((C_RGB,), jnp.float32),
        wsem=n(ks[7], (FEAT, C_SEM), 0.3),
        wsem_up=n(ks[8], (3, C_SEM), 0.3),
        bsem=jnp.zeros((C_SEM,), jnp.float32),
    )


# ---- pure-JAX reference (module-style, point-major) with the same bf16 casts ----
def reference_forward(positions, directions, up_directions, deltas, p):
    R, S, _ = positions.shape
    bf = lambda a: a.astype(jnp.bfloat16)
    dot = lambda a, b: jnp.dot(a, b, preferred_element_type=jnp.float32)
    pos = bf(positions).reshape(-1, 3)
    dirs = bf(jnp.broadcast_to(directions[:, None, :], (R, S, 3))).reshape(-1, 3)
    ups = bf(jnp.broadcast_to(up_directions[:, None, :], (R, S, 3))).reshape(-1, 3)

    h = jnp.maximum(dot(pos, bf(p["w1"])) + p["b1"], 0.0)
    h_bf = bf(h)
    sigma = _stable_softplus(dot(h_bf, bf(p["wsig"]).reshape(HID, 1)) + p["bsig"])
    feat = dot(h_bf, bf(p["w2"])) + p["b2"]
    rad = jnp.maximum(dot(bf(feat), bf(p["w3"])) + dot(dirs, bf(p["wd"])) + p["b3"], 0.0)
    rad_bf = bf(rad)
    rgb = jax.nn.sigmoid(dot(rad_bf, bf(p["wrgb"])) + dot(ups, bf(p["wrgb_up"])) + p["brgb"])
    sem = jax.nn.sigmoid(dot(rad_bf, bf(p["wsem"])) + dot(ups, bf(p["wsem_up"])) + p["bsem"])

    delta_q = bf(deltas).astype(jnp.float32)                 # same quantization as kernel
    alpha = 1.0 - jnp.exp(-sigma.reshape(R, S) * delta_q)
    trans = jnp.concatenate(
        [jnp.ones((R, 1), jnp.float32),
         jnp.cumprod(1.0 - alpha + EPS, axis=1)[:, :-1]], axis=1)
    w = (alpha * trans)[..., None]
    return {
        "rgb": jnp.sum(w * rgb.reshape(R, S, C_RGB), axis=1),
        "semantics": jnp.sum(w * sem.reshape(R, S, C_SEM), axis=1),
    }


if __name__ == "__main__":
    R, S = 2048, 16          # rays, samples per ray (tr=256 -> 8 grid steps)
    key = jax.random.PRNGKey(0)
    k_o, k_d, k_t, k_dl, k_u, k_p = jax.random.split(key, 6)

    origins = jax.random.normal(k_o, (R, 3), jnp.float32)
    d = jax.random.normal(k_d, (R, 3), jnp.float32)
    d = d / jnp.linalg.norm(d, axis=-1, keepdims=True)                 # per-ray directions
    t = jnp.cumsum(0.1 + jax.random.uniform(k_t, (R, S), jnp.float32), axis=1)
    positions = origins[:, None, :] + d[:, None, :] * t[..., None]     # frustum starts
    deltas = 0.05 + jax.random.uniform(k_dl, (R, S), jnp.float32) * 0.2
    u = jax.random.normal(k_u, (R, 3), jnp.float32)
    u = u / jnp.linalg.norm(u, axis=-1, keepdims=True)                 # per-ray up dirs

    params = init_params(k_p)

    out = background_model_forward(positions, d, u, deltas, params, tr=256)
    jax.block_until_ready(out)

    ref = reference_forward(positions, d, u, deltas, params)
    # Kernel and reference share identical bf16-quantized inputs/weights; the
    # residual difference is the EUP approximate-reciprocal sigmoid (~1e-3).
    for mod in MODALITIES:
        err = float(jnp.max(jnp.abs(out[mod] - ref[mod])))
        assert err < 1e-2, f"modality {mod} mismatch: {err}"

    print("KERNEL_OK")
</pallas_src>

<mosaic_0001>
module attributes {stable_mosaic.version = 11 : i64} {
  func.func @_background_kernel(%arg0: i32, %arg1: memref<4x4096xbf16, #tpu.memory_space<vmem>>, %arg2: memref<3x256xbf16, #tpu.memory_space<vmem>>, %arg3: memref<3x256xbf16, #tpu.memory_space<vmem>>, %arg4: memref<32x4xbf16, #tpu.memory_space<vmem>>, %arg5: memref<32x1xf32, #tpu.memory_space<vmem>>, %arg6: memref<33x32xbf16, #tpu.memory_space<vmem>>, %arg7: memref<33x1xf32, #tpu.memory_space<vmem>>, %arg8: memref<32x3xbf16, #tpu.memory_space<vmem>>, %arg9: memref<32x32xbf16, #tpu.memory_space<vmem>>, %arg10: memref<32x1xf32, #tpu.memory_space<vmem>>, %arg11: memref<8x32xbf16, #tpu.memory_space<vmem>>, %arg12: memref<8x3xbf16, #tpu.memory_space<vmem>>, %arg13: memref<8x1xf32, #tpu.memory_space<vmem>>, %arg14: memref<8x256xf32, #tpu.memory_space<vmem>>) attributes {dimension_semantics = [#tpu.dimension_semantics<parallel>], iteration_bounds = array<i64: 8>, scalar_prefetch = 0 : i64, scratch_operands = 0 : i64, tpu.core_type = #tpu.core_type<tc>, window_params = [{transform_indices = @transform_0, window_bounds = array<i64: 4, 4096>}, {transform_indices = @transform_1, window_bounds = array<i64: 3, 256>}, {transform_indices = @transform_2, window_bounds = array<i64: 3, 256>}, {pipeline_mode = #tpu.pipeline_mode<synchronous>, transform_indices = @transform_3, window_bounds = array<i64: 32, 4>}, {pipeline_mode = #tpu.pipeline_mode<synchronous>, transform_indices = @transform_4, window_bounds = array<i64: 32, 1>}, {pipeline_mode = #tpu.pipeline_mode<synchronous>, transform_indices = @transform_5, window_bounds = array<i64: 33, 32>}, {pipeline_mode = #tpu.pipeline_mode<synchronous>, transform_indices = @transform_6, window_bounds = array<i64: 33, 1>}, {pipeline_mode = #tpu.pipeline_mode<synchronous>, transform_indices = @transform_7, window_bounds = array<i64: 32, 3>}, {pipeline_mode = #tpu.pipeline_mode<synchronous>, transform_indices = @transform_8, window_bounds = array<i64: 32, 32>}, {pipeline_mode = #tpu.pipeline_mode<synchronous>, transform_indices = @transform_9, window_bounds = array<i64: 32, 1>}, {pipeline_mode = #tpu.pipeline_mode<synchronous>, transform_indices = @transform_10, window_bounds = array<i64: 8, 32>}, {pipeline_mode = #tpu.pipeline_mode<synchronous>, transform_indices = @transform_11, window_bounds = array<i64: 8, 3>}, {pipeline_mode = #tpu.pipeline_mode<synchronous>, transform_indices = @transform_12, window_bounds = array<i64: 8, 1>}, {transform_indices = @transform_13, window_bounds = array<i64: 8, 256>}]} {
    %c0 = arith.constant 0 : index
    %c0_0 = arith.constant 0 : index
    %0 = vector.load %arg1[%c0, %c0_0] : memref<4x4096xbf16, #tpu.memory_space<vmem>>, vector<4x4096xbf16>
    %c0_1 = arith.constant 0 : index
    %c0_2 = arith.constant 0 : index
    %1 = vector.load %arg2[%c0_1, %c0_2] : memref<3x256xbf16, #tpu.memory_space<vmem>>, vector<3x256xbf16>
    %c0_3 = arith.constant 0 : index
    %c0_4 = arith.constant 0 : index
    %2 = vector.load %arg3[%c0_3, %c0_4] : memref<3x256xbf16, #tpu.memory_space<vmem>>, vector<3x256xbf16>
    %c0_5 = arith.constant 0 : index
    %c0_6 = arith.constant 0 : index
    %3 = vector.load %arg4[%c0_5, %c0_6] : memref<32x4xbf16, #tpu.memory_space<vmem>>, vector<32x4xbf16>
    %cst = arith.constant dense<0.000000e+00> : vector<32x4096xf32>
    %4 = tpu.matmul %3, %0, %cst {dimension_numbers = #tpu.dot_dimension_numbers<[1], [0], [0], [1], [0, 0, 1, 1], [], []>} : vector<32x4xbf16>, vector<4x4096xbf16>, vector<32x4096xf32> -> vector<32x4096xf32>
    %c0_7 = arith.constant 0 : index
    %c0_8 = arith.constant 0 : index
    %5 = vector.load %arg5[%c0_7, %c0_8] : memref<32x1xf32, #tpu.memory_space<vmem>>, vector<32x1xf32>
    %6 = vector.broadcast %5 : vector<32x1xf32> to vector<32x4096xf32>
    %7 = arith.addf %4, %6 : vector<32x4096xf32>
    %cst_9 = arith.constant 0.000000e+00 : f32
    %8 = vector.broadcast %cst_9 : f32 to vector<32x4096xf32>
    %9 = arith.maximumf %7, %8 : vector<32x4096xf32>
    %c0_10 = arith.constant 0 : index
    %c0_11 = arith.constant 0 : index
    %10 = vector.load %arg6[%c0_10, %c0_11] : memref<33x32xbf16, #tpu.memory_space<vmem>>, vector<33x32xbf16>
    %11 = arith.truncf %9 : vector<32x4096xf32> to vector<32x4096xbf16>
    %cst_12 = arith.constant dense<0.000000e+00> : vector<33x4096xf32>
    %12 = tpu.matmul %10, %11, %cst_12 {dimension_numbers = #tpu.dot_dimension_numbers<[1], [0], [0], [1], [0, 0, 1, 1], [], []>} : vector<33x32xbf16>, vector<32x4096xbf16>, vector<33x4096xf32> -> vector<33x4096xf32>
    %c0_13 = arith.constant 0 : index
    %c0_14 = arith.constant 0 : index
    %13 = vector.load %arg7[%c0_13, %c0_14] : memref<33x1xf32, #tpu.memory_space<vmem>>, vector<33x1xf32>
    %14 = vector.broadcast %13 : vector<33x1xf32> to vector<33x4096xf32>
    %15 = arith.addf %12, %14 : vector<33x4096xf32>
    %16 = vector.extract_strided_slice %15 {offsets = [0, 0], sizes = [32, 4096], strides = [1, 1]} : vector<33x4096xf32> to vector<32x4096xf32>
    %17 = vector.extract_strided_slice %15 {offsets = [32, 0], sizes = [1, 4096], strides = [1, 1]} : vector<33x4096xf32> to vector<1x4096xf32>
    %cst_15 = arith.constant 0.000000e+00 : f32
    %18 = vector.broadcast %cst_15 : f32 to vector<1x4096xf32>
    %19 = arith.maximumf %17, %18 : vector<1x4096xf32>
    %20 = math.absf %17 : vector<1x4096xf32>
    %cst_16 = arith.constant 0.000000e+00 : f32
    %21 = vector.broadcast %cst_16 : f32 to vector<1x4096xf32>
    %22 = arith.subf %21, %20 : vector<1x4096xf32>
    %23 = math.exp %22 : vector<1x4096xf32>
    %cst_17 = arith.constant 1.000000e+00 : f32
    %24 = vector.broadcast %cst_17 : f32 to vector<1x4096xf32>
    %25 = arith.addf %24, %23 : vector<1x4096xf32>
    %26 = math.log %25 : vector<1x4096xf32>
    %27 = arith.addf %19, %26 : vector<1x4096xf32>
    %28 = arith.extf %0 : vector<4x4096xbf16> to vector<4x4096xf32>
    %29 = vector.extract_strided_slice %28 {offsets = [3, 0], sizes = [1, 4096], strides = [1, 1]} : vector<4x4096xf32> to vector<1x4096xf32>
    %cst_18 = arith.constant 0.000000e+00 : f32
    %30 = vector.broadcast %cst_18 : f32 to vector<1x4096xf32>
    %31 = arith.subf %30, %27 : vector<1x4096xf32>
    %32 = arith.mulf %31, %29 : vector<1x4096xf32>
    %33 = math.exp %32 : vector<1x4096xf32>
    %cst_19 = arith.constant 1.000000e+00 : f32
    %34 = vector.broadcast %cst_19 : f32 to vector<1x4096xf32>
    %35 = arith.subf %34, %33 : vector<1x4096xf32>
    %c0_20 = arith.constant 0 : index
    %c0_21 = arith.constant 0 : index
    %36 = vector.load %arg8[%c0_20, %c0_21] : memref<32x3xbf16, #tpu.memory_space<vmem>>, vector<32x3xbf16>
    %cst_22 = arith.constant dense<0.000000e+00> : vector<32x256xf32>
    %37 = tpu.matmul %36, %1, %cst_22 {dimension_numbers = #tpu.dot_dimension_numbers<[1], [0], [0], [1], [0, 0, 1, 1], [], []>} : vector<32x3xbf16>, vector<3x256xbf16>, vector<32x256xf32> -> vector<32x256xf32>
    %c0_23 = arith.constant 0 : index
    %c0_24 = arith.constant 0 : index
    %38 = vector.load %arg12[%c0_23, %c0_24] : memref<8x3xbf16, #tpu.memory_space<vmem>>, vector<8x3xbf16>
    %cst_25 = arith.constant dense<0.000000e+00> : vector<8x256xf32>
    %39 = tpu.matmul %38, %2, %cst_25 {dimension_numbers = #tpu.dot_dimension_numbers<[1], [0], [0], [1], [0, 0, 1, 1], [], []>} : vector<8x3xbf16>, vector<3x256xbf16>, vector<8x256xf32> -> vector<8x256xf32>
    %40 = tpu.concatenate %37, %37, %37, %37, %37, %37, %37, %37, %37, %37, %37, %37, %37, %37, %37, %37 in 1 : vector<32x256xf32>, vector<32x256xf32>, vector<32x256xf32>, vector<32x256xf32>, vector<32x256xf32>, vector<32x256xf32>, vector<32x256xf32>, vector<32x256xf32>, vector<32x256xf32>, vector<32x256xf32>, vector<32x256xf32>, vector<32x256xf32>, vector<32x256xf32>, vector<32x256xf32>, vector<32x256xf32>, vector<32x256xf32> -> vector<32x4096xf32>
    %41 = tpu.concatenate %39, %39, %39, %39, %39, %39, %39, %39, %39, %39, %39, %39, %39, %39, %39, %39 in 1 : vector<8x256xf32>, vector<8x256xf32>, vector<8x256xf32>, vector<8x256xf32>, vector<8x256xf32>, vector<8x256xf32>, vector<8x256xf32>, vector<8x256xf32>, vector<8x256xf32>, vector<8x256xf32>, vector<8x256xf32>, vector<8x256xf32>, vector<8x256xf32>, vector<8x256xf32>, vector<8x256xf32>, vector<8x256xf32> -> vector<8x4096xf32>
    %c0_26 = arith.constant 0 : index
    %c0_27 = arith.constant 0 : index
    %42 = vector.load %arg9[%c0_26, %c0_27] : memref<32x32xbf16, #tpu.memory_space<vmem>>, vector<32x32xbf16>
    %43 = arith.truncf %16 : vector<32x4096xf32> to vector<32x4096xbf16>
    %cst_28 = arith.constant dense<0.000000e+00> : vector<32x4096xf32>
    %44 = tpu.matmul %42, %43, %cst_28 {dimension_numbers = #tpu.dot_dimension_numbers<[1], [0], [0], [1], [0, 0, 1, 1], [], []>} : vector<32x32xbf16>, vector<32x4096xbf16>, vector<32x4096xf32> -> vector<32x4096xf32>
    %c0_29 = arith.constant 0 : index
    %c0_30 = arith.constant 0 : index
    %45 = vector.load %arg10[%c0_29, %c0_30] : memref<32x1xf32, #tpu.memory_space<vmem>>, vector<32x1xf32>
    %46 = vector.broadcast %45 : vector<32x1xf32> to vector<32x4096xf32>
    %47 = arith.addf %44, %46 : vector<32x4096xf32>
    %48 = arith.addf %47, %40 : vector<32x4096xf32>
    %cst_31 = arith.constant 0.000000e+00 : f32
    %49 = vector.broadcast %cst_31 : f32 to vector<32x4096xf32>
    %50 = arith.maximumf %48, %49 : vector<32x4096xf32>
    %c0_32 = arith.constant 0 : index
    %c0_33 = arith.constant 0 : index
    %51 = vector.load %arg11[%c0_32, %c0_33] : memref<8x32xbf16, #tpu.memory_space<vmem>>, vector<8x32xbf16>
    %52 = arith.truncf %50 : vector<32x4096xf32> to vector<32x4096xbf16>
    %cst_34 = arith.constant dense<0.000000e+00> : vector<8x4096xf32>
    %53 = tpu.matmul %51, %52, %cst_34 {dimension_numbers = #tpu.dot_dimension_numbers<[1], [0], [0], [1], [0, 0, 1, 1], [], []>} : vector<8x32xbf16>, vector<32x4096xbf16>, vector<8x4096xf32> -> vector<8x4096xf32>
    %54 = arith.addf %53, %41 : vector<8x4096xf32>
    %c0_35 = arith.constant 0 : index
    %c0_36 = arith.constant 0 : index
    %55 = vector.load %arg13[%c0_35, %c0_36] : memref<8x1xf32, #tpu.memory_space<vmem>>, vector<8x1xf32>
    %56 = vector.broadcast %55 : vector<8x1xf32> to vector<8x4096xf32>
    %57 = arith.addf %54, %56 : vector<8x4096xf32>
    %cst_37 = arith.constant 0.000000e+00 : f32
    %58 = vector.broadcast %cst_37 : f32 to vector<8x4096xf32>
    %59 = arith.subf %58, %57 : vector<8x4096xf32>
    %60 = math.exp %59 : vector<8x4096xf32>
    %cst_38 = arith.constant 1.000000e+00 : f32
    %61 = vector.broadcast %cst_38 : f32 to vector<8x4096xf32>
    %62 = arith.addf %61, %60 : vector<8x4096xf32>
    %63 = tpu.reciprocal %62 {approx = true} : vector<8x4096xf32> -> vector<8x4096xf32>
    %cst_39 = arith.constant 1.000000e+00 : f32
    %64 = vector.broadcast %cst_39 : f32 to vector<1x256xf32>
    %cst_40 = arith.constant 0.000000e+00 : f32
    %65 = vector.broadcast %cst_40 : f32 to vector<8x256xf32>
    %66 = vector.extract_strided_slice %35 {offsets = [0, 0], sizes = [1, 256], strides = [1, 1]} : vector<1x4096xf32> to vector<1x256xf32>
    %67 = arith.mulf %64, %66 : vector<1x256xf32>
    %68 = vector.extract_strided_slice %63 {offsets = [0, 0], sizes = [8, 256], strides = [1, 1]} : vector<8x4096xf32> to vector<8x256xf32>
    %69 = vector.broadcast %67 : vector<1x256xf32> to vector<8x256xf32>
    %70 = arith.mulf %69, %68 : vector<8x256xf32>
    %71 = arith.addf %65, %70 : vector<8x256xf32>
    %cst_41 = arith.constant 1.000000e+00 : f32
    %72 = vector.broadcast %cst_41 : f32 to vector<1x256xf32>
    %73 = arith.subf %72, %66 : vector<1x256xf32>
    %cst_42 = arith.constant 1.000000e-10 : f32
    %74 = vector.broadcast %cst_42 : f32 to vector<1x256xf32>
    %75 = arith.addf %73, %74 : vector<1x256xf32>
    %76 = arith.mulf %64, %75 : vector<1x256xf32>
    %77 = vector.extract_strided_slice %35 {offsets = [0, 256], sizes = [1, 256], strides = [1, 1]} : vector<1x4096xf32> to vector<1x256xf32>
    %78 = arith.mulf %76, %77 : vector<1x256xf32>
    %79 = vector.extract_strided_slice %63 {offsets = [0, 256], sizes = [8, 256], strides = [1, 1]} : vector<8x4096xf32> to vector<8x256xf32>
    %80 = vector.broadcast %78 : vector<1x256xf32> to vector<8x256xf32>
    %81 = arith.mulf %80, %79 : vector<8x256xf32>
    %82 = arith.addf %71, %81 : vector<8x256xf32>
    %cst_43 = arith.constant 1.000000e+00 : f32
    %83 = vector.broadcast %cst_43 : f32 to vector<1x256xf32>
    %84 = arith.subf %83, %77 : vector<1x256xf32>
    %cst_44 = arith.constant 1.000000e-10 : f32
    %85 = vector.broadcast %cst_44 : f32 to vector<1x256xf32>
    %86 = arith.addf %84, %85 : vector<1x256xf32>
    %87 = arith.mulf %76, %86 : vector<1x256xf32>
    %88 = vector.extract_strided_slice %35 {offsets = [0, 512], sizes = [1, 256], strides = [1, 1]} : vector<1x4096xf32> to vector<1x256xf32>
    %89 = arith.mulf %87, %88 : vector<1x256xf32>
    %90 = vector.extract_strided_slice %63 {offsets = [0, 512], sizes = [8, 256], strides = [1, 1]} : vector<8x4096xf32> to vector<8x256xf32>
    %91 = vector.broadcast %89 : vector<1x256xf32> to vector<8x256xf32>
    %92 = arith.mulf %91, %90 : vector<8x256xf32>
    %93 = arith.addf %82, %92 : vector<8x256xf32>
    %cst_45 = arith.constant 1.000000e+00 : f32
    %94 = vector.broadcast %cst_45 : f32 to vector<1x256xf32>
    %95 = arith.subf %94, %88 : vector<1x256xf32>
    %cst_46 = arith.constant 1.000000e-10 : f32
    %96 = vector.broadcast %cst_46 : f32 to vector<1x256xf32>
    %97 = arith.addf %95, %96 : vector<1x256xf32>
    %98 = arith.mulf %87, %97 : vector<1x256xf32>
    %99 = vector.extract_strided_slice %35 {offsets = [0, 768], sizes = [1, 256], strides = [1, 1]} : vector<1x4096xf32> to vector<1x256xf32>
    %100 = arith.mulf %98, %99 : vector<1x256xf32>
    %101 = vector.extract_strided_slice %63 {offsets = [0, 768], sizes = [8, 256], strides = [1, 1]} : vector<8x4096xf32> to vector<8x256xf32>
    %102 = vector.broadcast %100 : vector<1x256xf32> to vector<8x256xf32>
    %103 = arith.mulf %102, %101 : vector<8x256xf32>
    %104 = arith.addf %93, %103 : vector<8x256xf32>
    %cst_47 = arith.constant 1.000000e+00 : f32
    %105 = vector.broadcast %cst_47 : f32 to vector<1x256xf32>
    %106 = arith.subf %105, %99 : vector<1x256xf32>
    %cst_48 = arith.constant 1.000000e-10 : f32
    %107 = vector.broadcast %cst_48 : f32 to vector<1x256xf32>
    %108 = arith.addf %106, %107 : vector<1x256xf32>
    %109 = arith.mulf %98, %108 : vector<1x256xf32>
    %110 = vector.extract_strided_slice %35 {offsets = [0, 1024], sizes = [1, 256], strides = [1, 1]} : vector<1x4096xf32> to vector<1x256xf32>
    %111 = arith.mulf %109, %110 : vector<1x256xf32>
    %112 = vector.extract_strided_slice %63 {offsets = [0, 1024], sizes = [8, 256], strides = [1, 1]} : vector<8x4096xf32> to vector<8x256xf32>
    %113 = vector.broadcast %111 : vector<1x256xf32> to vector<8x256xf32>
    %114 = arith.mulf %113, %112 : vector<8x256xf32>
    %115 = arith.addf %104, %114 : vector<8x256xf32>
    %cst_49 = arith.constant 1.000000e+00 : f32
    %116 = vector.broadcast %cst_49 : f32 to vector<1x256xf32>
    %117 = arith.subf %116, %110 : vector<1x256xf32>
    %cst_50 = arith.constant 1.000000e-10 : f32
    %118 = vector.broadcast %cst_50 : f32 to vector<1x256xf32>
    %119 = arith.addf %117, %118 : vector<1x256xf32>
    %120 = arith.mulf %109, %119 : vector<1x256xf32>
    %121 = vector.extract_strided_slice %35 {offsets = [0, 1280], sizes = [1, 256], strides = [1, 1]} : vector<1x4096xf32> to vector<1x256xf32>
    %122 = arith.mulf %120, %121 : vector<1x256xf32>
    %123 = vector.extract_strided_slice %63 {offsets = [0, 1280], sizes = [8, 256], strides = [1, 1]} : vector<8x4096xf32> to vector<8x256xf32>
    %124 = vector.broadcast %122 : vector<1x256xf32> to vector<8x256xf32>
    %125 = arith.mulf %124, %123 : vector<8x256xf32>
    %126 = arith.addf %115, %125 : vector<8x256xf32>
    %cst_51 = arith.constant 1.000000e+00 : f32
    %127 = vector.broadcast %cst_51 : f32 to vector<1x256xf32>
    %128 = arith.subf %127, %121 : vector<1x256xf32>
    %cst_52 = arith.constant 1.000000e-10 : f32
    %129 = vector.broadcast %cst_52 : f32 to vector<1x256xf32>
    %130 = arith.addf %128, %129 : vector<1x256xf32>
    %131 = arith.mulf %120, %130 : vector<1x256xf32>
    %132 = vector.extract_strided_slice %35 {offsets = [0, 1536], sizes = [1, 256], strides = [1, 1]} : vector<1x4096xf32> to vector<1x256xf32>
    %133 = arith.mulf %131, %132 : vector<1x256xf32>
    %134 = vector.extract_strided_slice %63 {offsets = [0, 1536], sizes = [8, 256], strides = [1, 1]} : vector<8x4096xf32> to vector<8x256xf32>
    %135 = vector.broadcast %133 : vector<1x256xf32> to vector<8x256xf32>
    %136 = arith.mulf %135, %134 : vector<8x256xf32>
    %137 = arith.addf %126, %136 : vector<8x256xf32>
    %cst_53 = arith.constant 1.000000e+00 : f32
    %138 = vector.broadcast %cst_53 : f32 to vector<1x256xf32>
    %139 = arith.subf %138, %132 : vector<1x256xf32>
    %cst_54 = arith.constant 1.000000e-10 : f32
    %140 = vector.broadcast %cst_54 : f32 to vector<1x256xf32>
    %141 = arith.addf %139, %140 : vector<1x256xf32>
    %142 = arith.mulf %131, %141 : vector<1x256xf32>
    %143 = vector.extract_strided_slice %35 {offsets = [0, 1792], sizes = [1, 256], strides = [1, 1]} : vector<1x4096xf32> to vector<1x256xf32>
    %144 = arith.mulf %142, %143 : vector<1x256xf32>
    %145 = vector.extract_strided_slice %63 {offsets = [0, 1792], sizes = [8, 256], strides = [1, 1]} : vector<8x4096xf32> to vector<8x256xf32>
    %146 = vector.broadcast %144 : vector<1x256xf32> to vector<8x256xf32>
    %147 = arith.mulf %146, %145 : vector<8x256xf32>
    %148 = arith.addf %137, %147 : vector<8x256xf32>
    %cst_55 = arith.constant 1.000000e+00 : f32
    %149 = vector.broadcast %cst_55 : f32 to vector<1x256xf32>
    %150 = arith.subf %149, %143 : vector<1x256xf32>
    %cst_56 = arith.constant 1.000000e-10 : f32
    %151 = vector.broadcast %cst_56 : f32 to vector<1x256xf32>
    %152 = arith.addf %150, %151 : vector<1x256xf32>
    %153 = arith.mulf %142, %152 : vector<1x256xf32>
    %154 = vector.extract_strided_slice %35 {offsets = [0, 2048], sizes = [1, 256], strides = [1, 1]} : vector<1x4096xf32> to vector<1x256xf32>
    %155 = arith.mulf %153, %154 : vector<1x256xf32>
    %156 = vector.extract_strided_slice %63 {offsets = [0, 2048], sizes = [8, 256], strides = [1, 1]} : vector<8x4096xf32> to vector<8x256xf32>
    %157 = vector.broadcast %155 : vector<1x256xf32> to vector<8x256xf32>
    %158 = arith.mulf %157, %156 : vector<8x256xf32>
    %159 = arith.addf %148, %158 : vector<8x256xf32>
    %cst_57 = arith.constant 1.000000e+00 : f32
    %160 = vector.broadcast %cst_57 : f32 to vector<1x256xf32>
    %161 = arith.subf %160, %154 : vector<1x256xf32>
    %cst_58 = arith.constant 1.000000e-10 : f32
    %162 = vector.broadcast %cst_58 : f32 to vector<1x256xf32>
    %163 = arith.addf %161, %162 : vector<1x256xf32>
    %164 = arith.mulf %153, %163 : vector<1x256xf32>
    %165 = vector.extract_strided_slice %35 {offsets = [0, 2304], sizes = [1, 256], strides = [1, 1]} : vector<1x4096xf32> to vector<1x256xf32>
    %166 = arith.mulf %164, %165 : vector<1x256xf32>
    %167 = vector.extract_strided_slice %63 {offsets = [0, 2304], sizes = [8, 256], strides = [1, 1]} : vector<8x4096xf32> to vector<8x256xf32>
    %168 = vector.broadcast %166 : vector<1x256xf32> to vector<8x256xf32>
    %169 = arith.mulf %168, %167 : vector<8x256xf32>
    %170 = arith.addf %159, %169 : vector<8x256xf32>
    %cst_59 = arith.constant 1.000000e+00 : f32
    %171 = vector.broadcast %cst_59 : f32 to vector<1x256xf32>
    %172 = arith.subf %171, %165 : vector<1x256xf32>
    %cst_60 = arith.constant 1.000000e-10 : f32
    %173 = vector.broadcast %cst_60 : f32 to vector<1x256xf32>
    %174 = arith.addf %172, %173 : vector<1x256xf32>
    %175 = arith.mulf %164, %174 : vector<1x256xf32>
    %176 = vector.extract_strided_slice %35 {offsets = [0, 2560], sizes = [1, 256], strides = [1, 1]} : vector<1x4096xf32> to vector<1x256xf32>
    %177 = arith.mulf %175, %176 : vector<1x256xf32>
    %178 = vector.extract_strided_slice %63 {offsets = [0, 2560], sizes = [8, 256], strides = [1, 1]} : vector<8x4096xf32> to vector<8x256xf32>
    %179 = vector.broadcast %177 : vector<1x256xf32> to vector<8x256xf32>
    %180 = arith.mulf %179, %178 : vector<8x256xf32>
    %181 = arith.addf %170, %180 : vector<8x256xf32>
    %cst_61 = arith.constant 1.000000e+00 : f32
    %182 = vector.broadcast %cst_61 : f32 to vector<1x256xf32>
    %183 = arith.subf %182, %176 : vector<1x256xf32>
    %cst_62 = arith.constant 1.000000e-10 : f32
    %184 = vector.broadcast %cst_62 : f32 to vector<1x256xf32>
    %185 = arith.addf %183, %184 : vector<1x256xf32>
    %186 = arith.mulf %175, %185 : vector<1x256xf32>
    %187 = vector.extract_strided_slice %35 {offsets = [0, 2816], sizes = [1, 256], strides = [1, 1]} : vector<1x4096xf32> to vector<1x256xf32>
    %188 = arith.mulf %186, %187 : vector<1x256xf32>
    %189 = vector.extract_strided_slice %63 {offsets = [0, 2816], sizes = [8, 256], strides = [1, 1]} : vector<8x4096xf32> to vector<8x256xf32>
    %190 = vector.broadcast %188 : vector<1x256xf32> to vector<8x256xf32>
    %191 = arith.mulf %190, %189 : vector<8x256xf32>
    %192 = arith.addf %181, %191 : vector<8x256xf32>
    %cst_63 = arith.constant 1.000000e+00 : f32
    %193 = vector.broadcast %cst_63 : f32 to vector<1x256xf32>
    %194 = arith.subf %193, %187 : vector<1x256xf32>
    %cst_64 = arith.constant 1.000000e-10 : f32
    %195 = vector.broadcast %cst_64 : f32 to vector<1x256xf32>
    %196 = arith.addf %194, %195 : vector<1x256xf32>
    %197 = arith.mulf %186, %196 : vector<1x256xf32>
    %198 = vector.extract_strided_slice %35 {offsets = [0, 3072], sizes = [1, 256], strides = [1, 1]} : vector<1x4096xf32> to vector<1x256xf32>
    %199 = arith.mulf %197, %198 : vector<1x256xf32>
    %200 = vector.extract_strided_slice %63 {offsets = [0, 3072], sizes = [8, 256], strides = [1, 1]} : vector<8x4096xf32> to vector<8x256xf32>
    %201 = vector.broadcast %199 : vector<1x256xf32> to vector<8x256xf32>
    %202 = arith.mulf %201, %200 : vector<8x256xf32>
    %203 = arith.addf %192, %202 : vector<8x256xf32>
    %cst_65 = arith.constant 1.000000e+00 : f32
    %204 = vector.broadcast %cst_65 : f32 to vector<1x256xf32>
    %205 = arith.subf %204, %198 : vector<1x256xf32>
    %cst_66 = arith.constant 1.000000e-10 : f32
    %206 = vector.broadcast %cst_66 : f32 to vector<1x256xf32>
    %207 = arith.addf %205, %206 : vector<1x256xf32>
    %208 = arith.mulf %197, %207 : vector<1x256xf32>
    %209 = vector.extract_strided_slice %35 {offsets = [0, 3328], sizes = [1, 256], strides = [1, 1]} : vector<1x4096xf32> to vector<1x256xf32>
    %210 = arith.mulf %208, %209 : vector<1x256xf32>
    %211 = vector.extract_strided_slice %63 {offsets = [0, 3328], sizes = [8, 256], strides = [1, 1]} : vector<8x4096xf32> to vector<8x256xf32>
    %212 = vector.broadcast %210 : vector<1x256xf32> to vector<8x256xf32>
    %213 = arith.mulf %212, %211 : vector<8x256xf32>
    %214 = arith.addf %203, %213 : vector<8x256xf32>
    %cst_67 = arith.constant 1.000000e+00 : f32
    %215 = vector.broadcast %cst_67 : f32 to vector<1x256xf32>
    %216 = arith.subf %215, %209 : vector<1x256xf32>
    %cst_68 = arith.constant 1.000000e-10 : f32
    %217 = vector.broadcast %cst_68 : f32 to vector<1x256xf32>
    %218 = arith.addf %216, %217 : vector<1x256xf32>
    %219 = arith.mulf %208, %218 : vector<1x256xf32>
    %220 = vector.extract_strided_slice %35 {offsets = [0, 3584], sizes = [1, 256], strides = [1, 1]} : vector<1x4096xf32> to vector<1x256xf32>
    %221 = arith.mulf %219, %220 : vector<1x256xf32>
    %222 = vector.extract_strided_slice %63 {offsets = [0, 3584], sizes = [8, 256], strides = [1, 1]} : vector<8x4096xf32> to vector<8x256xf32>
    %223 = vector.broadcast %221 : vector<1x256xf32> to vector<8x256xf32>
    %224 = arith.mulf %223, %222 : vector<8x256xf32>
    %225 = arith.addf %214, %224 : vector<8x256xf32>
    %cst_69 = arith.constant 1.000000e+00 : f32
    %226 = vector.broadcast %cst_69 : f32 to vector<1x256xf32>
    %227 = arith.subf %226, %220 : vector<1x256xf32>
    %cst_70 = arith.constant 1.000000e-10 : f32
    %228 = vector.broadcast %cst_70 : f32 to vector<1x256xf32>
    %229 = arith.addf %227, %228 : vector<1x256xf32>
    %230 = arith.mulf %219, %229 : vector<1x256xf32>
    %231 = vector.extract_strided_slice %35 {offsets = [0, 3840], sizes = [1, 256], strides = [1, 1]} : vector<1x4096xf32> to vector<1x256xf32>
    %232 = arith.mulf %230, %231 : vector<1x256xf32>
    %233 = vector.extract_strided_slice %63 {offsets = [0, 3840], sizes = [8, 256], strides = [1, 1]} : vector<8x4096xf32> to vector<8x256xf32>
    %234 = vector.broadcast %232 : vector<1x256xf32> to vector<8x256xf32>
    %235 = arith.mulf %234, %233 : vector<8x256xf32>
    %236 = arith.addf %225, %235 : vector<8x256xf32>
    %c0_71 = arith.constant 0 : index
    %c0_72 = arith.constant 0 : index
    %237 = vector.load %arg14[%c0_71, %c0_72] : memref<8x256xf32, #tpu.memory_space<vmem>>, vector<8x256xf32>
    tpu.vector_store %arg14[%c0_71, %c0_72], %236 {strides = array<i32>} : memref<8x256xf32, #tpu.memory_space<vmem>>, vector<8x256xf32>,
    return
  }
  func.func @transform_0(%arg0: i32) -> (i32, i32) {
    %c0_i32 = arith.constant 0 : i32
    %c0_i32_0 = arith.constant 0 : i32
    return %c0_i32, %arg0 : i32, i32
  }
  func.func @transform_1(%arg0: i32) -> (i32, i32) {
    %c0_i32 = arith.constant 0 : i32
    %c0_i32_0 = arith.constant 0 : i32
    return %c0_i32, %arg0 : i32, i32
  }
  func.func @transform_2(%arg0: i32) -> (i32, i32) {
    %c0_i32 = arith.constant 0 : i32
    %c0_i32_0 = arith.constant 0 : i32
    return %c0_i32, %arg0 : i32, i32
  }
  func.func @transform_3(%arg0: i32) -> (i32, i32) {
    %c0_i32 = arith.constant 0 : i32
    %c0_i32_0 = arith.constant 0 : i32
    %c0_i32_1 = arith.constant 0 : i32
    return %c0_i32, %c0_i32_0 : i32, i32
  }
  func.func @transform_4(%arg0: i32) -> (i32, i32) {
    %c0_i32 = arith.constant 0 : i32
    %c0_i32_0 = arith.constant 0 : i32
    %c0_i32_1 = arith.constant 0 : i32
    return %c0_i32, %c0_i32_0 : i32, i32
  }
  func.func @transform_5(%arg0: i32) -> (i32, i32) {
    %c0_i32 = arith.constant 0 : i32
    %c0_i32_0 = arith.constant 0 : i32
    %c0_i32_1 = arith.constant 0 : i32
    return %c0_i32, %c0_i32_0 : i32, i32
  }
  func.func @transform_6(%arg0: i32) -> (i32, i32) {
    %c0_i32 = arith.constant 0 : i32
    %c0_i32_0 = arith.constant 0 : i32
    %c0_i32_1 = arith.constant 0 : i32
    return %c0_i32, %c0_i32_0 : i32, i32
  }
  func.func @transform_7(%arg0: i32) -> (i32, i32) {
    %c0_i32 = arith.constant 0 : i32
    %c0_i32_0 = arith.constant 0 : i32
    %c0_i32_1 = arith.constant 0 : i32
    return %c0_i32, %c0_i32_0 : i32, i32
  }
  func.func @transform_8(%arg0: i32) -> (i32, i32) {
    %c0_i32 = arith.constant 0 : i32
    %c0_i32_0 = arith.constant 0 : i32
    %c0_i32_1 = arith.constant 0 : i32
    return %c0_i32, %c0_i32_0 : i32, i32
  }
  func.func @transform_9(%arg0: i32) -> (i32, i32) {
    %c0_i32 = arith.constant 0 : i32
    %c0_i32_0 = arith.constant 0 : i32
    %c0_i32_1 = arith.constant 0 : i32
    return %c0_i32, %c0_i32_0 : i32, i32
  }
  func.func @transform_10(%arg0: i32) -> (i32, i32) {
    %c0_i32 = arith.constant 0 : i32
    %c0_i32_0 = arith.constant 0 : i32
    %c0_i32_1 = arith.constant 0 : i32
    return %c0_i32, %c0_i32_0 : i32, i32
  }
  func.func @transform_11(%arg0: i32) -> (i32, i32) {
    %c0_i32 = arith.constant 0 : i32
    %c0_i32_0 = arith.constant 0 : i32
    %c0_i32_1 = arith.constant 0 : i32
    return %c0_i32, %c0_i32_0 : i32, i32
  }
  func.func @transform_12(%arg0: i32) -> (i32, i32) {
    %c0_i32 = arith.constant 0 : i32
    %c0_i32_0 = arith.constant 0 : i32
    %c0_i32_1 = arith.constant 0 : i32
    return %c0_i32, %c0_i32_0 : i32, i32
  }
  func.func @transform_13(%arg0: i32) -> (i32, i32) {
    %c0_i32 = arith.constant 0 : i32
    %c0_i32_0 = arith.constant 0 : i32
    return %c0_i32, %arg0 : i32, i32
  }
}

</mosaic_0001>

<bundles_post_ra>
// kernel: tpu_custom_call.1
= control target key start
LH: loop header
LB: loop body
LE: loop exit
PB: predicated region body
PF: predicated region fallthrough
CT: control target
= control target key end

     0   :  { %s9399_s0 = inlined_call_operand.hbm [shape: bf16[4,32768], index: 0, kind: input, shape index: {}]   ;;  %s9400_s1 = inlined_call_operand.vmem [shape: bf16[3,2048], index: 1, kind: input, shape index: {}]   ;;  %s9401_s2 = inlined_call_operand.vmem [shape: bf16[3,2048], index: 2, kind: input, shape index: {}]   ;;  %s9402_s3 = inlined_call_operand.vmem [shape: bf16[32,4], index: 3, kind: input, shape index: {}]   ;;  %s9403_s4 = inlined_call_operand.vmem [shape: f32[32,1], index: 4, kind: input, shape index: {}]   ;;  %s9404_s5 = inlined_call_operand.vmem [shape: bf16[33,32], index: 5, kind: input, shape index: {}]   ;;  %s9405_s6 = inlined_call_operand.vmem [shape: f32[33,1], index: 6, kind: input, shape index: {}]   ;;  %s9406_s7 = inlined_call_operand.vmem [shape: bf16[32,3], index: 7, kind: input, shape index: {}]   ;;  %s9407_s8 = inlined_call_operand.vmem [shape: bf16[32,32], index: 8, kind: input, shape index: {}]   ;;  %s9408_s9 = inlined_call_operand.vmem [shape: f32[32,1], index: 9, kind: input, shape index: {}]   ;;  %s9409_s10 = inlined_call_operand.vmem [shape: bf16[8,32], index: 10, kind: input, shape index: {}]   ;;  %s9410_s11 = inlined_call_operand.vmem [shape: bf16[8,3], index: 11, kind: input, shape index: {}]   ;;  %s9411_s12 = inlined_call_operand.vmem [shape: f32[8,1], index: 12, kind: input, shape index: {}]   ;;  %s9412_s13 = inlined_call_operand.hbm [shape: f32[8,2048], index: 13, kind: output, shape index: {}]  }
   0x1   :  { %9437 = sst [smem:[#allocation39_spill]] %s9412_s13 }
   0x2   :  { %18 = vsyncpa [#allocation3], 0 }
   0x3   :  { %20 = vsyncpa [#allocation3 + $0x1], 0 }
   0x4   :  { %21 = vsyncpa [#allocation4], 0 }
   0x5   :  { %23 = vsyncpa [#allocation4 + $0x1], 0  ;;  %s6969_s25 = smov 0   ;;  %s6971_s26 = smov 0  }
   0x6   :  { %s6973_s27 = smov 0   ;;  %s6975_s28 = smov 0  }
   0x7 LB: > { %9438 = sst [smem:[#allocation8_spill]] %s6880_s25  ;;  %s6990_s29 = sadd.s32 4294967295, %s6892_s28   ;;  %s6892_s28 = sphi %s6975_s28, %s9544_s28   ;;  %s6888_s27 = sphi %s6973_s27, %s9546_s27   ;;  %s6884_s26 = sphi %s6971_s26, %s9548_s26   ;;  %s6880_s25 = sphi %s6969_s25, %s9547_s25  }
   0x8   : > { %9439 = sst [smem:[#allocation9_spill]] %s6888_s27  ;;  %s6221_s30 = sadd.s32 4294967294, %s6892_s28  }
   0x9   : > { %s6994_s14 = sadd.s32 1, %s6892_s28   ;;  %s36_s15 = sadd.s32 1, %s6888_s27 }
   0xa   : > { %9440 = sst [smem:[#allocation10_spill]] %s6994_s14  ;;  %s33_s16 = ssub.s32 %s6892_s28, %s6994_s14 }
   0xb   : > { %p43_p0 = scmp.ne.s32.totalorder %s6888_s27, %s6884_s26  ;;  %p34_p1 = scmp.eq.s32.totalorder %s33_s16, 0 }
   0xc   : > { %p44_p2 = scmp.eq.s32.totalorder %s6892_s28, 0  ;;  %p49_p3 = scmp.ne.s32.totalorder %s6884_s26, %s6880_s25 }
   0xd   : > { %p50_p4 = scmp.eq.s32.totalorder %s6990_s29, 0  ;;  %p335_p7 = scmp.eq.s32.totalorder %s6990_s29, 7 }
   0xe   : > { %s7006_s17 = scalar_select %p34_p1, %s6888_s27, %s36_s15  }
   0xf   : > { %p7008_p5 = por %p44_p2, %p43_p0  ;;  %p7012_p6 = por %p50_p4, %p49_p3 }
  0x10   : > { %9441 = sst [smem:[#allocation11_spill]] %s7006_s17  ;;  %p341_p8 = scmp.eq.s32.totalorder %s6221_s30, 7 }
  0x11   : > { %s9443_s19 = scalar_select %p7012_p6, 1, 0 }
  0x12   : > { %p6411_p9 = scmp.lt.s32.totalorder %s6892_s28, 8  ;;  %p7018_p10 = por %p335_p7, %p43_p0 }
  0x13   : > { %p7022_p11 = por %p341_p8, %p49_p3  ;;  %s391_s22 = sand.u32 1, %s6888_s27  }
  0x14   : > { %s9444_s20 = scalar_select %p7018_p10, 1, 0 }
  0x15   : > { %s9445_s21 = scalar_select %p7022_p11, 1, 0 }
  0x16   : > { %s6397_s23 = sshll.u32 %s6892_s28, 10  ;;  %s6224_s24 = sshll.u32 %s391_s22, 6 }
  0x17   : > { %9446 = sst [smem:[#allocation12_spill]] %s9445_s21  ;;  %s7031_s17 = scalar_lea.hbm %s9399_s0, %s6397_s23 }
  0x18   : > { %s395_s30 = scalar_lea.vmem [#allocation2], %s6224_s24  ;;  %p7035_p12 = pnand %p6411_p9, %p7008_p5 }
  0x19   : > { %s403_s14 = sshll.u32 %s395_s30, 4  ;;  %s392_s27 = scalar_lea.sflag [#allocation3], %s391_s22  ;;  %s7039_s14 = int_to_ptr.vmem [resolvable:$true] %s403_s14 }
  0x1a   : > { %s6800_s21 = scalar_lea.hbm %s7031_s17, 1024  ;;  %p6802_p2 = pneg %p7035_p12 }
  0x1b   : > { %p6801_p1 = scmp.ne.s32.totalorder %s7031_s17, %s6800_s21  ;;  %s6805_s18 = scalar_lea.hbm %s9399_s0, 8192 }
  0x1c   : > { %p6806_p5 = scmp.lt.s32.totalorder %s7031_s17, %s9399_s0  ;;  %p6807_p7 = scmp.lt.s32.totalorder %s6805_s18, %s6800_s21 }
  0x1d   : > { %p6803_p3 = pnand %p6802_p2, %p6801_p1 }
  0x1e   : > { %p6808_p8 = por %p6807_p7, %p6806_p5 }
  0x1f   : > { %p6804_p4 = pneg %p6803_p3 }
  0x21   : > { %p6809_p9 = pnand %p6808_p8, %p6804_p4 }
  0x23   : > { %6812 = shalt.err (!%p6809_p9)
}
  0x24   : > { %s6813_s22 = scalar_lea.vmem %s7039_s14, 1024  ;;  %s6894_s30 = smov [#allocation2]  }
  0x25   : > { %p6814_p13 = scmp.ne.s32.totalorder %s7039_s14, %s6813_s22  ;;  %s6818_s13 = sshll.u32 %s6894_s30, 4  ;;  %s6819_s13 = int_to_ptr.vmem [resolvable:$false] %s6818_s13 }
  0x26   : > { %s6820_s23 = scalar_lea.vmem %s6819_s13, 2048  ;;  %p6821_p3 = scmp.lt.s32.totalorder %s7039_s14, %s6819_s13 }
  0x27   : > { %p6816_p0 = pnand %p6814_p13, %p6802_p2  ;;  %p6822_p11 = scmp.lt.s32.totalorder %s6820_s23, %s6813_s22 }
  0x29   : > { %p6817_p1 = pneg %p6816_p0  ;;  %p6823_p10 = por %p6822_p11, %p6821_p3 }
  0x2b   : > { %p6824_p6 = pnand %p6823_p10, %p6817_p1 }
  0x2d   : > { %6827 = shalt.err (!%p6824_p6)
}
  0x2e   : > { %6406 = dma.hbm_to_vmem [thread:$0]  (!%p7035_p12), %s7031_s17, 1024, %s7039_s14, %s392_s27  }
  0x2f   : > { %p9448_p4 = scmp.lt.s32.totalorder %s6892_s28, 9  ;;  %p9449_p5 = scmp.ge.s32.totalorder %s6892_s28, 1 }
  0x31   : > { %p427_p13 = pnand %p9449_p5, %p9448_p4 }
  0x33   : > { %430 = sbr.rel (%p427_p13) target bundleno = 1177 (0x499), region = 72 }
  0x38   : > { %s7066_s21 = sand.u32 1, %s6884_s26   ;;  %p9450_p6 = scmp.ne.s32.totalorder %s9443_s19, 0 }
  0x39   : > { %s6228_s13 = sshll.u32 %s7066_s21, 6  ;;  %s433_s24 = scalar_lea.sflag [#allocation3], %s7066_s21 }
  0x3a   : > { %s7070_s18 = scalar_lea.vmem [#allocation2], %s6228_s13 }
  0x3b   : > { %6871 = dma.done.wait (%p9450_p6), %s433_s24, 1024  }
  0x3c   : > { %6873 = vsyncadd (%p9450_p6), %s433_s24, 4294966272  ;;  %v564_v0 = vlaneseq  ;;  %v6895_v1 = vmov 1983009808   ;;  %v9426_v3 = vmov 0   ;;  %v504_v7 = vld [vmem:[%s7070_s18] sm:$0xff]  ;;  %vm703_vm0 = vcmask 1041408  }
  0x3d   : > { %v562_v2 = vunpack.c.l.s4 %v6895_v1  ;;  %832 = vmatprep.mubr.bf16.mxu0 %v9426_v3  ;;  %885 = vmatprep.mubr.bf16.mxu1 %v9426_v3  ;;  %v560_v9 = vcombine.high %v504_v7, %v504_v7  ;;  %v505_v10 = vld [vmem:[%s7070_s18 + $0x8] sm:$0xff]  ;;  %v506_v11 = vld [vmem:[%s7070_s18 + $0x10] sm:$0xff]  ;;  %v518_v19 = vld [vmem:[%s9403_s4] sm:$0xff]  ;;  %vm696_vm1 = vcmask 31744   ;;  %vm1888_vm2 = vcmask 261120   ;;  %s6230_s14 = sshll.u32 %s6990_s29, 1 }
  0x3e   : > { %v7078_v4 = vshrl.u32 %v564_v0, 7  ;;  %6448 = vset.pattern.permute.xlu0 %v9426_v3  ;;  %6449 = vset.pattern.permute.xlu1 %v9426_v3  ;;  %v520_v16 = vld [vmem:[%s9403_s4 + $0x10] sm:$0xff]  ;;  %v577_v17 = vcombine.high %v505_v10, %v505_v10  ;;  %v594_v18 = vcombine.high %v506_v11, %v506_v11  ;;  %v7103_v22 = vld [vmem:[%s9402_s3] sm:$0xff]   ;;  %v521_v25 = vld [vmem:[%s9403_s4 + $0x18] sm:$0xff]  ;;  %p491_p10 = scmp.lt.s32.totalorder %s6230_s14, 15  ;;  %vm3544_vm3 = vcmask 1040384  }
  0x3f   : > { %v563_v5 = vunpack.c.0.s8 %v562_v2  ;;  %534 = vperm.xlu0 %6448, %v520_v16   ;;  %524 = vperm.xlu1 %6449, %v518_v19   ;;  %v519_v28 = vld [vmem:[%s9403_s4 + $0x8] sm:$0xff]  ;;  %v1847_v34 = vld [vmem:[%s9405_s6 + $0x10] sm:$0xff]  ;;  %v1848_v35 = vld [vmem:[%s9405_s6 + $0x18] sm:$0xff]  ;;  %vm3537_vm4 = vcmask 23552   ;;  %s6229_s22 = sshll.u32 %s7066_s21, 4  ;;  %s6398_s30 = sshll.u32 %s6990_s29, 8 }
  0x40   : > { %9451 = vst [vmem:[#allocation13_spill] sm:$0xff] %v7078_v4  ;;  %v7134_v36 = vld [vmem:[%s9402_s3 + $0x8] sm:$0xff]   ;;  %v507_v37 = vld [vmem:[%s7070_s18 + $0x18] sm:$0xff]  ;;  %v1845_v38 = vld [vmem:[%s9405_s6] sm:$0xff]  ;;  %s9550_s14 = smov (!%p491_p10, %s6230_s14), 15  ;;  %s9538_s27 = sld [smem:[#allocation39_spill]] }
  0x41   : > { %v7083_v6 = vsub.s32 %v563_v5, %v7078_v4  ;;  %v1846_v39 = vld [vmem:[%s9405_s6 + $0x8] sm:$0xff]  ;;  %v611_v40 = vcombine.high %v507_v37, %v507_v37  ;;  %v3736_v42 = vld [vmem:[%s9408_s9 + $0x10] sm:$0xff]  ;;  %v3737_v43 = vld [vmem:[%s9408_s9 + $0x18] sm:$0xff]  ;;  %s6231_s17 = sshll.u32 %s9550_s14, 1  ;;  %p9540_p12 = scmp.ne.s32.totalorder %s9444_s20, 0 }
  0x42   : > { %v3734_v49 = vld [vmem:[%s9408_s9] sm:$0xff]  ;;  %v3735_v50 = vld [vmem:[%s9408_s9 + $0x8] sm:$0xff]  ;;  %v511_v16 = vld [vmem:[%s7070_s18 + $0x38] sm:$0xff]  ;;  %s494_s16 = scalar_lea.vmem %s9400_s1, %s6231_s17  ;;  %s500_s23 = scalar_lea.vmem %s9401_s2, %s6231_s17 }
  0x43   : > { %v567_v8 = vrot.slane %v504_v7, %v7083_v6  ;;  %v574_v14 = vrot.slane %v560_v9, %v7083_v6  ;;  %v584_v15 = vrot.slane %v505_v10, %v7083_v6  ;;  %v601_v24 = vrot.slane %v506_v11, %v7083_v6  ;;  %539 = vperm.xlu0 %6448, %v521_v25   ;;  %v508_v51 = vld [vmem:[%s7070_s18 + $0x20] sm:$0xff]  ;;  %v509_v61 = vld [vmem:[%s7070_s18 + $0x28] sm:$0xff]  ;;  %s6898_s15 = smov [#allocation5]  }
  0x44   : > { %v591_v26 = vrot.slane %v577_v17, %v7083_v6  ;;  %v608_v27 = vrot.slane %v594_v18, %v7083_v6  ;;  %529 = vperm.xlu1 %6449, %v519_v28   ;;  %v618_v41 = vrot.slane %v507_v37, %v7083_v6  ;;  %v625_v44 = vrot.slane %v611_v40, %v7083_v6  ;;  %v1849_v52 = vld [vmem:[%s9405_s6 + $0x20] sm:$0x1]  ;;  %s6832_s29 = sshll.u32 %s6898_s15, 4  ;;  %s6833_s29 = int_to_ptr.vmem [resolvable:$false] %s6832_s29 }
  0x45   : > { %v575_v12 = vcombine.high %v567_v8, %v567_v8  ;;  %v705_v13 = vsel %vm703_vm0, %v567_v8, 0  ;;  %v576_v20 = vcombine.high %v574_v14, %v574_v14  ;;  %v711_v21 = vsel %vm703_vm0, %v574_v14, 0  ;;  %v5602_v53 = vld [vmem:[%s9411_s12] sm:$0xff]  ;;  %v510_v8 = vld [vmem:[%s7070_s18 + $0x30] sm:$0xff] }
  0x46   : > { %v592_v23 = vcombine.high %v584_v15, %v584_v15  ;;  %v717_v29 = vsel %vm703_vm0, %v584_v15, 0  ;;  %v593_v30 = vcombine.high %v591_v26, %v591_v26  ;;  %v723_v31 = vsel %vm703_vm0, %v591_v26, 0  ;;  %s9539_s14 = smov %s9538_s27  ;;  %s6125_s17 = scalar_lea.hbm %s9538_s27, %s6398_s30 }
  0x47   : > { %6236 = vmatprep.subr.msk.bf16.mxu0 %vm703_vm0, %v575_v12  ;;  %6239 = vmatprep.subr.msk.bf16.mxu1 %vm703_vm0, %v576_v20  ;;  %v609_v32 = vcombine.high %v601_v24, %v601_v24  ;;  %v610_v33 = vcombine.high %v608_v27, %v608_v27  ;;  %v729_v45 = vsel %vm703_vm0, %v601_v24, 0  ;;  %v626_v46 = vcombine.high %v618_v41, %v618_v41 }
  0x48   : > { %815 = vmatpush1.bf16.msra.mxu0 %v705_v13  ;;  %868 = vmatpush1.bf16.msra.mxu1 %v711_v21  ;;  %v735_v47 = vsel %vm703_vm0, %v608_v27, 0  ;;  %v627_v48 = vcombine.high %v625_v44, %v625_v44  ;;  %v628_v54 = vcombine.high %v508_v51, %v508_v51  ;;  %v635_v55 = vrot.slane %v508_v51, %v7083_v6 }
  0x49   : > { %6242 = vmatprep.subr.msk.bf16.mxu0 %vm703_vm0, %v592_v23  ;;  %6245 = vmatprep.subr.msk.bf16.mxu1 %vm703_vm0, %v593_v30  ;;  %v741_v57 = vsel %vm703_vm0, %v618_v41, 0  ;;  %v747_v59 = vsel %vm703_vm0, %v625_v44, 0  ;;  %v645_v62 = vcombine.high %v509_v61, %v509_v61  ;;  %v652_v63 = vrot.slane %v509_v61, %v7083_v6 }
  0x4a   : > { %1862 = vperm.xlu0 %6448, %v1847_v34   ;;  %1867 = vperm.xlu1 %6449, %v1848_v35   ;;  %v642_v56 = vrot.slane %v628_v54, %v7083_v6  ;;  %v643_v58 = vcombine.high %v635_v55, %v635_v55  ;;  %v753_v1 = vsel %vm703_vm0, %v635_v55, 0  ;;  %v662_v9 = vcombine.high %v510_v8, %v510_v8 }
  0x4b   : > { %6237 = vmatmul.mubr.msk.bf16.vlgmr.msra.gmra.mxu0 %vm696_vm1, %v7103_v22  ;;  %6240 = vmatmul.mubr.msk.bf16.vlgmr.msra.gmra.mxu1 %vm696_vm1, %v7103_v22  ;;  %v659_v0 = vrot.slane %v645_v62, %v7083_v6  ;;  %v660_v2 = vcombine.high %v652_v63, %v652_v63  ;;  %v669_v10 = vrot.slane %v510_v8, %v7083_v6  ;;  %v765_v12 = vsel %vm703_vm0, %v652_v63, 0 }
  0x4c   : > { %842 = vmatprep.mubr.bf16.mxu0 %v9426_v3  ;;  %921 = vmatpush1.bf16.msra.mxu0 %v717_v29  ;;  %v644_v60 = vcombine.high %v642_v56, %v642_v56  ;;  %v759_v5 = vsel %vm703_vm0, %v642_v56, 0  ;;  %v676_v11 = vrot.slane %v662_v9, %v7083_v6  ;;  %v679_v17 = vcombine.high %v511_v16, %v511_v16 }
  0x4d   : > { %895 = vmatprep.mubr.bf16.mxu1 %v9426_v3  ;;  %974 = vmatpush1.bf16.msra.mxu1 %v723_v31  ;;  %v661_v7 = vcombine.high %v659_v0, %v659_v0  ;;  %v677_v13 = vcombine.high %v669_v10, %v669_v10  ;;  %v771_v14 = vsel %vm703_vm0, %v659_v0, 0  ;;  %v686_v18 = vrot.slane %v511_v16, %v7083_v6 }
  0x4e   : > { %6248 = vmatprep.subr.msk.bf16.mxu0 %vm703_vm0, %v609_v32  ;;  %6251 = vmatprep.subr.msk.bf16.mxu1 %vm703_vm0, %v610_v33  ;;  %v678_v15 = vcombine.high %v676_v11, %v676_v11  ;;  %v693_v19 = vrot.slane %v679_v17, %v7083_v6  ;;  %v777_v20 = vsel %vm703_vm0, %v669_v10, 0  ;;  %v783_v23 = vsel %vm703_vm0, %v676_v11, 0 }
  0x4f   : > { %1852 = vperm.xlu0 %6448, %v1845_v38   ;;  %1857 = vperm.xlu1 %6449, %v1846_v39   ;;  %v694_v21 = vcombine.high %v686_v18, %v686_v18  ;;  %v789_v6 = vsel %vm703_vm0, %v686_v18, 0 }
  0x50   : > { %v695_v24 = vcombine.high %v693_v19, %v693_v19  ;;  %v795_v25 = vsel %vm703_vm0, %v693_v19, 0 }
  0x53   : > { %6238 = vmatmul.mubr.msk.bf16.gmra.mxu0 %vm696_vm1, %v7134_v36  ;;  %6241 = vmatmul.mubr.msk.bf16.gmra.mxu1 %vm696_vm1, %v7134_v36 }
  0x54   : > { %938 = vmatprep.mubr.bf16.mxu0 %v9426_v3  ;;  %991 = vmatprep.mubr.bf16.mxu1 %v9426_v3 }
  0x55   : > { %3750 = vperm.xlu0 %6448, %v3736_v42   ;;  %3755 = vperm.xlu1 %6449, %v3737_v43  }
  0x59   : > { %3740 = vperm.xlu0 %6448, %v3734_v49   ;;  %3745 = vperm.xlu1 %6449, %v3735_v50  }
  0x5b   : > { %6243 = vmatmul.mubr.msk.bf16.vlgmr.msra.gmra.mxu0 %vm696_vm1, %v7103_v22  ;;  %6246 = vmatmul.mubr.msk.bf16.vlgmr.msra.gmra.mxu1 %vm696_vm1, %v7103_v22 }
  0x5c   : > { %948 = vmatprep.mubr.bf16.mxu0 %v9426_v3  ;;  %1027 = vmatpush1.bf16.msra.mxu0 %v729_v45 }
  0x5d   : > { %6254 = vmatprep.subr.msk.bf16.mxu0 %vm703_vm0, %v626_v46  ;;  %1001 = vmatprep.mubr.bf16.mxu1 %v9426_v3 }
  0x5e   : > { %1080 = vmatpush1.bf16.msra.mxu1 %v735_v47  ;;  %1872 = vperm.xlu0 %6448, %v1849_v52  }
  0x5f   : > { %6257 = vmatprep.subr.msk.bf16.mxu1 %vm703_vm0, %v627_v48  ;;  %5605 = vperm.xlu1 %6449, %v5602_v53  }
  0x63   : > { %6244 = vmatmul.mubr.msk.bf16.gmra.mxu0 %vm696_vm1, %v7134_v36  ;;  %6247 = vmatmul.mubr.msk.bf16.gmra.mxu1 %vm696_vm1, %v7134_v36 }
  0x64   : > { %1044 = vmatprep.mubr.bf16.mxu0 %v9426_v3  ;;  %1097 = vmatprep.mubr.bf16.mxu1 %v9426_v3 }
  0x6b   : > { %6249 = vmatmul.mubr.msk.bf16.vlgmr.msra.gmra.mxu0 %vm696_vm1, %v7103_v22  ;;  %6252 = vmatmul.mubr.msk.bf16.vlgmr.msra.gmra.mxu1 %vm696_vm1, %v7103_v22 }
  0x6c   : > { %1054 = vmatprep.mubr.bf16.mxu0 %v9426_v3  ;;  %1133 = vmatpush1.bf16.msra.mxu0 %v741_v57 }
  0x6d   : > { %6260 = vmatprep.subr.msk.bf16.mxu0 %vm703_vm0, %v643_v58  ;;  %1107 = vmatprep.mubr.bf16.mxu1 %v9426_v3 }
  0x6e   : > { %1186 = vmatpush1.bf16.msra.mxu1 %v747_v59 }
  0x6f   : > { %6263 = vmatprep.subr.msk.bf16.mxu1 %vm703_vm0, %v644_v60 }
  0x73   : > { %6250 = vmatmul.mubr.msk.bf16.gmra.mxu0 %vm696_vm1, %v7134_v36  ;;  %6253 = vmatmul.mubr.msk.bf16.gmra.mxu1 %vm696_vm1, %v7134_v36 }
  0x74   : > { %1150 = vmatprep.mubr.bf16.mxu0 %v9426_v3  ;;  %1203 = vmatprep.mubr.bf16.mxu1 %v9426_v3 }
  0x7b   : > { %6255 = vmatmul.mubr.msk.bf16.vlgmr.msra.gmra.mxu0 %vm696_vm1, %v7103_v22  ;;  %6258 = vmatmul.mubr.msk.bf16.vlgmr.msra.gmra.mxu1 %vm696_vm1, %v7103_v22 }
  0x7c   : > { %1160 = vmatprep.mubr.bf16.mxu0 %v9426_v3  ;;  %1239 = vmatpush1.bf16.msra.mxu0 %v753_v1 }
  0x7d   : > { %6266 = vmatprep.subr.msk.bf16.mxu0 %vm703_vm0, %v660_v2  ;;  %1213 = vmatprep.mubr.bf16.mxu1 %v9426_v3 }
  0x7e   : > { %1292 = vmatpush1.bf16.msra.mxu1 %v759_v5 }
  0x7f   : > { %6269 = vmatprep.subr.msk.bf16.mxu1 %vm703_vm0, %v661_v7 }
  0x83   : > { %6256 = vmatmul.mubr.msk.bf16.gmra.mxu0 %vm696_vm1, %v7134_v36  ;;  %6259 = vmatmul.mubr.msk.bf16.gmra.mxu1 %vm696_vm1, %v7134_v36 }
  0x84   : > { %1256 = vmatprep.mubr.bf16.mxu0 %v9426_v3  ;;  %1309 = vmatprep.mubr.bf16.mxu1 %v9426_v3 }
  0x8b   : > { %6261 = vmatmul.mubr.msk.bf16.vlgmr.msra.gmra.mxu0 %vm696_vm1, %v7103_v22  ;;  %6264 = vmatmul.mubr.msk.bf16.vlgmr.msra.gmra.mxu1 %vm696_vm1, %v7103_v22 }
  0x8c   : > { %1266 = vmatprep.mubr.bf16.mxu0 %v9426_v3  ;;  %1345 = vmatpush1.bf16.msra.mxu0 %v765_v12 }
  0x8d   : > { %6272 = vmatprep.subr.msk.bf16.mxu0 %vm703_vm0, %v677_v13  ;;  %1319 = vmatprep.mubr.bf16.mxu1 %v9426_v3 }
  0x8e   : > { %1398 = vmatpush1.bf16.msra.mxu1 %v771_v14 }
  0x8f   : > { %6275 = vmatprep.subr.msk.bf16.mxu1 %vm703_vm0, %v678_v15 }
  0x93   : > { %6262 = vmatmul.mubr.msk.bf16.gmra.mxu0 %vm696_vm1, %v7134_v36  ;;  %6265 = vmatmul.mubr.msk.bf16.gmra.mxu1 %vm696_vm1, %v7134_v36 }
  0x94   : > { %1362 = vmatprep.mubr.bf16.mxu0 %v9426_v3  ;;  %1415 = vmatprep.mubr.bf16.mxu1 %v9426_v3 }
  0x9b   : > { %6267 = vmatmul.mubr.msk.bf16.vlgmr.msra.gmra.mxu0 %vm696_vm1, %v7103_v22  ;;  %6270 = vmatmul.mubr.msk.bf16.vlgmr.msra.gmra.mxu1 %vm696_vm1, %v7103_v22 }
  0x9c   : > { %1372 = vmatprep.mubr.bf16.mxu0 %v9426_v3  ;;  %1451 = vmatpush1.bf16.msra.mxu0 %v777_v20 }
  0x9d   : > { %6278 = vmatprep.subr.msk.bf16.mxu0 %vm703_vm0, %v694_v21  ;;  %1425 = vmatprep.mubr.bf16.mxu1 %v9426_v3 }
  0x9e   : > { %1504 = vmatpush1.bf16.msra.mxu1 %v783_v23 }
  0x9f   : > { %6281 = vmatprep.subr.msk.bf16.mxu1 %vm703_vm0, %v695_v24 }
  0xa3   : > { %6268 = vmatmul.mubr.msk.bf16.gmra.mxu0 %vm696_vm1, %v7134_v36  ;;  %6271 = vmatmul.mubr.msk.bf16.gmra.mxu1 %vm696_vm1, %v7134_v36 }
  0xa4   : > { %1468 = vmatprep.mubr.bf16.mxu0 %v9426_v3  ;;  %1521 = vmatprep.mubr.bf16.mxu1 %v9426_v3 }
  0xab   : > { %6273 = vmatmul.mubr.msk.bf16.vlgmr.msra.gmra.mxu0 %vm696_vm1, %v7103_v22  ;;  %6276 = vmatmul.mubr.msk.bf16.vlgmr.msra.gmra.mxu1 %vm696_vm1, %v7103_v22 }
  0xac   : > { %1478 = vmatprep.mubr.bf16.mxu0 %v9426_v3  ;;  %1557 = vmatpush1.bf16.msra.mxu0 %v789_v6 }
  0xad   : > { %1531 = vmatprep.mubr.bf16.mxu1 %v9426_v3  ;;  %1610 = vmatpush1.bf16.msra.mxu1 %v795_v25 }
  0xb3   : > { %6274 = vmatmul.mubr.msk.bf16.gmra.mxu0 %vm696_vm1, %v7134_v36  ;;  %6277 = vmatmul.mubr.msk.bf16.gmra.mxu1 %vm696_vm1, %v7134_v36 }
  0xb4   : > { %1574 = vmatprep.mubr.bf16.mxu0 %v9426_v3  ;;  %1627 = vmatprep.mubr.bf16.mxu1 %v9426_v3 }
  0xba   : > { %v7289_v31 = vpop.permute.xlu0 %534  ;;  %v7291_v33 = vpop.permute.xlu1 %524 }
  0xbb   : > { %6279 = vmatmul.mubr.msk.bf16.vlgmr.msra.gmra.mxu0 %vm696_vm1, %v7103_v22  ;;  %6282 = vmatmul.mubr.msk.bf16.vlgmr.msra.gmra.mxu1 %vm696_vm1, %v7103_v22 }
  0xbc   : > { %1584 = vmatprep.mubr.bf16.mxu0 %v9426_v3  ;;  %1637 = vmatprep.mubr.bf16.mxu1 %v9426_v3 }
  0xbe   : > { %v7293_v39 = vpop.permute.xlu0 %539 }
  0xbf   : > { %v7295_v41 = vpop.permute.xlu1 %529 }
  0xc3   : > { %6280 = vmatmul.mubr.msk.bf16.gmra.mxu0 %vm696_vm1, %v7134_v36  ;;  %6283 = vmatmul.mubr.msk.bf16.gmra.mxu1 %vm696_vm1, %v7134_v36 }
  0xc4   : > { %1930 = vmatprep.mubr.bf16.mxu0 %v9426_v3  ;;  %1991 = vmatprep.mubr.bf16.mxu1 %v9426_v3 }
 0x10b   : > { %v834_v26 = vpop.f32.mrf.mxu0  ;;  %v887_v28 = vpop.f32.mrf.mxu1 }
 0x10c   : > { %v835_v60 = vadd.f32 %v834_v26, %v7291_v33  ;;  %v888_v15 = vadd.f32 %v887_v28, %v7291_v33 }
 0x10d   : > { %v836_v27 = vpop.f32.mrf.mxu0  ;;  %v889_v30 = vpop.f32.mrf.mxu1 }
 0x10e   : > { %v837_v50 = vadd.f32 %v836_v27, %v7291_v33  ;;  %v890_v61 = vadd.f32 %v889_v30, %v7291_v33  ;;  %v1648_v6 = vmax.f32 %v835_v60, 0.0 }
 0x10f   : > { %v838_v29 = vpop.f32.mrf.mxu0  ;;  %v891_v32 = vpop.f32.mrf.mxu1 }
 0x110   : > { %v839_v51 = vadd.f32 %v838_v29, %v7295_v41  ;;  %v892_v2 = vadd.f32 %v891_v32, %v7295_v41  ;;  %v1649_v9 = vmax.f32 %v837_v50, 0.0  ;;  %v1651_v19 = vmax.f32 %v890_v61, 0.0 }
 0x111   : > { %v840_v22 = vpop.f32.mrf.mxu0  ;;  %v893_v35 = vpop.f32.mrf.mxu1 }
 0x112   : > { %v841_v43 = vadd.f32 %v840_v22, %v7295_v41  ;;  %v894_v52 = vadd.f32 %v893_v35, %v7295_v41  ;;  %v1680_v16 = vmax.f32 %v839_v51, 0.0  ;;  %v1682_v25 = vmax.f32 %v892_v2, 0.0  ;;  %v7322_v35 = vld [vmem:[%s9404_s5] sm:$0xff]   ;;  %v7351_v2 = vld [vmem:[%s9404_s5 + $0x8] sm:$0xff]  }
 0x113   : > { %v844_v34 = vpop.f32.mrf.mxu0  ;;  %v897_v38 = vpop.f32.mrf.mxu1  ;;  %v1650_v22 = vmax.f32 %v888_v15, 0.0 }
 0x114   : > { %v845_v47 = vadd.f32 %v844_v34, %v7289_v31  ;;  %v898_v56 = vadd.f32 %v897_v38, %v7289_v31  ;;  %v1681_v62 = vmax.f32 %v841_v43, 0.0  ;;  %v1683_v10 = vmax.f32 %v894_v52, 0.0 }
 0x115   : > { %v846_v37 = vpop.f32.mrf.mxu0  ;;  %v899_v40 = vpop.f32.mrf.mxu1  ;;  %v1781_v28 = vpack.c.bf16 %v1680_v16, %v1648_v6 }
 0x116   : > { %v847_v44 = vadd.f32 %v846_v37, %v7289_v31  ;;  %v900_v53 = vadd.f32 %v899_v40, %v7289_v31  ;;  %v1712_v5 = vmax.f32 %v845_v47, 0.0  ;;  %v1714_v17 = vmax.f32 %v898_v56, 0.0 }
 0x117   : > { %v848_v36 = vpop.f32.mrf.mxu0  ;;  %v901_v46 = vpop.f32.mrf.mxu1  ;;  %v1782_v23 = vpack.c.bf16 %v1681_v62, %v1649_v9  ;;  %v1784_v30 = vpack.c.bf16 %v1683_v10, %v1651_v19  ;;  %v1783_v37 = vpack.c.bf16 %v1682_v25, %v1650_v22 }
 0x118   : > { %v849_v42 = vadd.f32 %v848_v36, %v7293_v39  ;;  %v902_v49 = vadd.f32 %v901_v46, %v7293_v39  ;;  %v1713_v63 = vmax.f32 %v847_v44, 0.0  ;;  %v1715_v11 = vmax.f32 %v900_v53, 0.0 }
 0x119   : > { %v850_v45 = vpop.f32.mrf.mxu0  ;;  %v903_v54 = vpop.f32.mrf.mxu1 }
 0x11a   : > { %v851_v48 = vadd.f32 %v850_v45, %v7293_v39  ;;  %v1744_v57 = vmax.f32 %v849_v42, 0.0  ;;  %v904_v59 = vadd.f32 %v903_v54, %v7293_v39  ;;  %v1746_v7 = vmax.f32 %v902_v49, 0.0 }
 0x11b   : > { %v7307_v55 = vpop.f32.mrf.mxu0  ;;  %v7313_v1 = vpop.f32.mrf.mxu1 }
 0x11c   : > { %v1745_v58 = vmax.f32 %v851_v48, 0.0  ;;  %v1747_v8 = vmax.f32 %v904_v59, 0.0  ;;  %v1813_v18 = vpack.c.bf16 %v1744_v57, %v1712_v5  ;;  %v1815_v26 = vpack.c.bf16 %v1746_v7, %v1714_v17 }
 0x11d   : > { %v942_v0 = vpop.f32.mrf.mxu0  ;;  %v7316_v13 = vpop.f32.mrf.mxu1  ;;  %v941_v59 = vadd.f32 %v7307_v55, %v7291_v33  ;;  %v994_v19 = vadd.f32 %v7313_v1, %v7291_v33 }
 0x11e   : > { %v1814_v14 = vpack.c.bf16 %v1745_v58, %v1713_v63  ;;  %v1816_v24 = vpack.c.bf16 %v1747_v8, %v1715_v11  ;;  %v943_v46 = vadd.f32 %v942_v0, %v7291_v33  ;;  %v996_v7 = vadd.f32 %v7316_v13, %v7291_v33 }
 0x11f   : > { %v944_v12 = vpop.f32.mrf.mxu0  ;;  %v997_v21 = vpop.f32.mrf.mxu1  ;;  %v1652_v6 = vmax.f32 %v941_v59, 0.0 }
 0x120   : > { %1910 = vmatprep.subr.bf16.mxu0 %v1814_v14  ;;  %1971 = vmatprep.subr.bf16.mxu1 %v1816_v24  ;;  %v945_v49 = vadd.f32 %v944_v12, %v7295_v41  ;;  %v1653_v5 = vmax.f32 %v943_v46, 0.0  ;;  %v998_v55 = vadd.f32 %v997_v21, %v7295_v41  ;;  %v1655_v25 = vmax.f32 %v996_v7, 0.0 }
 0x121   : > { %v946_v20 = vpop.f32.mrf.mxu0  ;;  %1911 = vmatpush1.bf16.msra.mxu0 %v1813_v18  ;;  %v999_v29 = vpop.f32.mrf.mxu1  ;;  %1972 = vmatpush1.bf16.msra.mxu1 %v1815_v26 }
 0x122   : > { %1912 = vmatprep.subr.bf16.mxu0 %v1782_v23  ;;  %1973 = vmatprep.subr.bf16.mxu1 %v1784_v30  ;;  %v947_v42 = vadd.f32 %v946_v20, %v7295_v41  ;;  %v1000_v54 = vadd.f32 %v999_v29, %v7295_v41  ;;  %v1684_v16 = vmax.f32 %v945_v49, 0.0  ;;  %v1686_v26 = vmax.f32 %v998_v55, 0.0 }
 0x123   : > { %v950_v27 = vpop.f32.mrf.mxu0  ;;  %v1003_v34 = vpop.f32.mrf.mxu1 }
 0x124   : > { %v951_v47 = vadd.f32 %v950_v27, %v7289_v31  ;;  %v1685_v60 = vmax.f32 %v947_v42, 0.0  ;;  %v1004_v62 = vadd.f32 %v1003_v34, %v7289_v31  ;;  %v1687_v17 = vmax.f32 %v1000_v54, 0.0 }
 0x125   : > { %v952_v32 = vpop.f32.mrf.mxu0  ;;  %1913 = vmatpush1.bf16.msra.mxu0 %v1781_v28  ;;  %v1005_v36 = vpop.f32.mrf.mxu1  ;;  %1974 = vmatpush1.bf16.msra.mxu1 %v1783_v37  ;;  %v1785_v30 = vpack.c.bf16 %v1684_v16, %v1652_v6  ;;  %v1654_v28 = vmax.f32 %v994_v19, 0.0  ;;  %v7369_v37 = vld [vmem:[%s9404_s5 + $0x10] ss:$0 sps:$4 sm:$0x11]  }
 0x126   : > { %v953_v43 = vadd.f32 %v952_v32, %v7289_v31  ;;  %v1006_v50 = vadd.f32 %v1005_v36, %v7289_v31  ;;  %v1716_v8 = vmax.f32 %v951_v47, 0.0  ;;  %v1718_v20 = vmax.f32 %v1004_v62, 0.0 }
 0x127   : > { %v954_v38 = vpop.f32.mrf.mxu0  ;;  %v1007_v45 = vpop.f32.mrf.mxu1  ;;  %v1786_v21 = vpack.c.bf16 %v1685_v60, %v1653_v5  ;;  %v1788_v22 = vpack.c.bf16 %v1687_v17, %v1655_v25 }
 0x128   : > { %v955_v40 = vadd.f32 %v954_v38, %v7293_v39  ;;  %6287 = vmatmul.mubr.msk.bf16.vlgmr.msra.gmra.mxu0 %vm1888_vm2, %v7322_v35  ;;  %v1008_v51 = vadd.f32 %v1007_v45, %v7293_v39  ;;  %6290 = vmatmul.mubr.msk.bf16.vlgmr.msra.gmra.mxu1 %vm1888_vm2, %v7322_v35  ;;  %v1717_v61 = vmax.f32 %v953_v43, 0.0  ;;  %v1719_v10 = vmax.f32 %v1006_v50, 0.0 }
 0x129   : > { %v956_v44 = vpop.f32.mrf.mxu0  ;;  %1940 = vmatprep.mubr.bf16.mxu0 %v9426_v3  ;;  %v1009_v52 = vpop.f32.mrf.mxu1  ;;  %2001 = vmatprep.mubr.bf16.mxu1 %v9426_v3  ;;  %v1787_v38 = vpack.c.bf16 %v1686_v26, %v1654_v28 }
 0x12a   : > { %v957_v48 = vadd.f32 %v956_v44, %v7293_v39  ;;  %v1748_v56 = vmax.f32 %v955_v40, 0.0  ;;  %v1010_v58 = vadd.f32 %v1009_v52, %v7293_v39  ;;  %v1750_v11 = vmax.f32 %v1008_v51, 0.0 }
 0x12b   : > { %v7338_v53 = vpop.f32.mrf.mxu0  ;;  %v7346_v0 = vpop.f32.mrf.mxu1 }
 0x12c   : > { %v1749_v57 = vmax.f32 %v957_v48, 0.0  ;;  %v1751_v9 = vmax.f32 %v1010_v58, 0.0  ;;  %v1817_v18 = vpack.c.bf16 %v1748_v56, %v1716_v8  ;;  %v1819_v27 = vpack.c.bf16 %v1750_v11, %v1718_v20 }
 0x12d   : > { %v1048_v63 = vpop.f32.mrf.mxu0  ;;  %v7356_v14 = vpop.f32.mrf.mxu1 }
 0x12e   : > { %v1818_v15 = vpack.c.bf16 %v1749_v57, %v1717_v61  ;;  %v1820_v24 = vpack.c.bf16 %v1751_v9, %v1719_v10  ;;  %v1049_v47 = vadd.f32 %v1048_v63, %v7291_v33  ;;  %v1047_v61 = vadd.f32 %v7338_v53, %v7291_v33 }
 0x12f   : > { %v1050_v12 = vpop.f32.mrf.mxu0  ;;  %v1103_v23 = vpop.f32.mrf.mxu1  ;;  %v1102_v55 = vadd.f32 %v7356_v14, %v7291_v33 }
 0x130   : > { %6288 = vmatmul.mubr.msk.bf16.gmra.mxu0 %vm1888_vm2, %v7351_v2  ;;  %2032 = vmatprep.subr.bf16.mxu0 %v1818_v15  ;;  %v1051_v50 = vadd.f32 %v1050_v12, %v7295_v41  ;;  %v1657_v9 = vmax.f32 %v1049_v47, 0.0  ;;  %v1104_v12 = vadd.f32 %v1103_v23, %v7295_v41  ;;  %v1656_v26 = vmax.f32 %v1047_v61, 0.0 }
 0x131   : > { %v1052_v13 = vpop.f32.mrf.mxu0  ;;  %2033 = vmatpush1.bf16.msra.mxu0 %v1817_v18  ;;  %1950 = vmatprep.mubr.bf16.mxu0 %v9426_v3  ;;  %v1105_v29 = vpop.f32.mrf.mxu1 }
 0x132   : > { %6291 = vmatmul.mubr.msk.bf16.gmra.mxu1 %vm1888_vm2, %v7351_v2  ;;  %2034 = vmatprep.subr.bf16.mxu0 %v1786_v21  ;;  %v1053_v43 = vadd.f32 %v1052_v13, %v7295_v41  ;;  %v1106_v57 = vadd.f32 %v1105_v29, %v7295_v41  ;;  %v1688_v19 = vmax.f32 %v1051_v50, 0.0  ;;  %v1100_v21 = vadd.f32 %v7346_v0, %v7291_v33 }
 0x133   : > { %v1056_v1 = vpop.f32.mrf.mxu0  ;;  %2093 = vmatprep.subr.bf16.mxu1 %v1820_v24  ;;  %2011 = vmatprep.mubr.bf16.mxu1 %v9426_v3  ;;  %v1109_v34 = vpop.f32.mrf.mxu1 }
 0x134   : > { %2094 = vmatpush1.bf16.msra.mxu1 %v1819_v27  ;;  %v1057_v48 = vadd.f32 %v1056_v1, %v7289_v31  ;;  %v1689_v62 = vmax.f32 %v1053_v43, 0.0  ;;  %v1110_v5 = vadd.f32 %v1109_v34, %v7289_v31  ;;  %v1691_v20 = vmax.f32 %v1106_v57, 0.0 }
 0x135   : > { %v1058_v32 = vpop.f32.mrf.mxu0  ;;  %2095 = vmatprep.subr.bf16.mxu1 %v1788_v22  ;;  %2035 = vmatpush1.bf16.msra.mxu0 %v1785_v30  ;;  %v1111_v40 = vpop.f32.mrf.mxu1  ;;  %v1659_v27 = vmax.f32 %v1102_v55, 0.0  ;;  %v1690_v1 = vmax.f32 %v1104_v12, 0.0  ;;  %v1789_v22 = vpack.c.bf16 %v1688_v19, %v1656_v26 }
 0x136   : > { %v1059_v44 = vadd.f32 %v1058_v32, %v7289_v31  ;;  %v1112_v51 = vadd.f32 %v1111_v40, %v7289_v31  ;;  %v1720_v10 = vmax.f32 %v1057_v48, 0.0  ;;  %v1722_v24 = vmax.f32 %v1110_v5, 0.0 }
 0x137   : > { %v1060_v36 = vpop.f32.mrf.mxu0  ;;  %v1113_v46 = vpop.f32.mrf.mxu1  ;;  %v1790_v6 = vpack.c.bf16 %v1689_v62, %v1657_v9  ;;  %v1792_v28 = vpack.c.bf16 %v1691_v20, %v1659_v27  ;;  %v1658_v32 = vmax.f32 %v1100_v21, 0.0 }
 0x138   : > { %v1061_v42 = vadd.f32 %v1060_v36, %v7293_v39  ;;  %2096 = vmatpush1.bf16.msra.mxu1 %v1787_v38  ;;  %6289 = vmatmul.mubr.msk.bf16.gmra.mxu0 %vm1888_vm2, %v7369_v37  ;;  %v1114_v52 = vadd.f32 %v1113_v46, %v7293_v39  ;;  %v1721_v63 = vmax.f32 %v1059_v44, 0.0  ;;  %v1723_v15 = vmax.f32 %v1112_v51, 0.0 }
 0x139   : > { %v1062_v45 = vpop.f32.mrf.mxu0  ;;  %2052 = vmatprep.mubr.bf16.mxu0 %v9426_v3  ;;  %v1115_v54 = vpop.f32.mrf.mxu1  ;;  %v1791_v36 = vpack.c.bf16 %v1690_v1, %v1658_v32 }
 0x13a   : > { %v1063_v49 = vadd.f32 %v1062_v45, %v7293_v39  ;;  %6292 = vmatmul.mubr.msk.bf16.gmra.mxu1 %vm1888_vm2, %v7369_v37  ;;  %v1752_v58 = vmax.f32 %v1061_v42, 0.0  ;;  %v1116_v60 = vadd.f32 %v1115_v54, %v7293_v39  ;;  %v1754_v16 = vmax.f32 %v1114_v52, 0.0 }
 0x13b   : > { %v7385_v56 = vpop.f32.mrf.mxu0  ;;  %2113 = vmatprep.mubr.bf16.mxu1 %v9426_v3  ;;  %v7395_v8 = vpop.f32.mrf.mxu1 }
 0x13c   : > { %v1753_v59 = vmax.f32 %v1063_v49, 0.0  ;;  %v1755_v11 = vmax.f32 %v1116_v60, 0.0  ;;  %v1821_v13 = vpack.c.bf16 %v1752_v58, %v1720_v10  ;;  %v1823_v29 = vpack.c.bf16 %v1754_v16, %v1722_v24 }
 0x13d   : > { %v7393_v7 = vpop.f32.mrf.mxu0  ;;  %v7402_v53 = vpop.f32.mrf.mxu1 }
 0x13e   : > { %v1822_v18 = vpack.c.bf16 %v1753_v59, %v1721_v63  ;;  %v1824_v25 = vpack.c.bf16 %v1755_v11, %v1723_v15  ;;  %v1155_v15 = vadd.f32 %v7393_v7, %v7291_v33  ;;  %v1208_v7 = vadd.f32 %v7402_v53, %v7291_v33 }
 0x13f   : > { %v7400_v17 = vpop.f32.mrf.mxu0  ;;  %v7408_v23 = vpop.f32.mrf.mxu1 }
 0x140   : > { %6293 = vmatmul.mubr.msk.bf16.vlgmr.msra.gmra.mxu0 %vm1888_vm2, %v7322_v35  ;;  %2154 = vmatprep.subr.bf16.mxu0 %v1822_v18  ;;  %v1157_v20 = vadd.f32 %v7400_v17, %v7295_v41  ;;  %v1210_v26 = vadd.f32 %v7408_v23, %v7295_v41  ;;  %v1661_v1 = vmax.f32 %v1155_v15, 0.0 }
 0x141   : > { %v1158_v14 = vpop.f32.mrf.mxu0  ;;  %2155 = vmatpush1.bf16.msra.mxu0 %v1821_v13  ;;  %2062 = vmatprep.mubr.bf16.mxu0 %v9426_v3  ;;  %v1211_v30 = vpop.f32.mrf.mxu1 }
 0x142   : > { %6296 = vmatmul.mubr.msk.bf16.vlgmr.msra.gmra.mxu1 %vm1888_vm2, %v7322_v35  ;;  %2156 = vmatprep.subr.bf16.mxu0 %v1790_v6  ;;  %v1159_v5 = vadd.f32 %v1158_v14, %v7295_v41  ;;  %v1212_v16 = vadd.f32 %v1211_v30, %v7295_v41  ;;  %v1692_v53 = vmax.f32 %v1157_v20, 0.0 }
 0x143   : > { %v1162_v0 = vpop.f32.mrf.mxu0  ;;  %2215 = vmatprep.subr.bf16.mxu1 %v1824_v25  ;;  %2123 = vmatprep.mubr.bf16.mxu1 %v9426_v3  ;;  %v1215_v38 = vpop.f32.mrf.mxu1  ;;  %v1153_v25 = vadd.f32 %v7385_v56, %v7291_v33 }
 0x144   : > { %2216 = vmatpush1.bf16.msra.mxu1 %v1823_v29  ;;  %v1163_v11 = vadd.f32 %v1162_v0, %v7289_v31  ;;  %v1216_v13 = vadd.f32 %v1215_v38, %v7289_v31  ;;  %v1693_v24 = vmax.f32 %v1159_v5, 0.0  ;;  %v1695_v29 = vmax.f32 %v1212_v16, 0.0 }
 0x145   : > { %v1164_v34 = vpop.f32.mrf.mxu0  ;;  %2217 = vmatprep.subr.bf16.mxu1 %v1792_v28  ;;  %2157 = vmatpush1.bf16.msra.mxu0 %v1789_v22  ;;  %v1217_v42 = vpop.f32.mrf.mxu1  ;;  %v1206_v22 = vadd.f32 %v7395_v8, %v7291_v33 }
 0x146   : > { %v1165_v43 = vadd.f32 %v1164_v34, %v7289_v31  ;;  %v1218_v47 = vadd.f32 %v1217_v42, %v7289_v31  ;;  %v1724_v27 = vmax.f32 %v1163_v11, 0.0  ;;  %v1726_v28 = vmax.f32 %v1216_v13, 0.0 }
 0x147   : > { %v1166_v40 = vpop.f32.mrf.mxu0  ;;  %v1219_v45 = vpop.f32.mrf.mxu1  ;;  %v1663_v34 = vmax.f32 %v1208_v7, 0.0  ;;  %v1694_v42 = vmax.f32 %v1210_v26, 0.0 }
 0x148   : > { %2218 = vmatpush1.bf16.msra.mxu1 %v1791_v36  ;;  %6294 = vmatmul.mubr.msk.bf16.gmra.mxu0 %vm1888_vm2, %v7351_v2  ;;  %v1725_v52 = vmax.f32 %v1165_v43, 0.0  ;;  %v1727_v59 = vmax.f32 %v1218_v47, 0.0  ;;  %v1167_v63 = vadd.f32 %v1166_v40, %v7293_v39  ;;  %v1220_v12 = vadd.f32 %v1219_v45, %v7293_v39 }
 0x149   : > { %v1168_v44 = vpop.f32.mrf.mxu0  ;;  %2072 = vmatprep.mubr.bf16.mxu0 %v9426_v3  ;;  %v1221_v48 = vpop.f32.mrf.mxu1  ;;  %v1794_v36 = vpack.c.bf16 %v1693_v24, %v1661_v1  ;;  %v1660_v40 = vmax.f32 %v1153_v25, 0.0  ;;  %v1796_v47 = vpack.c.bf16 %v1695_v29, %v1663_v34 }
 0x14a   : > { %v1169_v46 = vadd.f32 %v1168_v44, %v7293_v39  ;;  %6297 = vmatmul.mubr.msk.bf16.gmra.mxu1 %vm1888_vm2, %v7351_v2  ;;  %v1222_v51 = vadd.f32 %v1221_v48, %v7293_v39  ;;  %v1756_v21 = vmax.f32 %v1167_v63, 0.0  ;;  %v1758_v17 = vmax.f32 %v1220_v12, 0.0 }
 0x14b   : > { %v7422_v49 = vpop.f32.mrf.mxu0  ;;  %2133 = vmatprep.mubr.bf16.mxu1 %v9426_v3  ;;  %v7428_v57 = vpop.f32.mrf.mxu1  ;;  %v1662_v48 = vmax.f32 %v1206_v22, 0.0 }
 0x14c   : > { %v1757_v50 = vmax.f32 %v1169_v46, 0.0  ;;  %v1759_v58 = vmax.f32 %v1222_v51, 0.0  ;;  %v1825_v32 = vpack.c.bf16 %v1756_v21, %v1724_v27  ;;  %v1827_v43 = vpack.c.bf16 %v1758_v17, %v1726_v28 }
 0x14d   : > { %v7426_v54 = vpop.f32.mrf.mxu0  ;;  %v7432_v61 = vpop.f32.mrf.mxu1  ;;  %v1795_v63 = vpack.c.bf16 %v1694_v42, %v1662_v48 }
 0x14e   : > { %v1826_v62 = vpack.c.bf16 %v1757_v50, %v1725_v52  ;;  %v1828_v10 = vpack.c.bf16 %v1759_v58, %v1727_v59  ;;  %v1793_v50 = vpack.c.bf16 %v1692_v53, %v1660_v40  ;;  %v1261_v53 = vadd.f32 %v7426_v54, %v7291_v33 }
 0x14f   : > { %v7430_v60 = vpop.f32.mrf.mxu0  ;;  %v7440_v55 = vpop.f32.mrf.mxu1  ;;  %v1314_v54 = vadd.f32 %v7432_v61, %v7291_v33 }
 0x150   : > { %6295 = vmatmul.mubr.msk.bf16.gmra.mxu0 %vm1888_vm2, %v7369_v37  ;;  %2276 = vmatprep.subr.bf16.mxu0 %v1826_v62  ;;  %v1665_v42 = vmax.f32 %v1261_v53, 0.0 }
 0x151   : > { %v7438_v9 = vpop.f32.mrf.mxu0  ;;  %2174 = vmatprep.mubr.bf16.mxu0 %v9426_v3  ;;  %2337 = vmatprep.subr.bf16.mxu1 %v1828_v10  ;;  %v7452_v19 = vpop.f32.mrf.mxu1 }
 0x152   : > { %6298 = vmatmul.mubr.msk.bf16.gmra.mxu1 %vm1888_vm2, %v7369_v37  ;;  %v1265_v17 = vadd.f32 %v7438_v9, %v7295_v41 }
 0x153   : > { %v7450_v18 = vpop.f32.mrf.mxu0  ;;  %2235 = vmatprep.mubr.bf16.mxu1 %v9426_v3  ;;  %v7460_v6 = vpop.f32.mrf.mxu1 }
 0x155   : > { %v1270_v14 = vpop.f32.mrf.mxu0  ;;  %v1323_v30 = vpop.f32.mrf.mxu1 }
 0x156   : > { %v1271_v38 = vadd.f32 %v1270_v14, %v7289_v31  ;;  %v1324_v8 = vadd.f32 %v1323_v30, %v7289_v31  ;;  %v1269_v30 = vadd.f32 %v7450_v18, %v7289_v31  ;;  %v1322_v18 = vadd.f32 %v7460_v6, %v7289_v31 }
 0x157   : > { %v1272_v0 = vpop.f32.mrf.mxu0  ;;  %v1325_v23 = vpop.f32.mrf.mxu1 }
 0x158   : > { %6299 = vmatmul.mubr.msk.bf16.vlgmr.msra.gmra.mxu0 %vm1888_vm2, %v7322_v35  ;;  %v1729_v58 = vmax.f32 %v1271_v38, 0.0  ;;  %v1731_v10 = vmax.f32 %v1324_v8, 0.0  ;;  %v1273_v27 = vadd.f32 %v1272_v0, %v7293_v39  ;;  %v1326_v22 = vadd.f32 %v1325_v23, %v7293_v39 }
 0x159   : > { %v1274_v56 = vpop.f32.mrf.mxu0  ;;  %2277 = vmatpush1.bf16.msra.mxu0 %v1825_v32  ;;  %2184 = vmatprep.mubr.bf16.mxu0 %v9426_v3  ;;  %v1327_v45 = vpop.f32.mrf.mxu1  ;;  %v1318_v0 = vadd.f32 %v7452_v19, %v7295_v41  ;;  %v1263_v32 = vadd.f32 %v7430_v60, %v7295_v41  ;;  %v1697_v38 = vmax.f32 %v1265_v17, 0.0  ;;  %v1316_v60 = vadd.f32 %v7440_v55, %v7295_v41 }
 0x15a   : > { %v1275_v44 = vadd.f32 %v1274_v56, %v7293_v39  ;;  %2278 = vmatprep.subr.bf16.mxu0 %v1794_v36  ;;  %6302 = vmatmul.mubr.msk.bf16.vlgmr.msra.gmra.mxu1 %vm1888_vm2, %v7322_v35  ;;  %v1328_v52 = vadd.f32 %v1327_v45, %v7293_v39  ;;  %v1760_v34 = vmax.f32 %v1273_v27, 0.0  ;;  %v1259_v36 = vadd.f32 %v7422_v49, %v7291_v33 }
 0x15b   : > { %v7476_v46 = vpop.f32.mrf.mxu0  ;;  %2338 = vmatpush1.bf16.msra.mxu1 %v1827_v43  ;;  %2245 = vmatprep.mubr.bf16.mxu1 %v9426_v3  ;;  %v7482_v62 = vpop.f32.mrf.mxu1  ;;  %v1728_v6 = vmax.f32 %v1269_v30, 0.0  ;;  %v1762_v40 = vmax.f32 %v1326_v22, 0.0  ;;  %v1699_v43 = vmax.f32 %v1318_v0, 0.0  ;;  %v1696_v48 = vmax.f32 %v1263_v32, 0.0 }
 0x15c   : > { %v1761_v51 = vmax.f32 %v1275_v44, 0.0  ;;  %2339 = vmatprep.subr.bf16.mxu1 %v1796_v47  ;;  %v1763_v5 = vmax.f32 %v1328_v52, 0.0  ;;  %v1312_v47 = vadd.f32 %v7428_v57, %v7291_v33  ;;  %v1730_v49 = vmax.f32 %v1322_v18, 0.0 }
 0x15d   : > { %v7480_v59 = vpop.f32.mrf.mxu0  ;;  %2279 = vmatpush1.bf16.msra.mxu0 %v1793_v50  ;;  %v7486_v12 = vpop.f32.mrf.mxu1  ;;  %v1829_v50 = vpack.c.bf16 %v1760_v34, %v1728_v6 }
 0x15e   : > { %v1830_v15 = vpack.c.bf16 %v1761_v51, %v1729_v58  ;;  %v1832_v13 = vpack.c.bf16 %v1763_v5, %v1731_v10  ;;  %v1667_v51 = vmax.f32 %v1314_v54, 0.0  ;;  %v1798_v5 = vpack.c.bf16 %v1697_v38, %v1665_v42 }
 0x15f   : > { %v7484_v11 = vpop.f32.mrf.mxu0  ;;  %2340 = vmatpush1.bf16.msra.mxu1 %v1795_v63  ;;  %v7492_v20 = vpop.f32.mrf.mxu1  ;;  %v1664_v10 = vmax.f32 %v1259_v36, 0.0 }
 0x160   : > { %6300 = vmatmul.mubr.msk.bf16.gmra.mxu0 %vm1888_vm2, %v7351_v2  ;;  %2398 = vmatprep.subr.bf16.mxu0 %v1830_v15  ;;  %v1698_v15 = vmax.f32 %v1316_v60, 0.0  ;;  %v1800_v17 = vpack.c.bf16 %v1699_v43, %v1667_v51 }
 0x161   : > { %v7490_v16 = vpop.f32.mrf.mxu0  ;;  %2194 = vmatprep.mubr.bf16.mxu0 %v9426_v3  ;;  %2459 = vmatprep.subr.bf16.mxu1 %v1832_v13  ;;  %v7499_v7 = vpop.f32.mrf.mxu1  ;;  %v1831_v13 = vpack.c.bf16 %v1762_v40, %v1730_v49  ;;  %v1797_v30 = vpack.c.bf16 %v1696_v48, %v1664_v10 }
 0x162   : > { %6303 = vmatmul.mubr.msk.bf16.gmra.mxu1 %vm1888_vm2, %v7351_v2  ;;  %v1371_v42 = vadd.f32 %v7490_v16, %v7295_v41  ;;  %v1369_v16 = vadd.f32 %v7484_v11, %v7295_v41  ;;  %v1422_v11 = vadd.f32 %v7492_v20, %v7295_v41 }
 0x163   : > { %v7497_v21 = vpop.f32.mrf.mxu0  ;;  %2255 = vmatprep.mubr.bf16.mxu1 %v9426_v3  ;;  %v7502_v14 = vpop.f32.mrf.mxu1 }
 0x164   : > { %v1375_v43 = vadd.f32 %v7497_v21, %v7289_v31  ;;  %v1428_v21 = vadd.f32 %v7502_v14, %v7289_v31  ;;  %v1701_v49 = vmax.f32 %v1371_v42, 0.0 }
 0x165   : > { %v1376_v24 = vpop.f32.mrf.mxu0  ;;  %v1429_v26 = vpop.f32.mrf.mxu1 }
 0x166   : > { %v1377_v44 = vadd.f32 %v1376_v24, %v7289_v31  ;;  %v1430_v55 = vadd.f32 %v1429_v26, %v7289_v31  ;;  %v1732_v51 = vmax.f32 %v1375_v43, 0.0 }
 0x167   : > { %v7504_v25 = vpop.f32.mrf.mxu0  ;;  %v7511_v29 = vpop.f32.mrf.mxu1 }
 0x168   : > { %6301 = vmatmul.mubr.msk.bf16.gmra.mxu0 %vm1888_vm2, %v7369_v37  ;;  %v1733_v57 = vmax.f32 %v1377_v44, 0.0  ;;  %v1735_v22 = vmax.f32 %v1430_v55, 0.0  ;;  %v1379_v6 = vadd.f32 %v7504_v25, %v7293_v39  ;;  %v1432_v44 = vadd.f32 %v7511_v29, %v7293_v39 }
 0x169   : > { %v1380_v1 = vpop.f32.mrf.mxu0  ;;  %2296 = vmatprep.mubr.bf16.mxu0 %v9426_v3  ;;  %v1433_v9 = vpop.f32.mrf.mxu1  ;;  %v1367_v25 = vadd.f32 %v7480_v59, %v7291_v33  ;;  %v1420_v59 = vadd.f32 %v7486_v12, %v7291_v33  ;;  %v1418_v12 = vadd.f32 %v7482_v62, %v7291_v33 }
 0x16a   : > { %6304 = vmatmul.mubr.msk.bf16.gmra.mxu1 %vm1888_vm2, %v7369_v37  ;;  %v1381_v19 = vadd.f32 %v1380_v1, %v7293_v39  ;;  %v1434_v61 = vadd.f32 %v1433_v9, %v7293_v39  ;;  %v1666_v1 = vmax.f32 %v1312_v47, 0.0  ;;  %v1424_v47 = vadd.f32 %v7499_v7, %v7295_v41 }
 0x16b   : > { %v7523_v28 = vpop.f32.mrf.mxu0  ;;  %2357 = vmatprep.mubr.bf16.mxu1 %v9426_v3  ;;  %v7535_v23 = vpop.f32.mrf.mxu1  ;;  %v1764_v29 = vmax.f32 %v1379_v6, 0.0  ;;  %v1766_v55 = vmax.f32 %v1432_v44, 0.0 }
 0x16c   : > { %v1765_v52 = vmax.f32 %v1381_v19, 0.0  ;;  %v1767_v24 = vmax.f32 %v1434_v61, 0.0  ;;  %v1799_v32 = vpack.c.bf16 %v1698_v15, %v1666_v1 }
 0x16d   : > { %v7533_v56 = vpop.f32.mrf.mxu0  ;;  %v7545_v45 = vpop.f32.mrf.mxu1 }
 0x16e   : > { %v1834_v9 = vpack.c.bf16 %v1765_v52, %v1733_v57  ;;  %v1836_v54 = vpack.c.bf16 %v1767_v24, %v1735_v22  ;;  %v1669_v52 = vmax.f32 %v1367_v25, 0.0  ;;  %v1734_v57 = vmax.f32 %v1428_v21, 0.0 }
 0x16f   : > { %v7543_v8 = vpop.f32.mrf.mxu0  ;;  %v7554_v63 = vpop.f32.mrf.mxu1  ;;  %v1833_v24 = vpack.c.bf16 %v1764_v29, %v1732_v51 }
 0x170   : > { %6305 = vmatmul.mubr.msk.bf16.vlgmr.msra.gmra.mxu0 %vm1888_vm2, %v7322_v35 }
 0x171   : > { %v7552_v58 = vpop.f32.mrf.mxu0  ;;  %2399 = vmatpush1.bf16.msra.mxu0 %v1829_v50  ;;  %2306 = vmatprep.mubr.bf16.mxu0 %v9426_v3  ;;  %v7561_v27 = vpop.f32.mrf.mxu1  ;;  %v1365_v50 = vadd.f32 %v7476_v46, %v7291_v33 }
 0x172   : > { %2400 = vmatprep.subr.bf16.mxu0 %v1798_v5  ;;  %6308 = vmatmul.mubr.msk.bf16.vlgmr.msra.gmra.mxu1 %vm1888_vm2, %v7322_v35  ;;  %v1703_v5 = vmax.f32 %v1424_v47, 0.0 }
 0x173   : > { %v7559_v26 = vpop.f32.mrf.mxu0  ;;  %2460 = vmatpush1.bf16.msra.mxu1 %v1831_v13  ;;  %2367 = vmatprep.mubr.bf16.mxu1 %v9426_v3  ;;  %v7564_v0 = vpop.f32.mrf.mxu1  ;;  %v1700_v13 = vmax.f32 %v1369_v16, 0.0  ;;  %v1668_v22 = vmax.f32 %v1365_v50, 0.0  ;;  %v1477_v50 = vadd.f32 %v7552_v58, %v7295_v41  ;;  %v1475_v58 = vadd.f32 %v7543_v8, %v7295_v41 }
 0x174   : > { %2461 = vmatprep.subr.bf16.mxu1 %v1800_v17  ;;  %v1671_v17 = vmax.f32 %v1420_v59, 0.0 }
 0x175   : > { %v1482_v53 = vpop.f32.mrf.mxu0  ;;  %2401 = vmatpush1.bf16.msra.mxu0 %v1797_v30  ;;  %v1535_v34 = vpop.f32.mrf.mxu1  ;;  %v1802_v30 = vpack.c.bf16 %v1701_v49, %v1669_v52  ;;  %v1530_v52 = vadd.f32 %v7561_v27, %v7295_v41  ;;  %v1471_v27 = vadd.f32 %v7523_v28, %v7291_v33 }
 0x176   : > { %2520 = vmatprep.subr.bf16.mxu0 %v1834_v9  ;;  %v1483_v10 = vadd.f32 %v1482_v53, %v7289_v31  ;;  %v1536_v20 = vadd.f32 %v1535_v34, %v7289_v31  ;;  %v1702_v53 = vmax.f32 %v1422_v11, 0.0  ;;  %v1835_v9 = vpack.c.bf16 %v1766_v55, %v1734_v57 }
 0x177   : > { %v7566_v18 = vpop.f32.mrf.mxu0  ;;  %2462 = vmatpush1.bf16.msra.mxu1 %v1799_v32  ;;  %v7570_v38 = vpop.f32.mrf.mxu1  ;;  %v1804_v34 = vpack.c.bf16 %v1703_v5, %v1671_v17  ;;  %v1481_v11 = vadd.f32 %v7559_v26, %v7289_v31  ;;  %v1534_v26 = vadd.f32 %v7564_v0, %v7289_v31  ;;  %v1707_v0 = vmax.f32 %v1530_v52, 0.0 }
 0x178   : > { %2581 = vmatprep.subr.bf16.mxu1 %v1836_v54  ;;  %6306 = vmatmul.mubr.msk.bf16.gmra.mxu0 %vm1888_vm2, %v7351_v2  ;;  %v1737_v62 = vmax.f32 %v1483_v10, 0.0  ;;  %v1739_v42 = vmax.f32 %v1536_v20, 0.0  ;;  %v1485_v49 = vadd.f32 %v7566_v18, %v7293_v39  ;;  %v1538_v51 = vadd.f32 %v7570_v38, %v7293_v39 }
 0x179   : > { %v1486_v19 = vpop.f32.mrf.mxu0  ;;  %2316 = vmatprep.mubr.bf16.mxu0 %v9426_v3  ;;  %v1539_v36 = vpop.f32.mrf.mxu1  ;;  %v1473_v18 = vadd.f32 %v7533_v56, %v7291_v33  ;;  %v1526_v10 = vadd.f32 %v7545_v45, %v7291_v33  ;;  %v1705_v56 = vmax.f32 %v1477_v50, 0.0  ;;  %v1736_v8 = vmax.f32 %v1481_v11, 0.0 }
 0x17a   : > { %6309 = vmatmul.mubr.msk.bf16.gmra.mxu1 %vm1888_vm2, %v7351_v2  ;;  %v1487_v7 = vadd.f32 %v1486_v19, %v7293_v39  ;;  %v1540_v15 = vadd.f32 %v1539_v36, %v7293_v39  ;;  %v1670_v19 = vmax.f32 %v1418_v12, 0.0  ;;  %v1801_v36 = vpack.c.bf16 %v1700_v13, %v1668_v22 }
 0x17b   : > { %2377 = vmatprep.mubr.bf16.mxu1 %v9426_v3  ;;  %v7576_v60 = vpop.f32.mrf.mxu0  ;;  %v7580_v40 = vpop.f32.mrf.mxu1  ;;  %v1768_v5 = vmax.f32 %v1485_v49, 0.0  ;;  %v1528_v12 = vadd.f32 %v7554_v63, %v7295_v41  ;;  %v1770_v13 = vmax.f32 %v1538_v51, 0.0  ;;  %v1673_v57 = vmax.f32 %v1473_v18, 0.0 }
 0x17c   : > { %v1769_v1 = vmax.f32 %v1487_v7, 0.0  ;;  %v1771_v54 = vmax.f32 %v1540_v15, 0.0  ;;  %v1803_v44 = vpack.c.bf16 %v1702_v53, %v1670_v19  ;;  %v1524_v45 = vadd.f32 %v7535_v23, %v7291_v33 }
 0x17d   : > { %v7590_v61 = vpop.f32.mrf.mxu0  ;;  %v7603_v48 = vpop.f32.mrf.mxu1  ;;  %v1704_v20 = vmax.f32 %v1475_v58, 0.0  ;;  %v1675_v22 = vmax.f32 %v1526_v10, 0.0  ;;  %v1806_v63 = vpack.c.bf16 %v1705_v56, %v1673_v57  ;;  %v6897_v11 = vmov 65535  }
 0x17e   : > { %v1838_v43 = vpack.c.bf16 %v1769_v1, %v1737_v62  ;;  %v1840_v47 = vpack.c.bf16 %v1771_v54, %v1739_v42  ;;  %v1738_v1 = vmax.f32 %v1534_v26, 0.0  ;;  %v1706_v62 = vmax.f32 %v1528_v12, 0.0  ;;  %v6340_v26 = vld.sshfl [vmem:[%s500_s23] sm:$0x33 pattern:$0x76325410] }
 0x17f   : > { %v7613_v14 = vpop.f32.mrf.mxu0  ;;  %v7619_v46 = vpop.f32.mrf.mxu1  ;;  %v1808_v19 = vpack.c.bf16 %v1707_v0, %v1675_v22  ;;  %v3545_v51 = vsel %vm3544_vm3, 4294967295, %v6897_v11  ;;  %v1577_v18 = vadd.f32 %v7576_v60, %v7291_v33  ;;  %v1630_v10 = vadd.f32 %v7580_v40, %v7291_v33  ;;  %v6787_v60 = vld [vmem:[%s9404_s5] sm:$0xff]   ;;  %s488_s23 = scalar_lea.vmem [#allocation5], %s6229_s22 }
 0x180   : > { %6307 = vmatmul.mubr.msk.bf16.gmra.mxu0 %vm1888_vm2, %v7369_v37  ;;  %v1839_v54 = vpack.c.bf16 %v1770_v13, %v1738_v1  ;;  %v1634_v52 = vadd.f32 %v7619_v46, %v7295_v41  ;;  %v3615_v46 = vcombine.high %v6340_v26, %v6340_v26  ;;  %v7760_v1 = vpop.permute.xlu0 %1862  ;;  %s6127_s13 = sshll.u32 %s488_s23, 4  ;;  %s6128_s13 = int_to_ptr.vmem [resolvable:$true] %s6127_s13 }
 0x181   : > { %2418 = vmatprep.mubr.bf16.mxu0 %v9426_v3  ;;  %v7624_v32 = vpop.f32.mrf.mxu0  ;;  %v7629_v6 = vpop.f32.mrf.mxu1  ;;  %v1676_v12 = vmax.f32 %v1577_v18, 0.0  ;;  %v1678_v57 = vmax.f32 %v1630_v10, 0.0  ;;  %s6828_s19 = scalar_lea.vmem %s6128_s13, 256  ;;  %p6835_p7 = scmp.lt.s32.totalorder %s6128_s13, %s6833_s29 }
 0x182   : > { %6310 = vmatmul.mubr.msk.bf16.gmra.mxu1 %vm1888_vm2, %v7369_v37  ;;  %p6829_p11 = scmp.ne.s32.totalorder %s6128_s13, %s6828_s19 }
 0x183   : > { %2479 = vmatprep.mubr.bf16.mxu1 %v9426_v3  ;;  %v7632_v25 = vpop.f32.mrf.mxu0  ;;  %v7634_v16 = vpop.f32.mrf.mxu1 }
 0x184   : > { %v1587_v49 = vadd.f32 %v7632_v25, %v7289_v31  ;;  %v1581_v25 = vadd.f32 %v7613_v14, %v7295_v41  ;;  %v7771_v22 = vpop.permute.xlu0 %1852  ;;  %p6830_p0 = pnand %p6829_p11, %p9540_p12 }
 0x185   : > { %v1588_v21 = vpop.f32.mrf.mxu0  ;;  %v1641_v29 = vpop.f32.mrf.mxu1 }
 0x186   : > { %v1642_v28 = vadd.f32 %v1641_v29, %v7289_v31  ;;  %v1583_v29 = vadd.f32 %v7624_v32, %v7295_v41  ;;  %v1636_v32 = vadd.f32 %v7629_v6, %v7295_v41  ;;  %v1632_v6 = vadd.f32 %v7603_v48, %v7291_v33  ;;  %p6831_p2 = pneg %p6830_p0 }
 0x187   : > { %v7642_v59 = vpop.f32.mrf.mxu0  ;;  %v7646_v7 = vpop.f32.mrf.mxu1  ;;  %v1740_v14 = vmax.f32 %v1587_v49, 0.0  ;;  %v1708_v56 = vmax.f32 %v1581_v25, 0.0 }
 0x188   : > { %6311 = vmatmul.mubr.msk.bf16.vlgmr.msra.gmra.mxu0 %vm1888_vm2, %v7322_v35  ;;  %v1644_v50 = vadd.f32 %v7646_v7, %v7293_v39 }
 0x189   : > { %2521 = vmatpush1.bf16.msra.mxu0 %v1833_v24  ;;  %2428 = vmatprep.mubr.bf16.mxu0 %v9426_v3  ;;  %v1592_v55 = vpop.f32.mrf.mxu0  ;;  %v1645_v38 = vpop.f32.mrf.mxu1  ;;  %v1589_v24 = vadd.f32 %v1588_v21, %v7289_v31  ;;  %v1809_v0 = vpack.c.bf16 %v1708_v56, %v1676_v12 }
 0x18a   : > { %2522 = vmatprep.subr.bf16.mxu0 %v1802_v30  ;;  %6314 = vmatmul.mubr.msk.bf16.vlgmr.msra.gmra.mxu1 %vm1888_vm2, %v7322_v35  ;;  %v1593_v15 = vadd.f32 %v1592_v55, %v7293_v39  ;;  %v1646_v17 = vadd.f32 %v1645_v38, %v7293_v39  ;;  %v1837_v30 = vpack.c.bf16 %v1768_v5, %v1736_v8  ;;  %v1709_v55 = vmax.f32 %v1583_v29, 0.0 }
 0x18b   : > { %2582 = vmatpush1.bf16.msra.mxu1 %v1835_v9  ;;  %2489 = vmatprep.mubr.bf16.mxu1 %v9426_v3  ;;  %v1672_v9 = vmax.f32 %v1471_v27, 0.0  ;;  %v1774_v58 = vmax.f32 %v1644_v50, 0.0  ;;  %v3546_v38 = vsel %vm703_vm0, %v3545_v51, 0  ;;  %v1679_v27 = vmax.f32 %v1632_v6, 0.0 }
 0x18c   : > { %2583 = vmatprep.subr.bf16.mxu1 %v1804_v34  ;;  %v1773_v53 = vmax.f32 %v1593_v15, 0.0  ;;  %v1741_v34 = vmax.f32 %v1589_v24, 0.0  ;;  %v1775_v23 = vmax.f32 %v1646_v17, 0.0  ;;  %v1710_v8 = vmax.f32 %v1634_v52, 0.0 }
 0x18d   : > { %2523 = vmatpush1.bf16.msra.mxu0 %v1801_v36  ;;  %v1674_v36 = vmax.f32 %v1524_v45, 0.0  ;;  %v1805_v42 = vpack.c.bf16 %v1704_v20, %v1672_v9  ;;  %v3623_v24 = vand.u32 %v3615_v46, %v3546_v38  ;;  %v3620_v20 = vand.u32 %v6340_v26, %v3546_v38  ;;  %v7779_v9 = vpop.permute.xlu0 %3750 }
 0x18e   : > { %2642 = vmatprep.subr.bf16.mxu0 %v1838_v43  ;;  %v1743_v43 = vmax.f32 %v1642_v28, 0.0  ;;  %v1811_v17 = vpack.c.bf16 %v1710_v8, %v1678_v57  ;;  %v3606_v28 = vld [vmem:[%s9410_s11] sm:$0xf]  ;;  %9452 = vst [vmem:[#allocation14_spill] sm:$0xff] %v7779_v9 }
 0x18f   : > { %2584 = vmatpush1.bf16.msra.mxu1 %v1803_v44  ;;  %v1842_v44 = vpack.c.bf16 %v1773_v53, %v1741_v34  ;;  %v6464_v34 = vld [vmem:[%s9406_s7 + $0x8] sm:$0xff]  }
 0x190   : > { %2703 = vmatprep.subr.bf16.mxu1 %v1840_v47  ;;  %6312 = vmatmul.mubr.msk.bf16.gmra.mxu0 %vm1888_vm2, %v7351_v2  ;;  %v1807_v47 = vpack.c.bf16 %v1706_v62, %v1674_v36  ;;  %v1844_v21 = vpack.c.bf16 %v1775_v23, %v1743_v43  ;;  %v7785_v36 = vpop.permute.xlu1 %1867 }
 0x191   : > { %2438 = vmatprep.mubr.bf16.mxu0 %v9426_v3 }
 0x192   : > { %6315 = vmatmul.mubr.msk.bf16.gmra.mxu1 %vm1888_vm2, %v7351_v2 }
 0x193   : > { %2499 = vmatprep.mubr.bf16.mxu1 %v9426_v3 }
 0x194   : > { %v7791_v49 = vpop.permute.xlu1 %1857 }
 0x198   : > { %6313 = vmatmul.mubr.msk.bf16.gmra.mxu0 %vm1888_vm2, %v7369_v37 }
 0x199   : > { %2540 = vmatprep.mubr.bf16.mxu0 %v9426_v3 }
 0x19a   : > { %6316 = vmatmul.mubr.msk.bf16.gmra.mxu1 %vm1888_vm2, %v7369_v37 }
 0x19b   : > { %2601 = vmatprep.mubr.bf16.mxu1 %v9426_v3 }
 0x1a0   : > { %6317 = vmatmul.mubr.msk.bf16.vlgmr.msra.gmra.mxu0 %vm1888_vm2, %v7322_v35 }
 0x1a1   : > { %2643 = vmatpush1.bf16.msra.mxu0 %v1837_v30  ;;  %2550 = vmatprep.mubr.bf16.mxu0 %v9426_v3  ;;  %v6463_v30 = vld [vmem:[%s9406_s7] sm:$0xff]  }
 0x1a2   : > { %2644 = vmatprep.subr.bf16.mxu0 %v1806_v63  ;;  %6320 = vmatmul.mubr.msk.bf16.vlgmr.msra.gmra.mxu1 %vm1888_vm2, %v7322_v35  ;;  %v1591_v35 = vadd.f32 %v7642_v59, %v7293_v39  ;;  %v1579_v59 = vadd.f32 %v7590_v61, %v7291_v33  ;;  %v1640_v39 = vadd.f32 %v7634_v16, %v7289_v31  ;;  %v6337_v61 = vld.sshfl [vmem:[%s494_s16] sm:$0x33 pattern:$0x76325410]  ;;  %v1711_v16 = vmax.f32 %v1636_v32, 0.0  ;;  %s6834_s16 = scalar_lea.vmem %s6833_s29, 512 }
 0x1a3   : > { %2704 = vmatpush1.bf16.msra.mxu1 %v1839_v54  ;;  %2611 = vmatprep.mubr.bf16.mxu1 %v9426_v3  ;;  %v3536_v5 = vcombine.high %v6337_v61, %v6337_v61  ;;  %v3548_v45 = vand.u32 %v6337_v61, %v3546_v38  ;;  %p6836_p8 = scmp.lt.s32.totalorder %s6834_s16, %s6828_s19 }
 0x1a4   : > { %2705 = vmatprep.subr.bf16.mxu1 %v1808_v19  ;;  %v1772_v7 = vmax.f32 %v1591_v35, 0.0  ;;  %v1677_v31 = vmax.f32 %v1579_v59, 0.0  ;;  %v1742_v48 = vmax.f32 %v1640_v39, 0.0  ;;  %v1812_v33 = vpack.c.bf16 %v1711_v16, %v1679_v27 }
 0x1a5   : > { %2645 = vmatpush1.bf16.msra.mxu0 %v1805_v42  ;;  %v3551_v40 = vand.u32 %v3546_v38, %v3536_v5  ;;  %p6837_p9 = por %p6836_p8, %p6835_p7 }
 0x1a6   : > { %2764 = vmatprep.subr.bf16.mxu0 %v1842_v44  ;;  %v1841_v15 = vpack.c.bf16 %v1772_v7, %v1740_v14  ;;  %v1810_v41 = vpack.c.bf16 %v1709_v55, %v1677_v31  ;;  %v1843_v13 = vpack.c.bf16 %v1774_v58, %v1742_v48  ;;  %v7788_v44 = vpop.permute.xlu0 %3740 }
 0x1a7   : > { %2706 = vmatpush1.bf16.msra.mxu1 %v1807_v47  ;;  %9453 = vst [vmem:[#allocation15_spill] sm:$0xff] %v7788_v44  ;;  %p6838_p1 = pnand %p6837_p9, %p6831_p2 }
 0x1a8   : > { %2825 = vmatprep.subr.bf16.mxu1 %v1844_v21  ;;  %6318 = vmatmul.mubr.msk.bf16.gmra.mxu0 %vm1888_vm2, %v7351_v2 }
 0x1a9   : > { %2560 = vmatprep.mubr.bf16.mxu0 %v9426_v3 }
 0x1aa   : > { %6321 = vmatmul.mubr.msk.bf16.gmra.mxu1 %vm1888_vm2, %v7351_v2  ;;  %v7794_v25 = vpop.permute.xlu0 %1872 }
 0x1ab   : > { %2621 = vmatprep.mubr.bf16.mxu1 %v9426_v3 }
 0x1b0   : > { %6319 = vmatmul.mubr.msk.bf16.gmra.mxu0 %vm1888_vm2, %v7369_v37 }
 0x1b1   : > { %2662 = vmatprep.mubr.bf16.mxu0 %v9426_v3 }
 0x1b2   : > { %6322 = vmatmul.mubr.msk.bf16.gmra.mxu1 %vm1888_vm2, %v7369_v37 }
 0x1b3   : > { %2723 = vmatprep.mubr.bf16.mxu1 %v9426_v3 }
 0x1b8   : > { %6323 = vmatmul.mubr.msk.bf16.vlgmr.msra.gmra.mxu0 %vm1888_vm2, %v6787_v60 }
 0x1b9   : > { %2765 = vmatpush1.bf16.msra.mxu0 %v1841_v15  ;;  %2672 = vmatprep.mubr.bf16.mxu0 %v9426_v3 }
 0x1ba   : > { %2766 = vmatprep.subr.bf16.mxu0 %v1810_v41  ;;  %6326 = vmatmul.mubr.msk.bf16.vlgmr.msra.gmra.mxu1 %vm1888_vm2, %v6787_v60 }
 0x1bb   : > { %2826 = vmatpush1.bf16.msra.mxu1 %v1843_v13  ;;  %2733 = vmatprep.mubr.bf16.mxu1 %v9426_v3 }
 0x1bc   : > { %2827 = vmatprep.subr.bf16.mxu1 %v1812_v33 }
 0x1bd   : > { %2767 = vmatpush1.bf16.msra.mxu0 %v1809_v0 }
 0x1be   : > { %3567 = vmatprep.subr.bf16.mxu0 %v3551_v40 }
 0x1bf   : > { %2828 = vmatpush1.bf16.msra.mxu1 %v1811_v17 }
 0x1c0   : > { %6324 = vmatmul.mubr.msk.bf16.gmra.mxu0 %vm1888_vm2, %v7351_v2  ;;  %3639 = vmatprep.subr.bf16.mxu1 %v3623_v24 }
 0x1c1   : > { %2682 = vmatprep.mubr.bf16.mxu0 %v9426_v3 }
 0x1c2   : > { %6327 = vmatmul.mubr.msk.bf16.gmra.mxu1 %vm1888_vm2, %v7351_v2  ;;  %v6788_v2 = vld [vmem:[%s9404_s5 + $0x8] sm:$0xff]  }
 0x1c3   : > { %2743 = vmatprep.mubr.bf16.mxu1 %v9426_v3 }
 0x1c8   : > { %6325 = vmatmul.mubr.msk.bf16.gmra.mxu0 %vm1888_vm2, %v7369_v37 }
 0x1c9   : > { %2784 = vmatprep.mubr.bf16.mxu0 %v9426_v3 }
 0x1ca   : > { %6328 = vmatmul.mubr.msk.bf16.gmra.mxu1 %vm1888_vm2, %v7369_v37 }
 0x1cb   : > { %2845 = vmatprep.mubr.bf16.mxu1 %v9426_v3 }
 0x1d0   : > { %6329 = vmatmul.mubr.msk.bf16.vlgmr.msra.gmra.mxu0 %vm1888_vm2, %v6787_v60 }
 0x1d1   : > { %2794 = vmatprep.mubr.bf16.mxu0 %v9426_v3  ;;  %3568 = vmatpush1.bf16.msra.mxu0 %v3548_v45 }
 0x1d2   : > { %6332 = vmatmul.mubr.msk.bf16.vlgmr.msra.gmra.mxu1 %vm1888_vm2, %v6787_v60 }
 0x1d3   : > { %2855 = vmatprep.mubr.bf16.mxu1 %v9426_v3  ;;  %3640 = vmatpush1.bf16.msra.mxu1 %v3620_v20 }
 0x1d8   : > { %6330 = vmatmul.mubr.msk.bf16.gmra.mxu0 %vm1888_vm2, %v6788_v2 }
 0x1d9   : > { %2804 = vmatprep.mubr.bf16.mxu0 %v9426_v3 }
 0x1da   : > { %6333 = vmatmul.mubr.msk.bf16.gmra.mxu1 %vm1888_vm2, %v6788_v2 }
 0x1db   : > { %2865 = vmatprep.mubr.bf16.mxu1 %v9426_v3 }
 0x1e0   : > { %6331 = vmatmul.mubr.msk.bf16.gmra.mxu0 %vm1888_vm2, %v7369_v37 }
 0x1e1   : > { %3585 = vmatprep.mubr.bf16.mxu0 %v9426_v3 }
 0x1e2   : > { %6334 = vmatmul.mubr.msk.bf16.gmra.mxu1 %vm1888_vm2, %v7369_v37 }
 0x1e3   : > { %3657 = vmatprep.mubr.bf16.mxu1 %v9426_v3 }
 0x1e8   : > { %v1932_v53 = vpop.f32.mrf.mxu0  ;;  %6338 = vmatmul.mubr.msk.bf16.vlgmr.msra.gmra.mxu0 %vm3537_vm4, %v6463_v30  ;;  %v1993_v37 = vpop.f32.mrf.mxu1 }
 0x1e9   : > { %3595 = vmatprep.mubr.bf16.mxu0 %v9426_v3  ;;  %v1933_v46 = vadd.f32 %v1932_v53, %v7771_v22  ;;  %v1994_v45 = vadd.f32 %v1993_v37, %v7771_v22 }
 0x1ea   : > { %v1934_v63 = vpop.f32.mrf.mxu0  ;;  %6341 = vmatmul.mubr.msk.bf16.vlgmr.msra.gmra.mxu1 %vm3537_vm4, %v3606_v28  ;;  %v1995_v54 = vpop.f32.mrf.mxu1 }
 0x1eb   : > { %3806 = vmatprep.mubr.bf16.mxu1 %v9426_v3  ;;  %v1935_v11 = vadd.f32 %v1934_v63, %v7771_v22  ;;  %v1996_v5 = vadd.f32 %v1995_v54, %v7771_v22  ;;  %v7830_v54 = vld [vmem:[%s9407_s8] sm:$0xff]  }
 0x1ec   : > { %v1936_v62 = vpop.f32.mrf.mxu0  ;;  %v1997_v19 = vpop.f32.mrf.mxu1 }
 0x1ed   : > { %v1937_v16 = vadd.f32 %v1936_v62, %v7791_v49  ;;  %v1998_v12 = vadd.f32 %v1997_v19, %v7791_v49 }
 0x1ee   : > { %v1938_v23 = vpop.f32.mrf.mxu0  ;;  %v1999_v43 = vpop.f32.mrf.mxu1 }
 0x1ef   : > { %v1939_v39 = vadd.f32 %v1938_v23, %v7791_v49  ;;  %v2000_v6 = vadd.f32 %v1999_v43, %v7791_v49  ;;  %v3670_v20 = vpack.c.bf16 %v1937_v16, %v1933_v46 }
 0x1f0   : > { %v1942_v42 = vpop.f32.mrf.mxu0  ;;  %6339 = vmatmul.mubr.msk.bf16.gmra.mxu0 %vm3537_vm4, %v6464_v34  ;;  %v3672_v34 = vpack.c.bf16 %v1998_v12, %v1994_v45 }
 0x1f1   : > { %3859 = vmatprep.mubr.bf16.mxu0 %v9426_v3  ;;  %v1943_v51 = vadd.f32 %v1942_v42, %v7760_v1  ;;  %v3671_v15 = vpack.c.bf16 %v1939_v39, %v1935_v11  ;;  %v3673_v57 = vpack.c.bf16 %v2000_v6, %v1996_v5 }
 0x1f2   : > { %v1944_v47 = vpop.f32.mrf.mxu0  ;;  %v2003_v21 = vpop.f32.mrf.mxu1 }
 0x1f3   : > { %v1945_v7 = vadd.f32 %v1944_v47, %v7760_v1  ;;  %v2004_v38 = vadd.f32 %v2003_v21, %v7760_v1 }
 0x1f4   : > { %v1946_v35 = vpop.f32.mrf.mxu0  ;;  %v2005_v29 = vpop.f32.mrf.mxu1 }
 0x1f5   : > { %v1947_v50 = vadd.f32 %v1946_v35, %v7785_v36  ;;  %v2006_v14 = vadd.f32 %v2005_v29, %v7760_v1 }
 0x1f6   : > { %v1948_v59 = vpop.f32.mrf.mxu0  ;;  %v2007_v32 = vpop.f32.mrf.mxu1 }
 0x1f7   : > { %v1949_v61 = vadd.f32 %v1948_v59, %v7785_v36  ;;  %v2008_v55 = vadd.f32 %v2007_v32, %v7785_v36  ;;  %v3702_v10 = vpack.c.bf16 %v1947_v50, %v1943_v51 }
 0x1f8   : > { %v1952_v18 = vpop.f32.mrf.mxu0  ;;  %v2009_v52 = vpop.f32.mrf.mxu1 }
 0x1f9   : > { %v3703_v58 = vpack.c.bf16 %v1949_v61, %v1945_v7  ;;  %v7805_v26 = vadd.f32 %v1952_v18, %v7794_v25  ;;  %v2010_v31 = vadd.f32 %v2009_v52, %v7785_v36  ;;  %v3704_v8 = vpack.c.bf16 %v2008_v55, %v2004_v38  ;;  %v7843_v7 = vld [vmem:[%s9407_s8 + $0x8] sm:$0xff]  }
 0x1fa   : > { %v1954_v56 = vpop.f32.mrf.mxu0  ;;  %v2013_v48 = vpop.f32.mrf.mxu1 }
 0x1fb   : > { %v2906_v27 = vand.u32 2147483647, %v7805_v26  ;;  %v3705_v60 = vpack.c.bf16 %v2010_v31, %v2006_v14  ;;  %v7813_v41 = vadd.f32 %v1954_v56, %v7794_v25  ;;  %3786 = vmatprep.subr.bf16.mxu1 %v3703_v58  ;;  %v7818_v13 = vadd.f32 %v2013_v48, %v7794_v25 }
 0x1fc   : > { %v1956_v33 = vpop.f32.mrf.mxu0  ;;  %v2015_v40 = vpop.f32.mrf.mxu1  ;;  %3787 = vmatpush1.bf16.msra.mxu1 %v3702_v10 }
 0x1fd   : > { %v2938_v0 = vsub.f32 0.0, %v2906_v27  ;;  %v2907_v24 = vand.u32 2147483647, %v7813_v41  ;;  %v7822_v17 = vadd.f32 %v2015_v40, %v7794_v25  ;;  %3788 = vmatprep.subr.bf16.mxu1 %v3671_v15  ;;  %3839 = vmatprep.subr.bf16.mxu0 %v3705_v60  ;;  %v2908_v2 = vand.u32 2147483647, %v7818_v13 }
 0x1fe   : > { %v1957_v30 = vpop.f32.mrf.mxu0  ;;  %v2017_v28 = vpop.f32.mrf.mxu1  ;;  %3840 = vmatpush1.bf16.msra.mxu0 %v3704_v8 }
 0x1ff   : > { %v2970_v53 = vmul.f32 1.442695, %v2938_v0  ;;  %v2939_v63 = vsub.f32 0.0, %v2907_v24  ;;  %v2909_v62 = vand.u32 2147483647, %v7822_v17  ;;  %3841 = vmatprep.subr.bf16.mxu0 %v3673_v57  ;;  %v2940_v23 = vsub.f32 0.0, %v2908_v2 }
 0x200   : > { %v2018_v19 = vpop.f32.mrf.mxu1  ;;  %v2054_v37 = vpop.f32.mrf.mxu0  ;;  %3789 = vmatpush1.bf16.msra.mxu1 %v3670_v20 }
 0x201   : > { %6467 = vpow2.f32 %v2970_v53  ;;  %v2972_v42 = vmul.f32 1.442695, %v2939_v63  ;;  %v2941_v43 = vsub.f32 0.0, %v2909_v62  ;;  %v2974_v47 = vmul.f32 1.442695, %v2940_v23 }
 0x202   : > { %v2056_v21 = vpop.f32.mrf.mxu0  ;;  %v7832_v35 = vpop.f32.mrf.mxu1  ;;  %3842 = vmatpush1.bf16.msra.mxu0 %v3672_v34  ;;  %v7853_v31 = vadd.f32 %v2054_v37, %v7771_v22 }
 0x203   : > { %6469 = vpow2.f32 %v2972_v42  ;;  %v2976_v29 = vmul.f32 1.442695, %v2941_v43  ;;  %6344 = vmatmul.mubr.msk.bf16.vlgmr.msra.gmra.mxu1 %vm1888_vm2, %v7830_v54  ;;  %v2057_v14 = vadd.f32 %v2056_v21, %v7771_v22 }
 0x204   : > { %6471 = vpow2.f32 %v2974_v47  ;;  %v2058_v50 = vpop.f32.mrf.mxu0  ;;  %v2117_v59 = vpop.f32.mrf.mxu1  ;;  %3816 = vmatprep.mubr.bf16.mxu1 %v9426_v3 }
 0x205   : > { %6473 = vpow2.f32 %v2976_v29  ;;  %6346 = vmatmul.mubr.msk.bf16.vlgmr.msra.gmra.mxu0 %vm1888_vm2, %v7830_v54  ;;  %v2059_v16 = vadd.f32 %v2058_v50, %v7791_v49  ;;  %v2118_v5 = vadd.f32 %v2117_v59, %v7771_v22 }
 0x206   : > { %v2060_v32 = vpop.f32.mrf.mxu0  ;;  %v2119_v39 = vpop.f32.mrf.mxu1  ;;  %3869 = vmatprep.mubr.bf16.mxu0 %v9426_v3 }
 0x207   : > { %v2061_v55 = vadd.f32 %v2060_v32, %v7791_v49  ;;  %v3674_v43 = vpack.c.bf16 %v2059_v16, %v7853_v31  ;;  %v2120_v59 = vadd.f32 %v2119_v39, %v7791_v49 }
 0x208   : > { %v2064_v61 = vpop.f32.mrf.mxu0  ;;  %v2121_v11 = vpop.f32.mrf.mxu1 }
 0x209   : > { %v3675_v15 = vpack.c.bf16 %v2061_v55, %v2057_v14  ;;  %v2065_v12 = vadd.f32 %v2064_v61, %v7760_v1  ;;  %v2122_v8 = vadd.f32 %v2121_v11, %v7791_v49  ;;  %v2116_v14 = vadd.f32 %v7832_v35, %v7771_v22  ;;  %v6789_v35 = vld [vmem:[%s7070_s18] sm:$0xff] }
 0x20a   : > { %v2066_v51 = vpop.f32.mrf.mxu0  ;;  %v2125_v6 = vpop.f32.mrf.mxu1 }
 0x20b   : > { %6345 = vmatmul.mubr.msk.bf16.gmra.mxu1 %vm1888_vm2, %v7843_v7  ;;  %v2067_v27 = vadd.f32 %v2066_v51, %v7760_v1  ;;  %v2126_v33 = vadd.f32 %v2125_v6, %v7760_v1  ;;  %v3677_v11 = vpack.c.bf16 %v2122_v8, %v2118_v5  ;;  %v7896_v8 = vsub.s32 7, %v7078_v4 }
 0x20c   : > { %v2068_v18 = vpop.f32.mrf.mxu0  ;;  %v2127_v52 = vpop.f32.mrf.mxu1  ;;  %3912 = vmatprep.mubr.bf16.mxu1 %v9426_v3 }
 0x20d   : > { %6347 = vmatmul.mubr.msk.bf16.gmra.mxu0 %vm1888_vm2, %v7843_v7  ;;  %v2069_v38 = vadd.f32 %v2068_v18, %v7785_v36  ;;  %v2128_v40 = vadd.f32 %v2127_v52, %v7760_v1  ;;  %9454 = vst [vmem:[#allocation16_spill] sm:$0xff] %v7896_v8 }
 0x20e   : > { %v6468_v58 = vpop.eup %6467  ;;  %v2070_v10 = vpop.f32.mrf.mxu0  ;;  %3965 = vmatprep.mubr.bf16.mxu0 %v9426_v3 }
 0x20f   : > { %v2129_v56 = vpop.f32.mrf.mxu1  ;;  %v3034_v48 = vadd.f32 1.0, %v6468_v58  ;;  %v2071_v60 = vadd.f32 %v2070_v10, %v7785_v36  ;;  %v3706_v53 = vpack.c.bf16 %v2069_v38, %v2065_v12  ;;  %v3676_v10 = vpack.c.bf16 %v2120_v59, %v2116_v14 }
 0x210   : > { %v6470_v46 = vpop.eup %6469  ;;  %v2074_v57 = vpop.f32.mrf.mxu0  ;;  %v2130_v2 = vadd.f32 %v2129_v56, %v7785_v36  ;;  %v7891_v12 = vsub.s32 3, %v7078_v4 }
 0x211   : > { %v2131_v0 = vpop.f32.mrf.mxu1  ;;  %v6472_v24 = vpop.eup %6471  ;;  %6475 = vlog2.f32 %v3034_v48  ;;  %v3035_v45 = vadd.f32 1.0, %v6470_v46  ;;  %v3707_v20 = vpack.c.bf16 %v2071_v60, %v2067_v27  ;;  %v7867_v63 = vadd.f32 %v2074_v57, %v7794_v25 }
 0x212   : > { %v6474_v30 = vpop.eup %6473  ;;  %v3036_v28 = vadd.f32 1.0, %v6472_v24  ;;  %v2132_v62 = vadd.f32 %v2131_v0, %v7785_v36  ;;  %v2076_v34 = vpop.f32.mrf.mxu0  ;;  %v3708_v32 = vpack.c.bf16 %v2130_v2, %v2126_v33  ;;  %v3162_v46 = vunpack.c.l.bf16 %v6789_v35 }
 0x213   : > { %v2135_v23 = vpop.f32.mrf.mxu1  ;;  %6477 = vlog2.f32 %v3035_v45  ;;  %v3037_v19 = vadd.f32 1.0, %v6474_v30  ;;  %v7871_v37 = vadd.f32 %v2076_v34, %v7794_v25  ;;  %3892 = vmatprep.subr.bf16.mxu1 %v3707_v20  ;;  %v2910_v47 = vand.u32 2147483647, %v7867_v63 }
 0x214   : > { %v7874_v42 = vadd.f32 %v2135_v23, %v7794_v25  ;;  %6479 = vlog2.f32 %v3036_v28  ;;  %v3709_v21 = vpack.c.bf16 %v2132_v62, %v2128_v40  ;;  %v2078_v29 = vpop.f32.mrf.mxu0  ;;  %3893 = vmatpush1.bf16.msra.mxu1 %v3706_v53  ;;  %v3163_v33 = vunpack.c.h.bf16 %v6789_v35 }
 0x215   : > { %v2137_v50 = vpop.f32.mrf.mxu1  ;;  %6481 = vlog2.f32 %v3037_v19  ;;  %v2911_v61 = vand.u32 2147483647, %v7871_v37  ;;  %3894 = vmatprep.subr.bf16.mxu1 %v3675_v15  ;;  %v2942_v51 = vsub.f32 0.0, %v2910_v47  ;;  %v2874_v2 = vmax.f32 %v7805_v26, 0.0 }
 0x216   : > { %v2912_v6 = vand.u32 2147483647, %v7874_v42  ;;  %v7882_v55 = vadd.f32 %v2137_v50, %v7794_v25  ;;  %3945 = vmatprep.subr.bf16.mxu0 %v3709_v21  ;;  %v2079_v18 = vpop.f32.mrf.mxu0  ;;  %v3229_v28 = vrot.slane %v3162_v46, %v7891_v12  ;;  %v3233_v62 = vrot.slane %v3162_v46, %v7896_v8 }
 0x217   : > { %v2139_v52 = vpop.f32.mrf.mxu1  ;;  %v2943_v58 = vsub.f32 0.0, %v2911_v61  ;;  %3946 = vmatpush1.bf16.msra.mxu0 %v3708_v32  ;;  %v2978_v39 = vmul.f32 1.442695, %v2942_v51  ;;  %v3237_v34 = vrot.slane %v3163_v33, %v7891_v12  ;;  %v2875_v29 = vmax.f32 %v7813_v41, 0.0 }
 0x218   : > { %v2944_v31 = vsub.f32 0.0, %v2912_v6  ;;  %v2913_v16 = vand.u32 2147483647, %v7882_v55  ;;  %3947 = vmatprep.subr.bf16.mxu0 %v3677_v11  ;;  %v2176_v38 = vpop.f32.mrf.mxu0  ;;  %3895 = vmatpush1.bf16.msra.mxu1 %v3674_v43  ;;  %v3241_v59 = vrot.slane %v3163_v33, %v7896_v8  ;;  %v2876_v61 = vmax.f32 %v7818_v13, 0.0 }
 0x219   : > { %v2140_v5 = vpop.f32.mrf.mxu1  ;;  %v2980_v56 = vmul.f32 1.442695, %v2943_v58  ;;  %6483 = vpow2.f32 %v2978_v39  ;;  %v7918_v51 = vadd.f32 %v2176_v38, %v7771_v22  ;;  %v2877_v39 = vmax.f32 %v7822_v17, 0.0 }
 0x21a   : > { %v2982_v48 = vmul.f32 1.442695, %v2944_v31  ;;  %v2945_v15 = vsub.f32 0.0, %v2913_v16  ;;  %v2178_v27 = vpop.f32.mrf.mxu0 }
 0x21b   : > { %v7887_v60 = vpop.f32.mrf.mxu1  ;;  %6485 = vpow2.f32 %v2980_v56  ;;  %3948 = vmatpush1.bf16.msra.mxu0 %v3676_v10  ;;  %6348 = vmatmul.mubr.msk.bf16.vlgmr.msra.gmra.mxu1 %vm1888_vm2, %v7830_v54  ;;  %v7921_v6 = vadd.f32 %v2178_v27, %v7771_v22 }
 0x21c   : > { %6487 = vpow2.f32 %v2982_v48  ;;  %v2984_v40 = vmul.f32 1.442695, %v2945_v15  ;;  %v2180_v57 = vpop.f32.mrf.mxu0  ;;  %3922 = vmatprep.mubr.bf16.mxu1 %v9426_v3 }
 0x21d   : > { %v2239_v0 = vpop.f32.mrf.mxu1  ;;  %v7909_v23 = vadd.f32 %v2180_v57, %v7791_v49 }
 0x21e   : > { %v6476_v24 = vpop.eup %6475  ;;  %6489 = vpow2.f32 %v2984_v40  ;;  %6350 = vmatmul.mubr.msk.bf16.vlgmr.msra.gmra.mxu0 %vm1888_vm2, %v7830_v54  ;;  %v2182_v45 = vpop.f32.mrf.mxu0  ;;  %v7929_v16 = vadd.f32 %v2239_v0, %v7771_v22 }
 0x21f   : > { %v7901_v20 = vpop.f32.mrf.mxu1  ;;  %v3067_v30 = vmul.f32 0.6931472, %v6476_v24  ;;  %3975 = vmatprep.mubr.bf16.mxu0 %v9426_v3  ;;  %v7912_v19 = vadd.f32 %v2182_v45, %v7791_v49  ;;  %v3678_v13 = vpack.c.bf16 %v7909_v23, %v7918_v51 }
 0x220   : > { %v6478_v53 = vpop.eup %6477  ;;  %v2186_v43 = vpop.f32.mrf.mxu0 }
 0x221   : > { %v2243_v47 = vpop.f32.mrf.mxu1  ;;  %v6480_v21 = vpop.eup %6479  ;;  %v3130_v26 = vadd.f32 %v3067_v30, %v2874_v2  ;;  %v3069_v50 = vmul.f32 0.6931472, %v6478_v53  ;;  %v3679_v5 = vpack.c.bf16 %v7912_v19, %v7921_v6  ;;  %v2187_v35 = vadd.f32 %v2186_v43, %v7760_v1 }
 0x222   : > { %v6482_v32 = vpop.eup %6481  ;;  %v3071_v11 = vmul.f32 0.6931472, %v6480_v21  ;;  %v2188_v18 = vpop.f32.mrf.mxu0  ;;  %v7937_v46 = vadd.f32 %v2243_v47, %v7791_v49 }
 0x223   : > { %v2247_v52 = vpop.f32.mrf.mxu1  ;;  %v3178_v14 = vsub.f32 0.0, %v3130_v26  ;;  %v3131_v58 = vadd.f32 %v3069_v50, %v2875_v29  ;;  %v3073_v41 = vmul.f32 0.6931472, %v6482_v32  ;;  %6349 = vmatmul.mubr.msk.bf16.gmra.mxu1 %vm1888_vm2, %v7843_v7  ;;  %v2189_v33 = vadd.f32 %v2188_v18, %v7760_v1 }
 0x224   : > { %v3132_v31 = vadd.f32 %v3071_v11, %v2876_v61  ;;  %v2190_v38 = vpop.f32.mrf.mxu0  ;;  %4018 = vmatprep.mubr.bf16.mxu1 %v9426_v3 }
 0x225   : > { %v2249_v10 = vpop.f32.mrf.mxu1  ;;  %v3386_v56 = vmul.f32 %v3229_v28, %v3178_v14  ;;  %v3179_v17 = vsub.f32 0.0, %v3131_v58  ;;  %v3133_v48 = vadd.f32 %v3073_v41, %v2877_v39  ;;  %v2191_v15 = vadd.f32 %v2190_v38, %v7785_v36 }
 0x226   : > { %v3180_v27 = vsub.f32 0.0, %v3132_v31  ;;  %6351 = vmatmul.mubr.msk.bf16.gmra.mxu0 %vm1888_vm2, %v7843_v7  ;;  %v2192_v40 = vpop.f32.mrf.mxu0  ;;  %v6484_v0 = vpop.eup %6483  ;;  %v2250_v30 = vadd.f32 %v2249_v10, %v7760_v1 }
 0x227   : > { %v2251_v57 = vpop.f32.mrf.mxu1  ;;  %v3418_v24 = vmul.f32 1.442695, %v3386_v56  ;;  %v3387_v45 = vmul.f32 %v3233_v62, %v3179_v17  ;;  %v3181_v2 = vsub.f32 0.0, %v3133_v48  ;;  %4071 = vmatprep.mubr.bf16.mxu0 %v9426_v3  ;;  %v3038_v19 = vadd.f32 1.0, %v6484_v0 }
 0x228   : > { %v6486_v28 = vpop.eup %6485  ;;  %v3388_v53 = vmul.f32 %v3237_v34, %v3180_v27  ;;  %v3710_v43 = vpack.c.bf16 %v2191_v15, %v2187_v35  ;;  %v2193_v47 = vadd.f32 %v2192_v40, %v7785_v36  ;;  %v2196_v21 = vpop.f32.mrf.mxu0  ;;  %v2252_v61 = vadd.f32 %v2251_v57, %v7785_v36 }
 0x229   : > { %v2253_v26 = vpop.f32.mrf.mxu1  ;;  %v6488_v29 = vpop.eup %6487  ;;  %6491 = vpow2.f32 %v3418_v24  ;;  %v3420_v50 = vmul.f32 1.442695, %v3387_v45  ;;  %v3389_v32 = vmul.f32 %v3241_v59, %v3181_v2  ;;  %v3039_v11 = vadd.f32 1.0, %v6486_v28 }
 0x22a   : > { %v3422_v62 = vmul.f32 1.442695, %v3388_v53  ;;  %6493 = vlog2.f32 %v3038_v19  ;;  %v3711_v6 = vpack.c.bf16 %v2193_v47, %v2189_v33  ;;  %v2198_v18 = vpop.f32.mrf.mxu0  ;;  %v3040_v39 = vadd.f32 1.0, %v6488_v29 }
 0x22b   : > { %v2257_v14 = vpop.f32.mrf.mxu1  ;;  %v6490_v58 = vpop.eup %6489  ;;  %6495 = vpow2.f32 %v3420_v50  ;;  %v3424_v34 = vmul.f32 1.442695, %v3389_v32  ;;  %v7947_v41 = vadd.f32 %v2196_v21, %v7794_v25  ;;  %v2254_v38 = vadd.f32 %v2253_v26, %v7785_v36 }
 0x22c   : > { %6497 = vpow2.f32 %v3422_v62  ;;  %v3041_v31 = vadd.f32 1.0, %v6490_v58  ;;  %v7951_v59 = vadd.f32 %v2198_v18, %v7794_v25  ;;  %3998 = vmatprep.subr.bf16.mxu1 %v3711_v6  ;;  %v2200_v10 = vpop.f32.mrf.mxu0  ;;  %v2248_v17 = vadd.f32 %v2247_v52, %v7760_v1 }
 0x22d   : > { %v2259_v56 = vpop.f32.mrf.mxu1  ;;  %6499 = vpow2.f32 %v3424_v34  ;;  %v2914_v48 = vand.u32 2147483647, %v7947_v41  ;;  %v7956_v15 = vadd.f32 %v2257_v14, %v7794_v25  ;;  %3999 = vmatpush1.bf16.msra.mxu1 %v3710_v43  ;;  %v2242_v27 = vadd.f32 %v7901_v20, %v7791_v49 }
 0x22e   : > { %6501 = vlog2.f32 %v3039_v11  ;;  %v3713_v35 = vpack.c.bf16 %v2254_v38, %v2250_v30  ;;  %v2915_v33 = vand.u32 2147483647, %v7951_v59  ;;  %4000 = vmatprep.subr.bf16.mxu1 %v3679_v5  ;;  %v2201_v40 = vpop.f32.mrf.mxu0  ;;  %v3712_v0 = vpack.c.bf16 %v2252_v61, %v2248_v17  ;;  %v6790_v5 = vld [vmem:[%s7070_s18 + $0x8] sm:$0xff] }
 0x22f   : > { %v2261_v57 = vpop.f32.mrf.mxu1  ;;  %6503 = vlog2.f32 %v3040_v39  ;;  %v2946_v52 = vsub.f32 0.0, %v2914_v48  ;;  %v2916_v24 = vand.u32 2147483647, %v7956_v15  ;;  %v3681_v45 = vpack.c.bf16 %v7937_v46, %v7929_v16  ;;  %v6791_v46 = vld [vmem:[%s7070_s18 + $0x10] sm:$0xff] }
 0x230   : > { %6505 = vlog2.f32 %v3041_v31  ;;  %v2947_v2 = vsub.f32 0.0, %v2915_v33  ;;  %v7965_v20 = vadd.f32 %v2259_v56, %v7794_v25  ;;  %4051 = vmatprep.subr.bf16.mxu0 %v3713_v35  ;;  %v7967_v28 = vpop.f32.mrf.mxu0  ;;  %v3164_v53 = vunpack.c.l.bf16 %v6790_v5 }
 0x231   : > { %v2262_v30 = vpop.f32.mrf.mxu1  ;;  %v2238_v19 = vadd.f32 %v7887_v60, %v7771_v22  ;;  %v2986_v43 = vmul.f32 1.442695, %v2946_v52  ;;  %v2948_v47 = vsub.f32 0.0, %v2916_v24  ;;  %4052 = vmatpush1.bf16.msra.mxu0 %v3712_v0  ;;  %4001 = vmatpush1.bf16.msra.mxu1 %v3678_v13  ;;  %v3165_v16 = vunpack.c.h.bf16 %v6790_v5 }
 0x232   : > { %v3166_v21 = vunpack.c.l.bf16 %v6791_v46  ;;  %v2988_v26 = vmul.f32 1.442695, %v2947_v2  ;;  %v2917_v29 = vand.u32 2147483647, %v7965_v20  ;;  %4053 = vmatprep.subr.bf16.mxu0 %v3681_v45  ;;  %v2300_v50 = vpop.f32.mrf.mxu0  ;;  %v3167_v62 = vunpack.c.h.bf16 %v6791_v46  ;;  %v8028_v2 = vld [vmem:[%s7070_s18 + $0x18] sm:$0xff] }
 0x233   : > { %v7977_v32 = vpop.f32.mrf.mxu1  ;;  %v3680_v61 = vpack.c.bf16 %v2242_v27, %v2238_v19  ;;  %6507 = vpow2.f32 %v2986_v43  ;;  %v2990_v60 = vmul.f32 1.442695, %v2948_v47  ;;  %v3245_v13 = vrot.slane %v3164_v53, %v7891_v12 }
 0x234   : > { %6509 = vpow2.f32 %v2988_v26  ;;  %v2949_v11 = vsub.f32 0.0, %v2917_v29  ;;  %6352 = vmatmul.mubr.msk.bf16.vlgmr.msra.gmra.mxu1 %vm1888_vm2, %v7830_v54  ;;  %v2302_v23 = vpop.f32.mrf.mxu0  ;;  %v7988_v18 = vrot.slane %v3164_v53, %v7896_v8  ;;  %v7991_v14 = vrot.slane %v3165_v16, %v7891_v12 }
 0x235   : > { %v7981_v51 = vpop.f32.mrf.mxu1  ;;  %6511 = vpow2.f32 %v2990_v60  ;;  %4054 = vmatpush1.bf16.msra.mxu0 %v3680_v61  ;;  %4028 = vmatprep.mubr.bf16.mxu1 %v9426_v3  ;;  %v7994_v58 = vrot.slane %v3165_v16, %v7896_v8  ;;  %v8002_v56 = vrot.slane %v3166_v21, %v7891_v12  ;;  %v8005_v17 = vrot.slane %v3166_v21, %v7896_v8 }
 0x236   : > { %v7985_v6 = vpop.eup %6491  ;;  %v2992_v34 = vmul.f32 1.442695, %v2949_v11  ;;  %v7996_v39 = vpop.f32.mrf.mxu0  ;;  %v8008_v48 = vrot.slane %v3167_v62, %v7891_v12  ;;  %v2878_v35 = vmax.f32 %v7867_v63, 0.0  ;;  %v8014_v40 = vrot.slane %v3167_v62, %v7896_v8 }
 0x237   : > { %9455 = vst [vmem:[#allocation17_spill] sm:$0xff] %v7985_v6  ;;  %v7998_v31 = vpop.f32.mrf.mxu1  ;;  %v6494_v38 = vpop.eup %6493  ;;  %v9422_v10 = vsub.f32 1.0, %v7985_v6  ;;  %v2879_v63 = vmax.f32 %v7871_v37, 0.0  ;;  %v2880_v43 = vmax.f32 %v7874_v42, 0.0  ;;  %v2881_v47 = vmax.f32 %v7882_v55, 0.0 }
 0x238   : > { %v8010_v27 = vpop.eup %6495  ;;  %v3075_v33 = vmul.f32 0.6931472, %v6494_v38  ;;  %6513 = vpow2.f32 %v2992_v34  ;;  %6354 = vmatmul.mubr.msk.bf16.vlgmr.msra.gmra.mxu0 %vm1888_vm2, %v7830_v54  ;;  %v8018_v57 = vpop.f32.mrf.mxu0  ;;  %v8040_v61 = vadd.f32 %v2300_v50, %v7771_v22  ;;  %v8043_v42 = vadd.f32 %v2302_v23, %v7791_v49 }
 0x239   : > { %9456 = vst [vmem:[#allocation18_spill] sm:$0xff] %v8010_v27  ;;  %v8020_v0 = vpop.f32.mrf.mxu1  ;;  %v6498_v52 = vpop.eup %6497  ;;  %v5812_v24 = vsub.f32 1.0, %v9422_v10  ;;  %v9421_v45 = vsub.f32 1.0, %v8010_v27  ;;  %4081 = vmatprep.mubr.bf16.mxu0 %v9426_v3  ;;  %v8054_v4 = vadd.f32 %v7981_v51, %v7771_v22  ;;  %v8064_v51 = vadd.f32 %v7996_v39, %v7791_v49 }
 0x23a   : > { %v6500_v5 = vpop.eup %6499  ;;  %v3484_v53 = vsub.f32 1.0, %v6498_v52  ;;  %v3134_v19 = vadd.f32 %v3075_v33, %v2878_v35  ;;  %v8033_v16 = vpop.f32.mrf.mxu0 }
 0x23b   : > { %v8035_v46 = vpop.f32.mrf.mxu1  ;;  %v6502_v21 = vpop.eup %6501  ;;  %v5814_v26 = vadd.f32 1e-10, %v5812_v24  ;;  %v5813_v37 = vsub.f32 1.0, %v9421_v45  ;;  %v3485_v29 = vsub.f32 1.0, %v6500_v5 }
 0x23c   : > { %v6504_v60 = vpop.eup %6503  ;;  %v5830_v62 = vsub.f32 1.0, %v3484_v53  ;;  %v3182_v11 = vsub.f32 0.0, %v3134_v19  ;;  %v3077_v34 = vmul.f32 0.6931472, %v6502_v21  ;;  %6353 = vmatmul.mubr.msk.bf16.gmra.mxu1 %vm1888_vm2, %v7843_v7  ;;  %v2312_v55 = vpop.f32.mrf.mxu0 }
 0x23d   : > { %v2371_v38 = vpop.f32.mrf.mxu1  ;;  %v6506_v35 = vpop.eup %6505  ;;  %v5815_v33 = vadd.f32 1e-10, %v5813_v37  ;;  %v8047_v52 = vmul.f32 %v5814_v26, %v3484_v53  ;;  %v5831_v24 = vsub.f32 1.0, %v3485_v29  ;;  %v3079_v5 = vmul.f32 0.6931472, %v6504_v60  ;;  %4124 = vmatprep.mubr.bf16.mxu1 %v9426_v3 }
 0x23e   : > { %v5832_v50 = vadd.f32 1e-10, %v5830_v62  ;;  %v3390_v45 = vmul.f32 %v3245_v13, %v3182_v11  ;;  %v3135_v19 = vadd.f32 %v3077_v34, %v2879_v63  ;;  %v3081_v21 = vmul.f32 0.6931472, %v6506_v35  ;;  %v2314_v10 = vpop.f32.mrf.mxu0 }
 0x23f   : > { %9457 = vst [vmem:[#allocation19_spill] sm:$0xff] %v8047_v52  ;;  %v2373_v23 = vpop.f32.mrf.mxu1  ;;  %v8050_v30 = vmul.f32 %v5815_v33, %v3485_v29  ;;  %v5833_v27 = vadd.f32 1e-10, %v5831_v24  ;;  %v3136_v6 = vadd.f32 %v3079_v5, %v2880_v43  ;;  %v9459_v34 = vmov 0  }
 0x240   : > { %v6508_v53 = vpop.eup %6507  ;;  %v3426_v37 = vmul.f32 1.442695, %v3390_v45  ;;  %v8056_v52 = vmul.f32 %v5832_v50, %v5814_v26  ;;  %v3183_v60 = vsub.f32 0.0, %v3135_v19  ;;  %v3137_v3 = vadd.f32 %v3081_v21, %v2881_v47  ;;  %6355 = vmatmul.mubr.msk.bf16.gmra.mxu0 %vm1888_vm2, %v7843_v7  ;;  %v2318_v13 = vpop.f32.mrf.mxu0 }
 0x241   : > { %9458 = vst [vmem:[#allocation20_spill] sm:$0xff] %v8050_v30  ;;  %v2375_v63 = vpop.f32.mrf.mxu1  ;;  %v6510_v62 = vpop.eup %6509  ;;  %v8060_v29 = vmul.f32 %v5833_v27, %v5815_v33  ;;  %v3184_v11 = vsub.f32 0.0, %v3136_v6  ;;  %v3042_v43 = vadd.f32 1.0, %v6508_v53  ;;  %4177 = vmatprep.mubr.bf16.mxu0 %v9459_v34  ;;  %v8071_v6 = vadd.f32 %v7998_v31, %v7791_v49 }
 0x242   : > { %v6512_v45 = vpop.eup %6511  ;;  %6515 = vpow2.f32 %v3426_v37  ;;  %v3391_v47 = vmul.f32 %v7988_v18, %v3183_v60  ;;  %v3185_v26 = vsub.f32 0.0, %v3137_v3  ;;  %v3043_v35 = vadd.f32 1.0, %v6510_v62  ;;  %v2320_v24 = vpop.f32.mrf.mxu0 }
 0x243   : > { %v2379_v5 = vpop.f32.mrf.mxu1  ;;  %v3392_v50 = vmul.f32 %v7991_v14, %v3184_v11  ;;  %6517 = vlog2.f32 %v3042_v43  ;;  %v3044_v27 = vadd.f32 1.0, %v6512_v45  ;;  %v2309_v19 = vadd.f32 %v8018_v57, %v7760_v1 }
 0x244   : > { %v3428_v39 = vmul.f32 1.442695, %v3391_v47  ;;  %v3393_v33 = vmul.f32 %v7994_v58, %v3185_v26  ;;  %6519 = vlog2.f32 %v3043_v35  ;;  %v2322_v18 = vpop.f32.mrf.mxu0  ;;  %v2366_v14 = vadd.f32 %v8020_v0, %v7791_v49 }
 0x245   : > { %v2381_v3 = vpop.f32.mrf.mxu1  ;;  %v6514_v21 = vpop.eup %6513  ;;  %v3430_v53 = vmul.f32 1.442695, %v3392_v50  ;;  %6521 = vlog2.f32 %v3044_v27  ;;  %v2311_v37 = vadd.f32 %v8033_v16, %v7760_v1  ;;  %v2313_v58 = vadd.f32 %v2312_v55, %v7785_v36 }
 0x246   : > { %6523 = vpow2.f32 %v3428_v39  ;;  %v3432_v31 = vmul.f32 1.442695, %v3393_v33  ;;  %v3045_v60 = vadd.f32 1.0, %v6514_v21  ;;  %v2323_v62 = vpop.f32.mrf.mxu0  ;;  %v2372_v57 = vadd.f32 %v2371_v38, %v7760_v1 }
 0x247   : > { %v2383_v11 = vpop.f32.mrf.mxu1  ;;  %6525 = vpow2.f32 %v3430_v53  ;;  %v2315_v43 = vadd.f32 %v2314_v10, %v7785_v36  ;;  %v2374_v45 = vadd.f32 %v2373_v23, %v7785_v36  ;;  %v8085_v0 = vadd.f32 %v2318_v13, %v7794_v25 }
 0x248   : > { %6527 = vpow2.f32 %v3432_v31  ;;  %v2376_v16 = vadd.f32 %v2375_v63, %v7785_v36  ;;  %v8089_v47 = vadd.f32 %v2320_v24, %v7794_v25  ;;  %v8091_v55 = vpop.f32.mrf.mxu0  ;;  %v3683_v35 = vpack.c.bf16 %v8064_v51, %v8040_v61 }
 0x249   : > { %v2384_v26 = vpop.f32.mrf.mxu1  ;;  %v2370_v10 = vadd.f32 %v8035_v46, %v7760_v1  ;;  %v3715_v38 = vpack.c.bf16 %v2315_v43, %v2311_v37  ;;  %v8098_v23 = vadd.f32 %v2379_v5, %v7794_v25  ;;  %6529 = vlog2.f32 %v3045_v60 }
 0x24a   : > { %v3714_v13 = vpack.c.bf16 %v2313_v58, %v2309_v19  ;;  %v2918_v63 = vand.u32 2147483647, %v8085_v0  ;;  %v3717_v50 = vpack.c.bf16 %v2376_v16, %v2372_v57  ;;  %v8101_v24 = vpop.f32.mrf.mxu0  ;;  %v2919_v33 = vand.u32 2147483647, %v8089_v47 }
 0x24b   : > { %v8103_v27 = vpop.f32.mrf.mxu1  ;;  %v3716_v39 = vpack.c.bf16 %v2374_v45, %v2370_v10  ;;  %v2920_v61 = vand.u32 2147483647, %v8098_v23  ;;  %4104 = vmatprep.subr.bf16.mxu1 %v3715_v38  ;;  %v8108_v46 = vadd.f32 %v2381_v3, %v7794_v25  ;;  %v2299_v51 = vadd.f32 %v7967_v28, %v7771_v22 }
 0x24c   : > { %v3685_v5 = vpack.c.bf16 %v2366_v14, %v8054_v4  ;;  %v2950_v19 = vsub.f32 0.0, %v2918_v63  ;;  %v9428_v18 = vunpack.c.h.bf16 %v8028_v2  ;;  %4105 = vmatpush1.bf16.msra.mxu1 %v3714_v13  ;;  %4157 = vmatprep.subr.bf16.mxu0 %v3717_v50  ;;  %v8114_v21 = vpop.f32.mrf.mxu0  ;;  %v2360_v37 = vadd.f32 %v7977_v32, %v7771_v22 }
 0x24d   : > { %v8116_v53 = vpop.f32.mrf.mxu1  ;;  %v2951_v31 = vsub.f32 0.0, %v2919_v33  ;;  %v2952_v3 = vsub.f32 0.0, %v2920_v61  ;;  %v2921_v60 = vand.u32 2147483647, %v8108_v46  ;;  %4106 = vmatprep.subr.bf16.mxu1 %v3683_v35  ;;  %4158 = vmatpush1.bf16.msra.mxu0 %v3716_v39  ;;  %v3682_v4 = vpack.c.bf16 %v8043_v42, %v2299_v51 }
 0x24e   : > { %v2994_v28 = vmul.f32 1.442695, %v2950_v19  ;;  %v9460_v14 = vunpack.c.l.bf16 %v8028_v2  ;;  %4159 = vmatprep.subr.bf16.mxu0 %v3685_v5  ;;  %v8132_v32 = vpop.f32.mrf.mxu0  ;;  %v3684_v45 = vpack.c.bf16 %v8071_v6, %v2360_v37  ;;  %v2882_v38 = vmax.f32 %v7947_v41, 0.0 }
 0x24f   : > { %v8134_v57 = vpop.f32.mrf.mxu1  ;;  %v6516_v43 = vpop.eup %6515  ;;  %v2996_v42 = vmul.f32 1.442695, %v2951_v31  ;;  %v2998_v16 = vmul.f32 1.442695, %v2952_v3  ;;  %v2953_v26 = vsub.f32 0.0, %v2921_v60  ;;  %v8141_v13 = vrot.slane %v9428_v18, %v7891_v12 }
 0x250   : > { %v8125_v58 = vrot.slane %v9460_v14, %v7891_v12  ;;  %v9461_v62 = vmov %v9460_v14  ;;  %v6518_v35 = vpop.eup %6517  ;;  %v3486_v10 = vsub.f32 1.0, %v6516_v43  ;;  %6531 = vpow2.f32 %v2994_v28  ;;  %4107 = vmatpush1.bf16.msra.mxu1 %v3682_v4  ;;  %v8143_v63 = vpop.f32.mrf.mxu0 }
 0x251   : > { %v8130_v11 = vrot.slane %v9461_v62, %v7896_v8  ;;  %v8145_v50 = vpop.f32.mrf.mxu1  ;;  %v6520_v39 = vpop.eup %6519  ;;  %v3083_v6 = vmul.f32 0.6931472, %v6518_v35  ;;  %v2883_v33 = vmax.f32 %v7951_v59, 0.0  ;;  %6533 = vpow2.f32 %v2996_v42  ;;  %4160 = vmatpush1.bf16.msra.mxu0 %v3684_v45 }
 0x252   : > { %v3000_v61 = vmul.f32 1.442695, %v2953_v26  ;;  %v6522_v51 = vpop.eup %6521  ;;  %v8149_v41 = vmul.f32 %v8056_v52, %v3486_v10  ;;  %v5850_v5 = vsub.f32 1.0, %v3486_v10  ;;  %v3085_v19 = vmul.f32 0.6931472, %v6520_v39  ;;  %v8151_v37 = vpop.f32.mrf.mxu0 }
 0x253   : > { %6535 = vpow2.f32 %v2998_v16  ;;  %v8153_v31 = vpop.f32.mrf.mxu1  ;;  %v6524_v3 = vpop.eup %6523  ;;  %v3138_v60 = vadd.f32 %v3083_v6, %v2882_v38  ;;  %v2884_v4 = vmax.f32 %v7956_v15, 0.0  ;;  %v3087_v28 = vmul.f32 0.6931472, %v6522_v51  ;;  %6356 = vmatmul.mubr.msk.bf16.vlgmr.msra.gmra.mxu1 %vm1888_vm2, %v7830_v54 }
 0x254   : > { %9462 = vst [vmem:[#allocation21_spill] sm:$0xff] %v8149_v41  ;;  %6537 = vpow2.f32 %v3000_v61  ;;  %v6526_v59 = vpop.eup %6525  ;;  %v5852_v14 = vadd.f32 1e-10, %v5850_v5  ;;  %v3487_v62 = vsub.f32 1.0, %v6524_v3  ;;  %v3139_v43 = vadd.f32 %v3085_v19, %v2883_v33  ;;  %6358 = vmatmul.mubr.msk.bf16.vlgmr.msra.gmra.mxu0 %vm1888_vm2, %v7830_v54  ;;  %4134 = vmatprep.mubr.bf16.mxu1 %v9459_v34  ;;  %v8162_v42 = vpop.f32.mrf.mxu0 }
 0x255   : > { %v2885_v45 = vmax.f32 %v7965_v20, 0.0  ;;  %v8164_v16 = vpop.f32.mrf.mxu1  ;;  %v6528_v15 = vpop.eup %6527  ;;  %v3488_v26 = vsub.f32 1.0, %v6526_v59  ;;  %v3186_v35 = vsub.f32 0.0, %v3138_v60  ;;  %v3140_v10 = vadd.f32 %v3087_v28, %v2884_v4  ;;  %4187 = vmatprep.mubr.bf16.mxu0 %v9459_v34 }
 0x256   : > { %v8168_v38 = vadd.f32 %v8091_v55, %v7771_v22  ;;  %v8172_v20 = vmul.f32 %v8060_v29, %v3487_v62  ;;  %v5851_v54 = vsub.f32 1.0, %v3487_v62  ;;  %v5854_v39 = vmul.f32 %v5852_v14, %v8056_v52  ;;  %v2436_v33 = vpop.f32.mrf.mxu0  ;;  %v6530_v51 = vpop.eup %6529 }
 0x257   : > { %v3489_v6 = vsub.f32 1.0, %v6528_v15  ;;  %v2495_v61 = vpop.f32.mrf.mxu1  ;;  %v5870_v5 = vsub.f32 1.0, %v3488_v26  ;;  %v3394_v19 = vmul.f32 %v8002_v56, %v3186_v35  ;;  %v3187_v3 = vsub.f32 0.0, %v3139_v43 }
 0x258   : > { %9463 = vst [vmem:[#allocation22_spill] sm:$0xff] %v8172_v20  ;;  %v3188_v60 = vsub.f32 0.0, %v3140_v10  ;;  %v5853_v4 = vadd.f32 1e-10, %v5851_v54  ;;  %v8176_v55 = vmul.f32 %v5854_v39, %v3488_v26  ;;  %v8180_v59 = vadd.f32 %v8132_v32, %v7791_v49  ;;  %v2440_v62 = vpop.f32.mrf.mxu0 }
 0x259   : > { %v5871_v28 = vsub.f32 1.0, %v3489_v6  ;;  %v2497_v18 = vpop.f32.mrf.mxu1  ;;  %v5872_v52 = vadd.f32 1e-10, %v5870_v5  ;;  %v3434_v14 = vmul.f32 1.442695, %v3394_v19  ;;  %v3395_v15 = vmul.f32 %v8005_v17, %v3187_v3 }
 0x25a   : > { %9464 = vst [vmem:[#allocation23_spill] sm:$0xff] %v8176_v55  ;;  %v3396_v20 = vmul.f32 %v8008_v48, %v3188_v60  ;;  %v5855_v56 = vmul.f32 %v5853_v4, %v8060_v29  ;;  %v3089_v35 = vmul.f32 0.6931472, %v6530_v51  ;;  %v8187_v26 = vadd.f32 %v8101_v24, %v7771_v22  ;;  %v2442_v10 = vpop.f32.mrf.mxu0 }
 0x25b   : > { %v5873_v43 = vadd.f32 1e-10, %v5871_v28  ;;  %v2501_v54 = vpop.f32.mrf.mxu1  ;;  %6539 = vpow2.f32 %v3434_v14  ;;  %v8189_v32 = vmul.f32 %v5872_v52, %v5854_v39  ;;  %v3436_v55 = vmul.f32 1.442695, %v3395_v15  ;;  %6357 = vmatmul.mubr.msk.bf16.gmra.mxu1 %vm1888_vm2, %v7843_v7 }
 0x25c   : > { %v3438_v5 = vmul.f32 1.442695, %v3396_v20  ;;  %v8193_v17 = vmul.f32 %v5855_v56, %v3489_v6  ;;  %v3141_v29 = vadd.f32 %v3089_v35, %v2885_v45  ;;  %v8199_v51 = vadd.f32 %v8114_v21, %v7791_v49  ;;  %6359 = vmatmul.mubr.msk.bf16.gmra.mxu0 %vm1888_vm2, %v7843_v7  ;;  %v2444_v24 = vpop.f32.mrf.mxu0  ;;  %4230 = vmatprep.mubr.bf16.mxu1 %v9459_v34 }
 0x25d   : > { %v8195_v48 = vmul.f32 %v5873_v43, %v5855_v56  ;;  %v2503_v39 = vpop.f32.mrf.mxu1  ;;  %v6532_v19 = vpop.eup %6531  ;;  %6541 = vpow2.f32 %v3436_v55  ;;  %v8205_v20 = vadd.f32 %v8116_v53, %v7771_v22  ;;  %v3687_v6 = vpack.c.bf16 %v8180_v59, %v8187_v26  ;;  %4283 = vmatprep.mubr.bf16.mxu0 %v9459_v34 }
 0x25e   : > { %9465 = vst [vmem:[#allocation24_spill] sm:$0xff] %v8193_v17  ;;  %v2431_v45 = vadd.f32 %v8143_v63, %v7760_v1  ;;  %v6534_v21 = vpop.eup %6533  ;;  %6543 = vpow2.f32 %v3438_v5  ;;  %v3189_v7 = vsub.f32 0.0, %v3141_v29  ;;  %v3046_v3 = vadd.f32 1.0, %v6532_v19  ;;  %v2445_v4 = vpop.f32.mrf.mxu0 }
 0x25f   : > { %v2488_v60 = vadd.f32 %v8145_v50, %v7791_v49  ;;  %v2505_v53 = vpop.f32.mrf.mxu1  ;;  %v3047_v28 = vadd.f32 1.0, %v6534_v21  ;;  %v2433_v59 = vadd.f32 %v8151_v37, %v7760_v1  ;;  %v2435_v63 = vadd.f32 %v8162_v42, %v7785_v36 }
 0x260   : > { %v6536_v55 = vpop.eup %6535  ;;  %v2494_v52 = vadd.f32 %v8164_v16, %v7760_v1  ;;  %v3397_v15 = vmul.f32 %v8014_v40, %v3189_v7  ;;  %6545 = vlog2.f32 %v3046_v3  ;;  %v2437_v50 = vadd.f32 %v2436_v33, %v7785_v36  ;;  %v8223_v35 = vpop.f32.mrf.mxu0 }
 0x261   : > { %v6538_v14 = vpop.eup %6537  ;;  %v3048_v56 = vadd.f32 1.0, %v6536_v55  ;;  %v2506_v43 = vpop.f32.mrf.mxu1  ;;  %6547 = vlog2.f32 %v3047_v28  ;;  %v2496_v37 = vadd.f32 %v2495_v61, %v7785_v36  ;;  %v8227_v5 = vadd.f32 %v2440_v62, %v7794_v25 }
 0x262   : > { %v3049_v26 = vadd.f32 1.0, %v6538_v14  ;;  %v3440_v42 = vmul.f32 1.442695, %v3397_v15  ;;  %v3719_v16 = vpack.c.bf16 %v2437_v50, %v2433_v59  ;;  %v2498_v29 = vadd.f32 %v2497_v18, %v7785_v36  ;;  %v8230_v40 = vpop.f32.mrf.mxu0 }
 0x263   : > { %6549 = vlog2.f32 %v3048_v56  ;;  %v8232_v24 = vpop.f32.mrf.mxu1  ;;  %v2492_v33 = vadd.f32 %v8153_v31, %v7760_v1  ;;  %v3718_v19 = vpack.c.bf16 %v2435_v63, %v2431_v45  ;;  %v2922_v21 = vand.u32 2147483647, %v8227_v5 }
 0x264   : > { %6551 = vlog2.f32 %v3049_v26  ;;  %v3721_v61 = vpack.c.bf16 %v2498_v29, %v2494_v52  ;;  %v8238_v62 = vadd.f32 %v2442_v10, %v7794_v25  ;;  %v8241_v7 = vadd.f32 %v2501_v54, %v7794_v25  ;;  %4210 = vmatprep.subr.bf16.mxu1 %v3719_v16  ;;  %v8243_v18 = vpop.f32.mrf.mxu0 }
 0x265   : > { %6553 = vpow2.f32 %v3440_v42  ;;  %v8245_v3 = vpop.f32.mrf.mxu1  ;;  %v2486_v4 = vadd.f32 %v8134_v57, %v7791_v49  ;;  %v3720_v31 = vpack.c.bf16 %v2496_v37, %v2492_v33  ;;  %v2954_v45 = vsub.f32 0.0, %v2922_v21  ;;  %4211 = vmatpush1.bf16.msra.mxu1 %v3718_v19 }
 0x266   : > { %v8250_v53 = vadd.f32 %v2503_v39, %v7794_v25  ;;  %v9466_v10 = vunpack.c.h.bf16 %v8028_v2  ;;  %v3689_v55 = vpack.c.bf16 %v2488_v60, %v8205_v20  ;;  %v2923_v28 = vand.u32 2147483647, %v8238_v62  ;;  %4212 = vmatprep.subr.bf16.mxu1 %v3687_v6  ;;  %4263 = vmatprep.subr.bf16.mxu0 %v3721_v61  ;;  %v8260_v57 = vpop.f32.mrf.mxu0  ;;  %v8270_v60 = vld [vmem:[%s7070_s18 + $0x20] sm:$0xff] }
 0x267   : > { %v2924_v59 = vand.u32 2147483647, %v8241_v7  ;;  %v8262_v63 = vpop.f32.mrf.mxu1  ;;  %v2482_v39 = vadd.f32 %v8103_v27, %v7771_v22  ;;  %v3686_v2 = vpack.c.bf16 %v8199_v51, %v8168_v38  ;;  %v3002_v52 = vmul.f32 1.442695, %v2954_v45  ;;  %4264 = vmatpush1.bf16.msra.mxu0 %v3720_v31 }
 0x268   : > { %v8255_v54 = vrot.slane %v9466_v10, %v7896_v8  ;;  %v2925_v14 = vand.u32 2147483647, %v8250_v53  ;;  %v6540_v20 = vpop.eup %6539  ;;  %v2955_v15 = vsub.f32 0.0, %v2923_v28  ;;  %4265 = vmatprep.subr.bf16.mxu0 %v3689_v55  ;;  %v8274_v43 = vpop.f32.mrf.mxu0  ;;  %v2886_v42 = vmax.f32 %v8085_v0, 0.0  ;;  %v8292_v28 = vld [vmem:[%s9407_s8] sm:$0xff]  }
 0x269   : > { %v2956_v56 = vsub.f32 0.0, %v2924_v59  ;;  %v8276_v27 = vpop.f32.mrf.mxu1  ;;  %v3490_v26 = vsub.f32 1.0, %v6540_v20  ;;  %v3688_v38 = vpack.c.bf16 %v2486_v4, %v2482_v39  ;;  %6555 = vpow2.f32 %v3002_v52  ;;  %4213 = vmatpush1.bf16.msra.mxu1 %v3686_v2 }
 0x26a   : > { %v2957_v51 = vsub.f32 0.0, %v2925_v14  ;;  %v6542_v37 = vpop.eup %6541  ;;  %v2887_v16 = vmax.f32 %v8089_v47, 0.0  ;;  %v3004_v29 = vmul.f32 1.442695, %v2955_v15  ;;  %v8280_v19 = vpop.f32.mrf.mxu0  ;;  %v2888_v10 = vmax.f32 %v8098_v23, 0.0 }
 0x26b   : > { %v3006_v33 = vmul.f32 1.442695, %v2956_v56  ;;  %v8282_v21 = vpop.f32.mrf.mxu1  ;;  %v6544_v61 = vpop.eup %6543  ;;  %v8285_v31 = vmul.f32 %v8189_v32, %v3490_v26  ;;  %v5890_v45 = vsub.f32 1.0, %v3490_v26  ;;  %v3491_v4 = vsub.f32 1.0, %v6542_v37  ;;  %4266 = vmatpush1.bf16.msra.mxu0 %v3688_v38 }
 0x26c   : > { %v3492_v55 = vsub.f32 1.0, %v6544_v61  ;;  %v2889_v0 = vmax.f32 %v8108_v46, 0.0  ;;  %6557 = vpow2.f32 %v3004_v29  ;;  %v3008_v47 = vmul.f32 1.442695, %v2957_v51  ;;  %6360 = vmatmul.mubr.msk.bf16.vlgmr.msra.gmra.mxu1 %vm1888_vm2, %v8292_v28  ;;  %v8296_v59 = vpop.f32.mrf.mxu0 }
 0x26d   : > { %9467 = vst [vmem:[#allocation25_spill] sm:$0xff] %v8285_v31  ;;  %v8298_v39 = vpop.f32.mrf.mxu1  ;;  %v6546_v2 = vpop.eup %6545  ;;  %v5892_v23 = vadd.f32 1e-10, %v5890_v45  ;;  %v8301_v52 = vmul.f32 %v8195_v48, %v3491_v4  ;;  %v5891_v46 = vsub.f32 1.0, %v3491_v4  ;;  %v8305_v14 = vadd.f32 %v8223_v35, %v7771_v22  ;;  %4240 = vmatprep.mubr.bf16.mxu1 %v9459_v34 }
 0x26e   : > { %v6548_v20 = vpop.eup %6547  ;;  %v5910_v15 = vsub.f32 1.0, %v3492_v55  ;;  %v3091_v56 = vmul.f32 0.6931472, %v6546_v2  ;;  %6559 = vpow2.f32 %v3006_v33  ;;  %v8310_v26 = vadd.f32 %v8230_v40, %v7771_v22  ;;  %6362 = vmatmul.mubr.msk.bf16.vlgmr.msra.gmra.mxu0 %vm1888_vm2, %v8292_v28  ;;  %v8314_v38 = vpop.f32.mrf.mxu0 }
 0x26f   : > { %9468 = vst [vmem:[#allocation26_spill] sm:$0xff] %v8301_v52  ;;  %v8316_v51 = vpop.f32.mrf.mxu1  ;;  %v5893_v35 = vadd.f32 1e-10, %v5891_v46  ;;  %v5894_v29 = vmul.f32 %v5892_v23, %v8189_v32  ;;  %v3093_v61 = vmul.f32 0.6931472, %v6548_v20  ;;  %v8321_v45 = vadd.f32 %v8243_v18, %v7791_v49  ;;  %4293 = vmatprep.mubr.bf16.mxu0 %v9459_v34 }
 0x270   : > { %v6550_v37 = vpop.eup %6549  ;;  %v5912_v33 = vadd.f32 1e-10, %v5910_v15  ;;  %v3142_v4 = vadd.f32 %v3091_v56, %v2886_v42  ;;  %6561 = vpow2.f32 %v3008_v47  ;;  %v8324_v50 = vpop.f32.mrf.mxu0 }
 0x271   : > { %v6552_v40 = vpop.eup %6551  ;;  %v3095_v2 = vmul.f32 0.6931472, %v6550_v37  ;;  %v8326_v6 = vpop.f32.mrf.mxu1  ;;  %v8328_v46 = vmul.f32 %v5894_v29, %v3492_v55  ;;  %v5895_v32 = vmul.f32 %v5893_v35, %v8195_v48  ;;  %v3143_v23 = vadd.f32 %v3093_v61, %v2887_v16 }
 0x272   : > { %v6554_v52 = vpop.eup %6553  ;;  %v3097_v20 = vmul.f32 0.6931472, %v6552_v40  ;;  %v3190_v31 = vsub.f32 0.0, %v3142_v4  ;;  %v8331_v17 = vmul.f32 %v5912_v33, %v5894_v29  ;;  %v2564_v15 = vpop.f32.mrf.mxu0  ;;  %v8337_v37 = vadd.f32 %v8245_v3, %v7771_v22 }
 0x273   : > { %9469 = vst [vmem:[#allocation27_spill] sm:$0xff] %v8328_v46  ;;  %v3493_v18 = vsub.f32 1.0, %v6554_v52  ;;  %v3144_v41 = vadd.f32 %v3095_v2, %v2888_v10  ;;  %v8333_v42 = vpop.f32.mrf.mxu1  ;;  %v3191_v47 = vsub.f32 0.0, %v3143_v23  ;;  %v8341_v55 = vadd.f32 %v8260_v57, %v7791_v49  ;;  %v8349_v10 = vld [vmem:[%s9407_s8 + $0x8] sm:$0xff]  }
 0x274   : > { %v3145_v56 = vadd.f32 %v3097_v20, %v2889_v0  ;;  %v3398_v52 = vmul.f32 %v8125_v58, %v3190_v31  ;;  %6361 = vmatmul.mubr.msk.bf16.gmra.mxu1 %vm1888_vm2, %v8349_v10  ;;  %v2566_v3 = vpop.f32.mrf.mxu0  ;;  %v8358_v61 = vadd.f32 %v8262_v63, %v7791_v49  ;;  %v2553_v58 = vadd.f32 %v8274_v43, %v7760_v1 }
 0x275   : > { %v8343_v48 = vmul.f32 %v5895_v32, %v3493_v18  ;;  %v5911_v16 = vsub.f32 1.0, %v3493_v18  ;;  %v3192_v35 = vsub.f32 0.0, %v3144_v41  ;;  %v8353_v0 = vpop.f32.mrf.mxu1  ;;  %v3399_v57 = vmul.f32 %v8130_v11, %v3191_v47  ;;  %4336 = vmatprep.mubr.bf16.mxu1 %v9459_v34 }
 0x276   : > { %v3193_v29 = vsub.f32 0.0, %v3145_v56  ;;  %v6556_v41 = vpop.eup %6555  ;;  %v3442_v40 = vmul.f32 1.442695, %v3398_v52  ;;  %v8366_v4 = vadd.f32 %v8276_v27, %v7791_v49  ;;  %6363 = vmatmul.mubr.msk.bf16.gmra.mxu0 %vm1888_vm2, %v8349_v10  ;;  %v2567_v11 = vpop.f32.mrf.mxu0  ;;  %v2555_v20 = vadd.f32 %v8280_v19, %v7760_v1 }
 0x277   : > { %9470 = vst [vmem:[#allocation28_spill] sm:$0xff] %v8343_v48  ;;  %v5913_v31 = vadd.f32 1e-10, %v5911_v16  ;;  %v3400_v33 = vmul.f32 %v8141_v13, %v3192_v35  ;;  %v2627_v63 = vpop.f32.mrf.mxu1  ;;  %v3444_v2 = vmul.f32 1.442695, %v3399_v57  ;;  %v3050_v43 = vadd.f32 1.0, %v6556_v41  ;;  %4389 = vmatprep.mubr.bf16.mxu0 %v9459_v34 }
 0x278   : > { %v3401_v23 = vmul.f32 %v8255_v54, %v3193_v29  ;;  %6563 = vpow2.f32 %v3442_v40  ;;  %v2557_v27 = vadd.f32 %v8296_v59, %v7785_v36  ;;  %v8378_v56 = vpop.f32.mrf.mxu0  ;;  %v2614_v54 = vadd.f32 %v8282_v21, %v7760_v1 }
 0x279   : > { %v8374_v13 = vmul.f32 %v5913_v31, %v5895_v32  ;;  %v3446_v18 = vmul.f32 1.442695, %v3400_v33  ;;  %v2628_v47 = vpop.f32.mrf.mxu1  ;;  %v6558_v16 = vpop.eup %6557  ;;  %6565 = vpow2.f32 %v3444_v2  ;;  %v2559_v19 = vadd.f32 %v8314_v38, %v7785_v36 }
 0x27a   : > { %v3448_v52 = vmul.f32 1.442695, %v3401_v23  ;;  %v3051_v35 = vadd.f32 1.0, %v6558_v16  ;;  %v2616_v32 = vadd.f32 %v8298_v39, %v7760_v1  ;;  %v2618_v59 = vadd.f32 %v8316_v51, %v7785_v36  ;;  %v8388_v3 = vpop.f32.mrf.mxu0 }
 0x27b   : > { %6567 = vpow2.f32 %v3446_v18  ;;  %v8390_v57 = vpop.f32.mrf.mxu1  ;;  %v6560_v29 = vpop.eup %6559  ;;  %v3723_v41 = vpack.c.bf16 %v2559_v19, %v2555_v20  ;;  %v8394_v21 = vadd.f32 %v8324_v50, %v7794_v25  ;;  %v2620_v38 = vadd.f32 %v8326_v6, %v7785_v36 }
 0x27c   : > { %6569 = vpow2.f32 %v3448_v52  ;;  %v3052_v31 = vadd.f32 1.0, %v6560_v29  ;;  %v3722_v39 = vpack.c.bf16 %v2557_v27, %v2553_v58  ;;  %v8399_v40 = vadd.f32 %v2564_v15, %v7794_v25  ;;  %v2668_v51 = vpop.f32.mrf.mxu0 }
 0x27d   : > { %6571 = vlog2.f32 %v3050_v43  ;;  %v8401_v33 = vpop.f32.mrf.mxu1  ;;  %v6562_v11 = vpop.eup %6561  ;;  %v3691_v63 = vpack.c.bf16 %v8341_v55, %v8310_v26  ;;  %v2926_v50 = vand.u32 2147483647, %v8394_v21  ;;  %v3725_v2 = vpack.c.bf16 %v2620_v38, %v2616_v32  ;;  %4316 = vmatprep.subr.bf16.mxu1 %v3723_v41 }
 0x27e   : > { %6573 = vlog2.f32 %v3051_v35  ;;  %v3053_v6 = vadd.f32 1.0, %v6562_v11  ;;  %v3724_v23 = vpack.c.bf16 %v2618_v59, %v2614_v54  ;;  %v2927_v58 = vand.u32 2147483647, %v8399_v40  ;;  %4317 = vmatpush1.bf16.msra.mxu1 %v3722_v39  ;;  %v8407_v15 = vpop.f32.mrf.mxu0 }
 0x27f   : > { %6575 = vlog2.f32 %v3052_v31  ;;  %v8409_v43 = vpop.f32.mrf.mxu1  ;;  %v3693_v20 = vpack.c.bf16 %v8366_v4, %v8337_v37  ;;  %v2958_v18 = vsub.f32 0.0, %v2926_v50  ;;  %v8415_v26 = vadd.f32 %v8333_v42, %v7794_v25  ;;  %4318 = vmatprep.subr.bf16.mxu1 %v3691_v63  ;;  %4369 = vmatprep.subr.bf16.mxu0 %v3725_v2 }
 0x280   : > { %v8419_v55 = vadd.f32 %v8353_v0, %v7794_v25  ;;  %6577 = vlog2.f32 %v3053_v6  ;;  %v2604_v27 = vadd.f32 %v8232_v24, %v7771_v22  ;;  %v3690_v47 = vpack.c.bf16 %v8321_v45, %v8305_v14  ;;  %4370 = vmatpush1.bf16.msra.mxu0 %v3724_v23  ;;  %v8425_v37 = vpop.f32.mrf.mxu0 }
 0x281   : > { %v2959_v16 = vsub.f32 0.0, %v2927_v58  ;;  %v8427_v4 = vpop.f32.mrf.mxu1  ;;  %v3010_v42 = vmul.f32 1.442695, %v2958_v18  ;;  %v2928_v52 = vand.u32 2147483647, %v8415_v26  ;;  %4371 = vmatprep.subr.bf16.mxu0 %v3693_v20  ;;  %v9472_v0 = vunpack.c.l.bf16 %v8270_v60 }
 0x282   : > { %9471 = vst [vmem:[#allocation29_spill] sm:$0xff] %v8419_v55  ;;  %v3692_v24 = vpack.c.bf16 %v8358_v61, %v2604_v27  ;;  %v2929_v14 = vand.u32 2147483647, %v8419_v55  ;;  %4319 = vmatpush1.bf16.msra.mxu1 %v3690_v47  ;;  %v8437_v45 = vpop.f32.mrf.mxu0  ;;  %v9474_v29 = vunpack.c.h.bf16 %v8270_v60  ;;  %v2890_v38 = vmax.f32 %v8227_v5, 0.0 }
 0x283   : > { %v8433_v54 = vrot.slane %v9472_v0, %v7891_v12  ;;  %v3012_v19 = vmul.f32 1.442695, %v2959_v16  ;;  %v8439_v35 = vpop.f32.mrf.mxu1  ;;  %v9473_v32 = vmov %v9472_v0  ;;  %6579 = vpow2.f32 %v3010_v42 }
 0x284   : > { %v8444_v59 = vrot.slane %v9473_v32, %v7896_v8  ;;  %v8449_v41 = vrot.slane %v9474_v29, %v7891_v12  ;;  %v2960_v61 = vsub.f32 0.0, %v2928_v52  ;;  %v9475_v31 = vmov %v9474_v29  ;;  %4372 = vmatpush1.bf16.msra.mxu0 %v3692_v24  ;;  %v2678_v63 = vpop.f32.mrf.mxu0 }
 0x285   : > { %v8455_v39 = vrot.slane %v9475_v31, %v7896_v8  ;;  %6581 = vpow2.f32 %v3012_v19  ;;  %v2961_v11 = vsub.f32 0.0, %v2929_v14  ;;  %v8457_v50 = vpop.f32.mrf.mxu1  ;;  %v6564_v2 = vpop.eup %6563  ;;  %v2891_v6 = vmax.f32 %v8238_v62, 0.0  ;;  %6364 = vmatmul.mubr.msk.bf16.vlgmr.msra.gmra.mxu1 %vm1888_vm2, %v8292_v28 }
 0x286   : > { %v2892_v23 = vmax.f32 %v8241_v7, 0.0  ;;  %v3014_v20 = vmul.f32 1.442695, %v2960_v61  ;;  %v6566_v5 = vpop.eup %6565  ;;  %v3494_v60 = vsub.f32 1.0, %v6564_v2  ;;  %v8466_v27 = vadd.f32 %v8378_v56, %v7771_v22  ;;  %4346 = vmatprep.mubr.bf16.mxu1 %v9459_v34  ;;  %v2680_v62 = vpop.f32.mrf.mxu0 }
 0x287   : > { %v3016_v18 = vmul.f32 1.442695, %v2961_v11  ;;  %v8469_v47 = vadd.f32 %v2668_v51, %v7791_v49  ;;  %v8472_v7 = vpop.f32.mrf.mxu1  ;;  %v3495_v42 = vsub.f32 1.0, %v6566_v5  ;;  %v8476_v52 = vadd.f32 %v8388_v3, %v7771_v22  ;;  %6366 = vmatmul.mubr.msk.bf16.vlgmr.msra.gmra.mxu0 %vm1888_vm2, %v8292_v28 }
 0x288   : > { %v6568_v16 = vpop.eup %6567  ;;  %6583 = vpow2.f32 %v3014_v20  ;;  %v8480_v0 = vadd.f32 %v8401_v33, %v7771_v22  ;;  %v8485_v51 = vmul.f32 %v8331_v17, %v3494_v60  ;;  %v5930_v24 = vsub.f32 1.0, %v3494_v60  ;;  %4399 = vmatprep.mubr.bf16.mxu0 %v9459_v34  ;;  %v8488_v14 = vpop.f32.mrf.mxu0 }
 0x289   : > { %v6570_v56 = vpop.eup %6569  ;;  %v3496_v19 = vsub.f32 1.0, %v6568_v16  ;;  %6585 = vpow2.f32 %v3016_v18  ;;  %v8490_v3 = vpop.f32.mrf.mxu1  ;;  %v8493_v33 = vmul.f32 %v8374_v13, %v3495_v42  ;;  %v5931_v29 = vsub.f32 1.0, %v3495_v42 }
 0x28a   : > { %9476 = vst [vmem:[#allocation30_spill] sm:$0xff] %v8485_v51  ;;  %v6572_v32 = vpop.eup %6571  ;;  %v3497_v61 = vsub.f32 1.0, %v6570_v56  ;;  %v8497_v31 = vadd.f32 %v8407_v15, %v7791_v49  ;;  %v5932_v2 = vadd.f32 1e-10, %v5930_v24  ;;  %v8501_v18 = vpop.f32.mrf.mxu0  ;;  %v2675_v56 = vadd.f32 %v8425_v37, %v7760_v1 }
 0x28b   : > { %9477 = vst [vmem:[#allocation31_spill] sm:$0xff] %v8493_v33  ;;  %v6574_v11 = vpop.eup %6573  ;;  %v5950_v20 = vsub.f32 1.0, %v3496_v19  ;;  %v3099_v5 = vmul.f32 0.6931472, %v6572_v32  ;;  %v8503_v16 = vpop.f32.mrf.mxu1  ;;  %v5933_v51 = vadd.f32 1e-10, %v5931_v29  ;;  %v2679_v29 = vadd.f32 %v2678_v63, %v7785_v36 }
 0x28c   : > { %v6576_v58 = vpop.eup %6575  ;;  %v5951_v33 = vsub.f32 1.0, %v3497_v61  ;;  %v3101_v42 = vmul.f32 0.6931472, %v6574_v11  ;;  %v5934_v15 = vmul.f32 %v5932_v2, %v8331_v17  ;;  %v2688_v32 = vpop.f32.mrf.mxu0 }
 0x28d   : > { %v5952_v48 = vadd.f32 1e-10, %v5950_v20  ;;  %v3146_v24 = vadd.f32 %v3099_v5, %v2890_v38  ;;  %v3103_v46 = vmul.f32 0.6931472, %v6576_v58  ;;  %v8508_v30 = vpop.f32.mrf.mxu1  ;;  %v6578_v60 = vpop.eup %6577  ;;  %v5935_v9 = vmul.f32 %v5933_v51, %v8374_v13  ;;  %6365 = vmatmul.mubr.msk.bf16.gmra.mxu1 %vm1888_vm2, %v8349_v10 }
 0x28e   : > { %v5953_v44 = vadd.f32 1e-10, %v5951_v33  ;;  %v3147_v55 = vadd.f32 %v3101_v42, %v2891_v6  ;;  %v8514_v11 = vmul.f32 %v5934_v15, %v3496_v19  ;;  %v2689_v58 = vpop.f32.mrf.mxu0  ;;  %4442 = vmatprep.mubr.bf16.mxu1 %v9459_v34  ;;  %v3105_v6 = vmul.f32 0.6931472, %v6578_v60 }
 0x28f   : > { %v3194_v37 = vsub.f32 0.0, %v3146_v24  ;;  %v8516_v17 = vmul.f32 %v5952_v48, %v5934_v15  ;;  %v3148_v38 = vadd.f32 %v3103_v46, %v2892_v23  ;;  %v2749_v2 = vpop.f32.mrf.mxu1  ;;  %v8519_v20 = vmul.f32 %v5935_v9, %v3497_v61  ;;  %6367 = vmatmul.mubr.msk.bf16.gmra.mxu0 %vm1888_vm2, %v8349_v10 }
 0x290   : > { %9478 = vst [vmem:[#allocation32_spill] sm:$0xff] %v8514_v11  ;;  %v3195_v13 = vsub.f32 0.0, %v3147_v55  ;;  %v8521_v51 = vmul.f32 %v5953_v44, %v5935_v9  ;;  %v6580_v63 = vpop.eup %6579  ;;  %v2677_v46 = vadd.f32 %v8437_v45, %v7760_v1  ;;  %v2681_v48 = vadd.f32 %v2680_v62, %v7785_v36  ;;  %v8529_v5 = vpop.f32.mrf.mxu0  ;;  %4495 = vmatprep.mubr.bf16.mxu0 %v9459_v34 }
 0x291   : > { %9479 = vst [vmem:[#allocation33_spill] sm:$0xff] %v8519_v20  ;;  %v3402_v19 = vmul.f32 %v8433_v54, %v3194_v37  ;;  %v3196_v33 = vsub.f32 0.0, %v3148_v38  ;;  %v2750_v23 = vpop.f32.mrf.mxu1  ;;  %v9480_v55 = vmax.f32 %v8250_v53, 0.0  ;;  %v3054_v60 = vadd.f32 1.0, %v6580_v63 }
 0x292   : > { %v6582_v9 = vpop.eup %6581  ;;  %v3403_v44 = vmul.f32 %v8444_v59, %v3195_v13  ;;  %v3695_v54 = vpack.c.bf16 %v8497_v31, %v8476_v52  ;;  %v3726_v15 = vpack.c.bf16 %v2679_v29, %v2675_v56  ;;  %v3727_v62 = vpack.c.bf16 %v2681_v48, %v2677_v46  ;;  %v8538_v24 = vpop.f32.mrf.mxu0 }
 0x293   : > { %v3149_v61 = vadd.f32 %v3105_v6, %v9480_v55  ;;  %v3450_v42 = vmul.f32 1.442695, %v3402_v19  ;;  %v3404_v45 = vmul.f32 %v8449_v41, %v3196_v33  ;;  %v8540_v32 = vpop.f32.mrf.mxu1  ;;  %6587 = vlog2.f32 %v3054_v60 }
 0x294   : > { %v3452_v37 = vmul.f32 1.442695, %v3403_v44  ;;  %v3055_v59 = vadd.f32 1.0, %v6582_v9  ;;  %v2732_v2 = vadd.f32 %v8427_v4, %v7791_v49  ;;  %v8546_v52 = vadd.f32 %v8488_v14, %v7794_v25  ;;  %4422 = vmatprep.subr.bf16.mxu1 %v3727_v62  ;;  %v8548_v41 = vpop.f32.mrf.mxu0 }
 0x295   : > { %v3197_v38 = vsub.f32 0.0, %v3149_v61  ;;  %v6584_v58 = vpop.eup %6583  ;;  %6589 = vpow2.f32 %v3450_v42  ;;  %v3454_v53 = vmul.f32 1.442695, %v3404_v45  ;;  %v8550_v31 = vpop.f32.mrf.mxu1  ;;  %v2738_v6 = vadd.f32 %v8457_v50, %v7760_v1  ;;  %4423 = vmatpush1.bf16.msra.mxu1 %v3726_v15  ;;  %v6796_v45 = vld [vmem:[%s7070_s18 + $0x28] sm:$0xff] }
 0x296   : > { %v6586_v56 = vpop.eup %6585  ;;  %6591 = vpow2.f32 %v3452_v37  ;;  %v3056_v13 = vadd.f32 1.0, %v6584_v58  ;;  %v2740_v14 = vadd.f32 %v8472_v7, %v7785_v36  ;;  %v2930_v63 = vand.u32 2147483647, %v8546_v52  ;;  %4424 = vmatprep.subr.bf16.mxu1 %v3695_v54  ;;  %v8558_v19 = vpop.f32.mrf.mxu0 }
 0x297   : > { %v3405_v29 = vmul.f32 %v8455_v39, %v3197_v38  ;;  %6593 = vpow2.f32 %v3454_v53  ;;  %v3057_v4 = vadd.f32 1.0, %v6586_v56  ;;  %v8560_v33 = vpop.f32.mrf.mxu1  ;;  %v2742_v39 = vadd.f32 %v8490_v3, %v7785_v36 }
 0x298   : > { %6595 = vlog2.f32 %v3055_v59  ;;  %v8566_v50 = vadd.f32 %v8501_v18, %v7794_v25  ;;  %v2736_v7 = vadd.f32 %v8439_v35, %v7760_v1  ;;  %v2962_v48 = vsub.f32 0.0, %v2930_v63  ;;  %v8574_v9 = vpop.f32.mrf.mxu0 }
 0x299   : > { %v3456_v46 = vmul.f32 1.442695, %v3405_v29  ;;  %6597 = vlog2.f32 %v3056_v13  ;;  %v8572_v23 = vadd.f32 %v8503_v16, %v7794_v25  ;;  %v8576_v44 = vpop.f32.mrf.mxu1  ;;  %v2730_v3 = vadd.f32 %v8409_v43, %v7791_v49 }
 0x29a   : > { %9481 = vst [vmem:[#allocation34_spill] sm:$0xff] %v8566_v50  ;;  %v3729_v18 = vpack.c.bf16 %v2742_v39, %v2738_v6  ;;  %v2931_v55 = vand.u32 2147483647, %v8566_v50  ;;  %v9483_v35 = vpack.c.bf16 %v8469_v47, %v8466_v27  ;;  %v3728_v61 = vpack.c.bf16 %v2740_v14, %v2736_v7  ;;  %v8585_v54 = vpop.f32.mrf.mxu0 }
 0x29b   : > { %9482 = vst [vmem:[#allocation35_spill] sm:$0xff] %v8572_v23  ;;  %6599 = vpow2.f32 %v3456_v46  ;;  %v3018_v60 = vmul.f32 1.442695, %v2962_v48  ;;  %v2932_v16 = vand.u32 2147483647, %v8572_v23  ;;  %v8587_v42 = vpop.f32.mrf.mxu1  ;;  %v3172_v15 = vunpack.c.l.bf16 %v6796_v45  ;;  %v8620_v46 = vld [vmem:[%s7070_s18 + $0x30] sm:$0xff] }
 0x29c   : > { %4425 = vmatpush1.bf16.msra.mxu1 %v9483_v35  ;;  %6601 = vlog2.f32 %v3057_v4  ;;  %v3697_v43 = vpack.c.bf16 %v2732_v2, %v8480_v0  ;;  %v2963_v62 = vsub.f32 0.0, %v2931_v55  ;;  %v8593_v37 = vadd.f32 %v8508_v30, %v7794_v25  ;;  %4475 = vmatprep.subr.bf16.mxu0 %v3729_v18  ;;  %v8599_v59 = vpop.f32.mrf.mxu0 }
 0x29d   : > { %v3173_v27 = vunpack.c.h.bf16 %v6796_v45  ;;  %v2726_v47 = vadd.f32 %v8390_v57, %v7771_v22  ;;  %6603 = vpow2.f32 %v3018_v60  ;;  %v2964_v38 = vsub.f32 0.0, %v2932_v16  ;;  %4476 = vmatpush1.bf16.msra.mxu0 %v3728_v61  ;;  %v8601_v58 = vpop.f32.mrf.mxu1 }
 0x29e   : > { %9484 = vst [vmem:[#allocation36_spill] sm:$0xff] %v8593_v37  ;;  %v3020_v0 = vmul.f32 1.442695, %v2963_v62  ;;  %v2933_v30 = vand.u32 2147483647, %v8593_v37  ;;  %4477 = vmatprep.subr.bf16.mxu0 %v3697_v43  ;;  %v8605_v57 = vpop.f32.mrf.mxu0  ;;  %v3309_v29 = vrot.slane %v3172_v15, %v7891_v12  ;;  %v8611_v13 = vrot.slane %v3172_v15, %v7896_v8  ;;  %v9485_v15 = vld [vmem:[#allocation29_spill] sm:$0xff] }
 0x29f   : > { %6368 = vmatmul.mubr.msk.bf16.vlgmr.msra.gmra.mxu1 %vm1888_vm2, %v8292_v28  ;;  %v3696_v53 = vpack.c.bf16 %v2730_v3, %v2726_v47  ;;  %v3022_v2 = vmul.f32 1.442695, %v2964_v38  ;;  %v8607_v56 = vpop.f32.mrf.mxu1  ;;  %v8614_v14 = vrot.slane %v3173_v27, %v7891_v12  ;;  %v8617_v63 = vrot.slane %v3173_v27, %v7896_v8 }
 0x2a0   : > { %4452 = vmatprep.mubr.bf16.mxu1 %v9459_v34  ;;  %6605 = vpow2.f32 %v3020_v0  ;;  %v2965_v6 = vsub.f32 0.0, %v2933_v30  ;;  %v6588_v4 = vpop.eup %6587  ;;  %v8623_v7 = vpop.f32.mrf.mxu0  ;;  %v2894_v18 = vmax.f32 %v8394_v21, 0.0  ;;  %v2895_v35 = vmax.f32 %v8399_v40, 0.0 }
 0x2a1   : > { %6607 = vpow2.f32 %v3022_v2  ;;  %4478 = vmatpush1.bf16.msra.mxu0 %v3696_v53  ;;  %v8625_v48 = vpop.f32.mrf.mxu1  ;;  %v3107_v55 = vmul.f32 0.6931472, %v6588_v4  ;;  %v2896_v45 = vmax.f32 %v8415_v26, 0.0  ;;  %v2897_v43 = vmax.f32 %v9485_v15, 0.0 }
 0x2a2   : > { %v6590_v3 = vpop.eup %6589  ;;  %v3024_v61 = vmul.f32 1.442695, %v2965_v6  ;;  %v8633_v62 = vadd.f32 %v8529_v5, %v7771_v22  ;;  %v8635_v27 = vpop.f32.mrf.mxu0  ;;  %v8641_v40 = vadd.f32 %v8538_v24, %v7771_v22  ;;  %v8650_v2 = vadd.f32 %v8548_v41, %v7791_v49 }
 0x2a3   : > { %v6592_v60 = vpop.eup %6591  ;;  %v3498_v16 = vsub.f32 1.0, %v6590_v3  ;;  %v8637_v47 = vpop.f32.mrf.mxu1  ;;  %v3150_v0 = vadd.f32 %v3107_v55, %v2894_v18 }
 0x2a4   : > { %v6594_v38 = vpop.eup %6593  ;;  %v3499_v21 = vsub.f32 1.0, %v6592_v60  ;;  %6609 = vpow2.f32 %v3024_v61  ;;  %6370 = vmatmul.mubr.msk.bf16.vlgmr.msra.gmra.mxu0 %vm1888_vm2, %v8292_v28  ;;  %v2810_v6 = vpop.f32.mrf.mxu0 }
 0x2a5   : > { %v6596_v26 = vpop.eup %6595  ;;  %v8646_v30 = vmul.f32 %v8516_v17, %v3498_v16  ;;  %v5970_v5 = vsub.f32 1.0, %v3498_v16  ;;  %v3500_v53 = vsub.f32 1.0, %v6594_v38  ;;  %4505 = vmatprep.mubr.bf16.mxu0 %v9459_v34  ;;  %v8655_v24 = vpop.f32.mrf.mxu1  ;;  %v3198_v55 = vsub.f32 0.0, %v3150_v0 }
 0x2a6   : > { %v6598_v4 = vpop.eup %6597  ;;  %v8658_v3 = vmul.f32 %v8521_v51, %v3499_v21  ;;  %v5971_v18 = vsub.f32 1.0, %v3499_v21  ;;  %v3109_v61 = vmul.f32 0.6931472, %v6596_v26  ;;  %v8663_v38 = vadd.f32 %v8550_v31, %v7771_v22  ;;  %v2811_v39 = vpop.f32.mrf.mxu0 }
 0x2a7   : > { %9486 = vst [vmem:[#allocation29_spill] sm:$0xff] %v8646_v30  ;;  %6369 = vmatmul.mubr.msk.bf16.gmra.mxu1 %vm1888_vm2, %v8349_v10  ;;  %v5972_v41 = vadd.f32 1e-10, %v5970_v5  ;;  %v5990_v16 = vsub.f32 1.0, %v3500_v53  ;;  %v3111_v15 = vmul.f32 0.6931472, %v6598_v4  ;;  %v2871_v30 = vpop.f32.mrf.mxu1  ;;  %v3406_v37 = vmul.f32 %v3309_v29, %v3198_v55 }
 0x2a8   : > { %9487 = vst [vmem:[#allocation37_spill] sm:$0xff] %v8658_v3  ;;  %4548 = vmatprep.mubr.bf16.mxu1 %v9459_v34  ;;  %v6600_v60 = vpop.eup %6599  ;;  %v5973_v20 = vadd.f32 1e-10, %v5971_v18  ;;  %v8667_v21 = vadd.f32 %v8558_v19, %v7791_v49  ;;  %v3151_v5 = vadd.f32 %v3109_v61, %v2895_v35  ;;  %v8670_v4 = vpop.f32.mrf.mxu0 }
 0x2a9   : > { %v6602_v6 = vpop.eup %6601  ;;  %v3501_v11 = vsub.f32 1.0, %v6600_v60  ;;  %v5974_v0 = vmul.f32 %v5972_v41, %v8516_v17  ;;  %v5992_v26 = vadd.f32 1e-10, %v5990_v16  ;;  %v3152_v3 = vadd.f32 %v3111_v15, %v2896_v45  ;;  %v2872_v23 = vpop.f32.mrf.mxu1 }
 0x2aa   : > { %v6604_v31 = vpop.eup %6603  ;;  %v5975_v39 = vmul.f32 %v5973_v20, %v8521_v51  ;;  %v3458_v8 = vmul.f32 1.442695, %v3406_v37  ;;  %v3113_v18 = vmul.f32 0.6931472, %v6602_v6  ;;  %v3199_v19 = vsub.f32 0.0, %v3151_v5  ;;  %v8677_v50 = vpop.f32.mrf.mxu0 }
 0x2ab   : > { %v5991_v30 = vsub.f32 1.0, %v3501_v11  ;;  %v8673_v60 = vmul.f32 %v5974_v0, %v3500_v53  ;;  %v8675_v29 = vmul.f32 %v5992_v26, %v5974_v0  ;;  %v3200_v55 = vsub.f32 0.0, %v3152_v3  ;;  %v8679_v17 = vpop.f32.mrf.mxu1 }
 0x2ac   : > { %v8681_v35 = vmul.f32 %v5975_v39, %v3501_v11  ;;  %6611 = vpow2.f32 %v3458_v8  ;;  %v3153_v23 = vadd.f32 %v3113_v18, %v2897_v43  ;;  %6371 = vmatmul.mubr.msk.bf16.gmra.mxu0 %vm1888_vm2, %v8349_v10  ;;  %v3407_v51 = vmul.f32 %v8611_v13, %v3199_v19  ;;  %v8696_v15 = vpop.f32.mrf.mxu0 }
 0x2ad   : > { %v5993_v45 = vadd.f32 1e-10, %v5991_v30  ;;  %v6606_v20 = vpop.eup %6605  ;;  %v3408_v37 = vmul.f32 %v8614_v14, %v3200_v55  ;;  %v3058_v53 = vadd.f32 1.0, %v6604_v31  ;;  %v2797_v3 = vadd.f32 %v8574_v9, %v7760_v1  ;;  %4601 = vmatprep.mubr.bf16.mxu0 %v9459_v34  ;;  %v8690_v61 = vpop.f32.mrf.mxu1 }
 0x2ae   : > { %v6608_v11 = vpop.eup %6607  ;;  %v3201_v8 = vsub.f32 0.0, %v3153_v23  ;;  %v3059_v43 = vadd.f32 1.0, %v6606_v20  ;;  %v2801_v16 = vadd.f32 %v8599_v59, %v7785_v36  ;;  %v3460_v13 = vmul.f32 1.442695, %v3407_v51  ;;  %v8711_v55 = vpop.f32.mrf.mxu0 }
 0x2af   : > { %v8692_v41 = vmul.f32 %v5993_v45, %v5975_v39  ;;  %v3462_v14 = vmul.f32 1.442695, %v3408_v37  ;;  %6613 = vlog2.f32 %v3058_v53  ;;  %v3060_v6 = vadd.f32 1.0, %v6608_v11  ;;  %v3663_v0 = vpop.f32.mrf.mxu1 }
 0x2b0   : > { %v3409_v9 = vmul.f32 %v8617_v63, %v3201_v8  ;;  %6615 = vlog2.f32 %v3059_v43  ;;  %v2799_v26 = vadd.f32 %v8585_v54, %v7760_v1  ;;  %v2803_v5 = vadd.f32 %v8605_v57, %v7785_v36  ;;  %v8735_v51 = vpop.f32.mrf.mxu0 }
 0x2b1   : > { %v6610_v31 = vpop.eup %6609  ;;  %6617 = vpow2.f32 %v3460_v13  ;;  %v3699_v59 = vpack.c.bf16 %v8667_v21, %v8641_v40  ;;  %v2854_v39 = vadd.f32 %v8576_v44, %v7791_v49  ;;  %v8709_v30 = vadd.f32 %v8623_v7, %v7794_v25  ;;  %v3664_v63 = vpop.f32.mrf.mxu1 }
 0x2b2   : > { %6619 = vpow2.f32 %v3462_v14  ;;  %v3464_v18 = vmul.f32 1.442695, %v3409_v9  ;;  %v3061_v19 = vadd.f32 1.0, %v6610_v31  ;;  %v3731_v54 = vpack.c.bf16 %v2803_v5, %v2799_v26  ;;  %v8746_v43 = vpop.f32.mrf.mxu0 }
 0x2b3   : > { %6621 = vlog2.f32 %v3060_v6  ;;  %v3730_v57 = vpack.c.bf16 %v2801_v16, %v2797_v3  ;;  %v2862_v45 = vadd.f32 %v8607_v56, %v7785_v36  ;;  %v2934_v40 = vand.u32 2147483647, %v8709_v30 }
 0x2b4   : > { %6623 = vpow2.f32 %v3464_v18  ;;  %v2860_v44 = vadd.f32 %v8601_v58, %v7760_v1  ;;  %v2864_v7 = vadd.f32 %v8625_v48, %v7785_v36  ;;  %v8722_v21 = vadd.f32 %v8635_v27, %v7794_v25  ;;  %4528 = vmatprep.subr.bf16.mxu1 %v3731_v54 }
 0x2b5   : > { %6625 = vlog2.f32 %v3061_v19  ;;  %v2858_v23 = vadd.f32 %v8587_v42, %v7760_v1  ;;  %v2966_v20 = vsub.f32 0.0, %v2934_v40  ;;  %v8728_v56 = vadd.f32 %v8637_v47, %v7794_v25  ;;  %4529 = vmatpush1.bf16.msra.mxu1 %v3730_v57  ;;  %v9491_v19 = vld [vmem:[#allocation16_spill] sm:$0xff] }
 0x2b6   : > { %v3698_v58 = vpack.c.bf16 %v8650_v2, %v8633_v62  ;;  %v2852_v36 = vadd.f32 %v8560_v33, %v7791_v49  ;;  %v3733_v48 = vpack.c.bf16 %v2864_v7, %v2860_v44  ;;  %v2935_v27 = vand.u32 2147483647, %v8722_v21  ;;  %4530 = vmatprep.subr.bf16.mxu1 %v3699_v59  ;;  %v9493_v7 = vld [vmem:[#allocation35_spill] sm:$0xff] }
 0x2b7   : > { %v3732_v37 = vpack.c.bf16 %v2862_v45, %v2858_v23  ;;  %v3026_v1 = vmul.f32 1.442695, %v2966_v20  ;;  %v2936_v42 = vand.u32 2147483647, %v8728_v56  ;;  %v8740_v47 = vadd.f32 %v8655_v24, %v7794_v25  ;;  %v8763_v45 = vpop.f32.mrf.mxu0 }
 0x2b8   : > { %v3701_v53 = vpack.c.bf16 %v2854_v39, %v8663_v38  ;;  %v2967_v62 = vsub.f32 0.0, %v2935_v27  ;;  %4581 = vmatprep.subr.bf16.mxu0 %v3733_v48  ;;  %v2848_v49 = vadd.f32 %v8540_v32, %v7771_v22  ;;  %v9488_v25 = vunpack.c.l.bf16 %v8620_v46  ;;  %v9490_v39 = vld [vmem:[#allocation34_spill] sm:$0xff] }
 0x2b9   : > { %v6612_v2 = vpop.eup %6611  ;;  %6627 = vpow2.f32 %v3026_v1  ;;  %v2968_v33 = vsub.f32 0.0, %v2936_v42  ;;  %v2937_v3 = vand.u32 2147483647, %v8740_v47  ;;  %4582 = vmatpush1.bf16.msra.mxu0 %v3732_v37  ;;  %4531 = vmatpush1.bf16.msra.mxu1 %v3698_v58  ;;  %v3175_v6 = vunpack.c.h.bf16 %v8620_v46 }
 0x2ba   : > { %v3502_v11 = vsub.f32 1.0, %v6612_v2  ;;  %v3028_v8 = vmul.f32 1.442695, %v2967_v62  ;;  %4583 = vmatprep.subr.bf16.mxu0 %v3701_v53  ;;  %v3325_v24 = vrot.slane %v9488_v25, %v7891_v12  ;;  %v3700_v38 = vpack.c.bf16 %v2852_v36, %v2848_v49 }
 0x2bb   : > { %v3030_v16 = vmul.f32 1.442695, %v2968_v33  ;;  %v2969_v13 = vsub.f32 0.0, %v2937_v3  ;;  %v2898_v9 = vmax.f32 %v8546_v52, 0.0  ;;  %v2899_v63 = vmax.f32 %v9490_v39, 0.0  ;;  %v8776_v3 = vpop.f32.mrf.mxu0 }
 0x2bc   : > { %v6614_v14 = vpop.eup %6613  ;;  %v8752_v22 = vmul.f32 %v8675_v29, %v3502_v11  ;;  %v6010_v32 = vsub.f32 1.0, %v3502_v11  ;;  %6629 = vpow2.f32 %v3028_v8  ;;  %6372 = vmatmul.mubr.msk.bf16.vlgmr.msra.gmra.mxu1 %vm1888_vm2, %v8292_v28  ;;  %v9492_v54 = vmov %v9488_v25  ;;  %v9496_v25 = vld [vmem:[#allocation36_spill] sm:$0xff] }
 0x2bd   : > { %v6616_v0 = vpop.eup %6615  ;;  %v3115_v26 = vmul.f32 0.6931472, %v6614_v14  ;;  %6631 = vpow2.f32 %v3030_v16  ;;  %v3032_v5 = vmul.f32 1.442695, %v2969_v13  ;;  %4584 = vmatpush1.bf16.msra.mxu0 %v3700_v38  ;;  %4558 = vmatprep.mubr.bf16.mxu1 %v9459_v34  ;;  %v3329_v57 = vrot.slane %v9492_v54, %v9491_v19  ;;  %v6798_v54 = vld [vmem:[%s7070_s18 + $0x38] sm:$0xff]  ;;  %s6113_s18 = scalar_lea.sflag [#allocation4], %s7066_s21 }
 0x2be   : > { %9489 = vst [vmem:[#allocation38_spill] sm:$0xff] %v8752_v22  ;;  %v6618_v31 = vpop.eup %6617  ;;  %v6012_v59 = vadd.f32 1e-10, %v6010_v32  ;;  %v3117_v18 = vmul.f32 0.6931472, %v6616_v0  ;;  %v2900_v23 = vmax.f32 %v9493_v7, 0.0  ;;  %v3333_v27 = vrot.slane %v3175_v6, %v7891_v12 }
 0x2bf   : > { %v6620_v40 = vpop.eup %6619  ;;  %v3503_v44 = vsub.f32 1.0, %v6618_v31  ;;  %v3154_v52 = vadd.f32 %v3115_v26, %v2898_v9  ;;  %6633 = vpow2.f32 %v3032_v5  ;;  %v2901_v38 = vmax.f32 %v9496_v25, 0.0  ;;  %v8782_v9 = vpop.permute.xlu1 %3755 }
 0x2c0   : > { %v6622_v20 = vpop.eup %6621  ;;  %v3504_v58 = vsub.f32 1.0, %v6620_v40  ;;  %v6014_v36 = vmul.f32 %v6012_v59, %v8675_v29  ;;  %v3155_v48 = vadd.f32 %v3117_v18, %v2899_v63  ;;  %6374 = vmatmul.mubr.msk.bf16.vlgmr.msra.gmra.mxu0 %vm1888_vm2, %v8292_v28  ;;  %v3337_v32 = vrot.slane %v3175_v6, %v9491_v19 }
 0x2c1   : > { %v6624_v46 = vpop.eup %6623  ;;  %v8771_v37 = vmul.f32 %v8692_v41, %v3503_v44  ;;  %v6011_v1 = vsub.f32 1.0, %v3503_v44  ;;  %v3202_v42 = vsub.f32 0.0, %v3154_v52  ;;  %v3119_v53 = vmul.f32 0.6931472, %v6622_v20  ;;  %4611 = vmatprep.mubr.bf16.mxu0 %v9459_v34 }
 0x2c2   : > { %v6626_v62 = vpop.eup %6625  ;;  %v8774_v2 = vmul.f32 %v6014_v36, %v3504_v58  ;;  %v6030_v49 = vsub.f32 1.0, %v3504_v58  ;;  %v3505_v29 = vsub.f32 1.0, %v6624_v46  ;;  %v3203_v33 = vsub.f32 0.0, %v3155_v48 }
 0x2c3   : > { %9494 = vst [vmem:[#allocation34_spill] sm:$0xff] %v8771_v37  ;;  %v6013_v11 = vadd.f32 1e-10, %v6011_v1  ;;  %v3410_v8 = vmul.f32 %v3325_v24, %v3202_v42  ;;  %v3156_v28 = vadd.f32 %v3119_v53, %v2900_v23  ;;  %v3808_v0 = vpop.f32.mrf.mxu1  ;;  %v3121_v24 = vmul.f32 0.6931472, %v6626_v62 }
 0x2c4   : > { %9495 = vst [vmem:[#allocation16_spill] sm:$0xff] %v8774_v2  ;;  %v6032_v16 = vadd.f32 1e-10, %v6030_v49  ;;  %v6031_v13 = vsub.f32 1.0, %v3505_v29  ;;  %v3411_v14 = vmul.f32 %v3329_v57, %v3203_v33  ;;  %6373 = vmatmul.mubr.msk.bf16.gmra.mxu1 %vm1888_vm2, %v8349_v10  ;;  %v3176_v6 = vunpack.c.l.bf16 %v6798_v54 }
 0x2c5   : > { %v6015_v26 = vmul.f32 %v6013_v11, %v8692_v41  ;;  %v3466_v5 = vmul.f32 1.442695, %v3410_v8  ;;  %v3204_v31 = vsub.f32 0.0, %v3156_v28  ;;  %4978 = vmatprep.mubr.bf16.mxu1 %v9459_v34  ;;  %v3810_v57 = vpop.f32.mrf.mxu1  ;;  %v3861_v40 = vpop.f32.mrf.mxu0  ;;  %v3157_v7 = vadd.f32 %v3121_v24, %v2901_v38  ;;  %v9498_v11 = vld [vmem:[#allocation15_spill] sm:$0xff] }
 0x2c6   : > { %v6628_v59 = vpop.eup %6627  ;;  %v6033_v39 = vadd.f32 1e-10, %v6031_v13  ;;  %v8786_v63 = vmul.f32 %v6032_v16, %v6014_v36  ;;  %v3468_v18 = vmul.f32 1.442695, %v3411_v14  ;;  %v3809_v8 = vadd.f32 %v3808_v0, %v9498_v11 }
 0x2c7   : > { %v8789_v44 = vmul.f32 %v6015_v26, %v3505_v29  ;;  %6635 = vpow2.f32 %v3466_v5  ;;  %v3412_v52 = vmul.f32 %v3333_v27, %v3204_v31  ;;  %v3062_v23 = vadd.f32 1.0, %v6628_v59  ;;  %v3812_v20 = vpop.f32.mrf.mxu1  ;;  %v3863_v58 = vpop.f32.mrf.mxu0 }
 0x2c8   : > { %6637 = vpow2.f32 %v3468_v18  ;;  %v8791_v41 = vmul.f32 %v6033_v39, %v6015_v26  ;;  %6375 = vmatmul.mubr.msk.bf16.gmra.mxu0 %vm1888_vm2, %v8349_v10  ;;  %v3205_v46 = vsub.f32 0.0, %v3157_v7  ;;  %v8798_v27 = vrot.slane %v3176_v6, %v7891_v12  ;;  %v8800_v29 = vpop.permute.xlu1 %3745  ;;  %v9499_v7 = vld [vmem:[#allocation14_spill] sm:$0xff] }
 0x2c9   : > { %9497 = vst [vmem:[#allocation35_spill] sm:$0xff] %v8789_v44  ;;  %v6630_v36 = vpop.eup %6629  ;;  %v3470_v48 = vmul.f32 1.442695, %v3412_v52  ;;  %5019 = vmatprep.mubr.bf16.mxu0 %v9459_v34  ;;  %6639 = vlog2.f32 %v3062_v23  ;;  %v3814_v62 = vpop.f32.mrf.mxu1  ;;  %v3811_v25 = vadd.f32 %v3810_v57, %v9498_v11  ;;  %v3813_v38 = vadd.f32 %v3812_v20, %v8800_v29 }
 0x2ca   : > { %v6632_v1 = vpop.eup %6631  ;;  %v3063_v53 = vadd.f32 1.0, %v6630_v36  ;;  %v3865_v49 = vpop.f32.mrf.mxu0  ;;  %v3413_v10 = vmul.f32 %v3337_v32, %v3205_v46  ;;  %v3864_v16 = vadd.f32 %v3863_v58, %v9498_v11  ;;  %v3177_v5 = vunpack.c.h.bf16 %v6798_v54 }
 0x2cb   : > { %6641 = vpow2.f32 %v3470_v48  ;;  %v3064_v33 = vadd.f32 1.0, %v6632_v1  ;;  %v3818_v13 = vpop.f32.mrf.mxu1  ;;  %v8808_v32 = vrot.slane %v3176_v6, %v9491_v19  ;;  %v3815_v59 = vadd.f32 %v3814_v62, %v8800_v29 }
 0x2cc   : > { %v6634_v28 = vpop.eup %6633  ;;  %6643 = vlog2.f32 %v3063_v53  ;;  %v3867_v14 = vpop.f32.mrf.mxu0  ;;  %v3472_v26 = vmul.f32 1.442695, %v3413_v10  ;;  %v8813_v57 = vadd.f32 %v3809_v8, %v8670_v4  ;;  %v3862_v52 = vadd.f32 %v3861_v40, %v9498_v11 }
 0x2cd   : > { %6645 = vlog2.f32 %v3064_v33  ;;  %v3065_v31 = vadd.f32 1.0, %v6634_v28  ;;  %v3820_v39 = vpop.f32.mrf.mxu1  ;;  %v3819_v54 = vadd.f32 %v3818_v13, %v9499_v7  ;;  %v8818_v23 = vadd.f32 %v3811_v25, %v8677_v50 }
 0x2ce   : > { %v3871_v18 = vpop.f32.mrf.mxu0  ;;  %6647 = vpow2.f32 %v3472_v26  ;;  %v8821_v6 = vadd.f32 %v3813_v38, %v8696_v15  ;;  %v8824_v20 = vadd.f32 %v3864_v16, %v8677_v50  ;;  %v8827_v48 = vrot.slane %v3177_v5, %v7891_v12 }
 0x2cf   : > { %6649 = vlog2.f32 %v3065_v31  ;;  %v3822_v58 = vpop.f32.mrf.mxu1  ;;  %v3866_v46 = vadd.f32 %v3865_v49, %v8800_v29  ;;  %v3868_v40 = vadd.f32 %v3867_v14, %v8800_v29  ;;  %v3821_v1 = vadd.f32 %v3820_v39, %v9499_v7 }
 0x2d0   : > { %v3873_v36 = vpop.f32.mrf.mxu0  ;;  %v8833_v53 = vrot.slane %v3177_v5, %v9491_v19  ;;  %v8836_v62 = vadd.f32 %v3815_v59, %v8711_v55  ;;  %v8839_v10 = vadd.f32 %v3819_v54, %v8735_v51  ;;  %v3823_v33 = vadd.f32 %v3822_v58, %v8782_v9 }
 0x2d1   : > { %v3824_v8 = vpop.f32.mrf.mxu1  ;;  %v8845_v28 = vadd.f32 %v3862_v52, %v8670_v4  ;;  %v3872_v25 = vadd.f32 %v3871_v18, %v9499_v7  ;;  %v8853_v59 = vadd.f32 %v3866_v46, %v8696_v15  ;;  %v8856_v39 = vadd.f32 %v3868_v40, %v8711_v55 }
 0x2d2   : > { %v3825_v14 = vadd.f32 %v3824_v8, %v8782_v9  ;;  %v3875_v26 = vpop.f32.mrf.mxu0  ;;  %v4687_v18 = vadd.f32 %v3821_v1, %v8746_v43  ;;  %v4814_v58 = vmax.f32 %v8839_v10, 0.0  ;;  %v4718_v13 = vadd.f32 %v3823_v33, %v8763_v45 }
 0x2d3   : > { %v8866_v46 = vadd.f32 %v3872_v25, %v8735_v51  ;;  %v3876_v40 = vadd.f32 %v3875_v26, %v8782_v9  ;;  %v3874_v24 = vadd.f32 %v3873_v36, %v9499_v7  ;;  %v9502_v25 = vmax.f32 %v8709_v30, 0.0 }
 0x2d4   : > { %v6636_v19 = vpop.eup %6635  ;;  %v4719_v10 = vadd.f32 %v3825_v14, %v8776_v3  ;;  %v4815_v0 = vmax.f32 %v4687_v18, 0.0  ;;  %v4846_v44 = vmax.f32 %v4718_v13, 0.0  ;;  %v9503_v36 = vmax.f32 %v8722_v21, 0.0 }
 0x2d5   : > { %v6638_v5 = vpop.eup %6637  ;;  %v3506_v31 = vsub.f32 1.0, %v6636_v19 }
 0x2d6   : > { %v3507_v52 = vsub.f32 1.0, %v6638_v5  ;;  %v6640_v16 = vpop.eup %6639 }
 0x2d7   : > { %v8863_v8 = vmul.f32 %v8786_v63, %v3506_v31  ;;  %v6050_v19 = vsub.f32 1.0, %v3506_v31  ;;  %v3123_v54 = vmul.f32 0.6931472, %v6640_v16  ;;  %v8878_v16 = vadd.f32 %v3876_v40, %v8763_v45 }
 0x2d8   : > { %v6642_v49 = vpop.eup %6641  ;;  %v8870_v1 = vmul.f32 %v8791_v41, %v3507_v52  ;;  %v6051_v5 = vsub.f32 1.0, %v3507_v52 }
 0x2d9   : > { %9500 = vst [vmem:[#allocation36_spill] sm:$0xff] %v8863_v8  ;;  %v6644_v38 = vpop.eup %6643  ;;  %v6052_v33 = vadd.f32 1e-10, %v6050_v19  ;;  %v3508_v12 = vsub.f32 1.0, %v6642_v49  ;;  %v3158_v8 = vadd.f32 %v3123_v54, %v9502_v25 }
 0x2da   : > { %9501 = vst [vmem:[#allocation15_spill] sm:$0xff] %v8870_v1  ;;  %v6646_v31 = vpop.eup %6645  ;;  %v6053_v42 = vadd.f32 1e-10, %v6051_v5  ;;  %v3125_v26 = vmul.f32 0.6931472, %v6644_v38  ;;  %v4847_v5 = vmax.f32 %v4719_v10, 0.0 }
 0x2db   : > { %v6054_v2 = vmul.f32 %v6052_v33, %v8786_v63  ;;  %v6070_v1 = vsub.f32 1.0, %v3508_v12  ;;  %v3127_v52 = vmul.f32 0.6931472, %v6646_v31  ;;  %v6648_v14 = vpop.eup %6647  ;;  %v3206_v18 = vsub.f32 0.0, %v3158_v8  ;;  %v3914_v37 = vpop.f32.mrf.mxu1 }
 0x2dc   : > { %v6055_v49 = vmul.f32 %v6053_v42, %v8791_v41  ;;  %v3159_v19 = vadd.f32 %v3125_v26, %v9503_v36  ;;  %v6650_v30 = vpop.eup %6649  ;;  %v3509_v13 = vsub.f32 1.0, %v6648_v14  ;;  %v9504_v63 = vmax.f32 %v8728_v56, 0.0  ;;  %v3877_v31 = vpop.f32.mrf.mxu0 }
 0x2dd   : > { %v8883_v54 = vmul.f32 %v6054_v2, %v3508_v12  ;;  %v6072_v38 = vadd.f32 1e-10, %v6070_v1  ;;  %v3414_v40 = vmul.f32 %v8798_v27, %v3206_v18  ;;  %v3129_v22 = vmul.f32 0.6931472, %v6650_v30  ;;  %v3916_v42 = vpop.f32.mrf.mxu1 }
 0x2de   : > { %v3160_v33 = vadd.f32 %v3127_v52, %v9504_v63  ;;  %v3207_v25 = vsub.f32 0.0, %v3159_v19  ;;  %v4689_v41 = vadd.f32 %v3874_v24, %v8746_v43  ;;  %v8889_v21 = vmul.f32 %v6055_v49, %v3509_v13  ;;  %v3967_v26 = vpop.f32.mrf.mxu0 }
 0x2df   : > { %v6071_v8 = vsub.f32 1.0, %v3509_v13  ;;  %v8891_v10 = vmul.f32 %v6072_v38, %v6054_v2  ;;  %v4911_v12 = vpack.c.bf16 %v4846_v44, %v4814_v58  ;;  %v3474_v1 = vmul.f32 1.442695, %v3414_v40  ;;  %v3918_v27 = vpop.f32.mrf.mxu1 }
 0x2e0   : > { %v3415_v14 = vmul.f32 %v8808_v32, %v3207_v25  ;;  %v3208_v56 = vsub.f32 0.0, %v3160_v33  ;;  %v9505_v52 = vmax.f32 %v8740_v47, 0.0  ;;  %v4848_v19 = vmax.f32 %v8878_v16, 0.0  ;;  %v3969_v63 = vpop.f32.mrf.mxu0 }
 0x2e1   : > { %v6073_v18 = vadd.f32 1e-10, %v6071_v8  ;;  %v3878_v24 = vadd.f32 %v3877_v31, %v8782_v9  ;;  %v4912_v30 = vpack.c.bf16 %v4847_v5, %v4815_v0  ;;  %6651 = vpow2.f32 %v3474_v1  ;;  %v3920_v38 = vpop.f32.mrf.mxu1 }
 0x2e2   : > { %v3161_v36 = vadd.f32 %v3129_v22, %v9505_v52  ;;  %v3476_v2 = vmul.f32 1.442695, %v3415_v14  ;;  %v3416_v44 = vmul.f32 %v8827_v48, %v3208_v56  ;;  %v3915_v47 = vadd.f32 %v3914_v37, %v9498_v11  ;;  %v3971_v0 = vpop.f32.mrf.mxu0 }
 0x2e3   : > { %v8899_v13 = vmul.f32 %v6073_v18, %v6055_v49  ;;  %v4721_v32 = vadd.f32 %v3878_v24, %v8776_v3  ;;  %4958 = vmatprep.subr.bf16.mxu1 %v4912_v30  ;;  %v9506_v22 = vmax.f32 %v8818_v23, 0.0  ;;  %v9507_v16 = vmax.f32 %v8836_v62, 0.0  ;;  %v3924_v49 = vpop.f32.mrf.mxu1 }
 0x2e4   : > { %v3209_v58 = vsub.f32 0.0, %v3161_v36  ;;  %6653 = vpow2.f32 %v3476_v2  ;;  %v3478_v5 = vmul.f32 1.442695, %v3416_v44  ;;  %4959 = vmatpush1.bf16.msra.mxu1 %v4911_v12  ;;  %v3917_v48 = vadd.f32 %v3916_v42, %v9498_v11  ;;  %v3973_v23 = vpop.f32.mrf.mxu0 }
 0x2e5   : > { %v4880_v33 = vpack.c.bf16 %v9507_v16, %v9506_v22  ;;  %v4785_v40 = vmax.f32 %v8856_v39, 0.0  ;;  %v4816_v25 = vmax.f32 %v8866_v46, 0.0  ;;  %v4817_v8 = vmax.f32 %v4689_v41, 0.0  ;;  %v3926_v12 = vpop.f32.mrf.mxu1 }
 0x2e6   : > { %v3417_v31 = vmul.f32 %v8833_v53, %v3209_v58  ;;  %v4849_v37 = vmax.f32 %v4721_v32, 0.0  ;;  %6655 = vpow2.f32 %v3478_v5  ;;  %v9508_v1 = vmax.f32 %v8813_v57, 0.0  ;;  %v3977_v41 = vpop.f32.mrf.mxu0 }
 0x2e7   : > { %4960 = vmatprep.subr.bf16.mxu1 %v4880_v33  ;;  %v9509_v14 = vmax.f32 %v8821_v6, 0.0  ;;  %v3919_v53 = vadd.f32 %v3918_v27, %v8800_v29  ;;  %v4784_v42 = vmax.f32 %v8853_v59, 0.0  ;;  %v4913_v52 = vpack.c.bf16 %v4848_v19, %v4816_v25  ;;  %v8928_v27 = vld [vmem:[%s9409_s10] sm:$0xf]  ;;  %v3928_v59 = vpop.f32.mrf.mxu1 }
 0x2e8   : > { %v3480_v62 = vmul.f32 1.442695, %v3417_v31  ;;  %v8918_v39 = vadd.f32 %v3915_v47, %v8670_v4  ;;  %v4914_v46 = vpack.c.bf16 %v4849_v37, %v4817_v8  ;;  %v8921_v36 = vadd.f32 %v3917_v48, %v8677_v50 }
 0x2e9   : > { %v4879_v56 = vpack.c.bf16 %v9509_v14, %v9508_v1  ;;  %v3968_v57 = vadd.f32 %v3967_v26, %v9498_v11  ;;  %v3921_v6 = vadd.f32 %v3920_v38, %v8800_v29  ;;  %v4752_v18 = vmax.f32 %v8845_v28, 0.0  ;;  %v3979_v26 = vpop.f32.mrf.mxu0  ;;  %v3930_v32 = vpop.f32.mrf.mxu1 }
 0x2ea   : > { %6657 = vpow2.f32 %v3480_v62  ;;  %4999 = vmatprep.subr.bf16.mxu0 %v4914_v46  ;;  %v9510_v19 = vmax.f32 %v8824_v20, 0.0  ;;  %v3970_v30 = vadd.f32 %v3969_v63, %v9498_v11  ;;  %v3925_v2 = vadd.f32 %v3924_v49, %v9499_v7 }
 0x2eb   : > { %4961 = vmatpush1.bf16.msra.mxu1 %v4879_v56  ;;  %5000 = vmatpush1.bf16.msra.mxu0 %v4913_v52  ;;  %v8936_v44 = vadd.f32 %v3919_v53, %v8696_v15  ;;  %v3972_v58 = vadd.f32 %v3971_v0, %v8800_v29  ;;  %v4881_v38 = vpack.c.bf16 %v4784_v42, %v4752_v18  ;;  %v3981_v63 = vpop.f32.mrf.mxu0  ;;  %v4754_v47 = vmax.f32 %v8918_v39, 0.0 }
 0x2ec   : > { %v4882_v24 = vpack.c.bf16 %v4785_v40, %v9510_v19  ;;  %v3974_v28 = vadd.f32 %v3973_v23, %v8800_v29  ;;  %v3927_v20 = vadd.f32 %v3926_v12, %v9499_v7  ;;  %v4755_v22 = vmax.f32 %v8921_v36, 0.0 }
 0x2ed   : > { %v8946_v16 = vadd.f32 %v3968_v57, %v8670_v4  ;;  %v4659_v33 = vadd.f32 %v3921_v6, %v8711_v55  ;;  %v8951_v0 = vadd.f32 %v3970_v30, %v8677_v50  ;;  %v4690_v5 = vadd.f32 %v3925_v2, %v8735_v51  ;;  %v3983_v49 = vpop.f32.mrf.mxu0 }
 0x2ee   : > { %5001 = vmatprep.subr.bf16.mxu0 %v4882_v24  ;;  %6376 = vmatmul.mubr.msk.bf16.vlgmr.msra.gmra.mxu1 %vm1888_vm2, %v8928_v27  ;;  %v3978_v31 = vadd.f32 %v3977_v41, %v9499_v7  ;;  %v3929_v48 = vadd.f32 %v3928_v59, %v8782_v9  ;;  %v4786_v40 = vmax.f32 %v8936_v44, 0.0  ;;  %v8958_v25 = vadd.f32 %v3972_v58, %v8696_v15  ;;  %v6652_v23 = vpop.eup %6651 }
 0x2ef   : > { %5060 = vmatprep.mubr.bf16.mxu1 %v9459_v34  ;;  %5002 = vmatpush1.bf16.msra.mxu0 %v4881_v38  ;;  %v3980_v8 = vadd.f32 %v3979_v26, %v9499_v7  ;;  %v3931_v37 = vadd.f32 %v3930_v32, %v8782_v9  ;;  %v4661_v62 = vadd.f32 %v3974_v28, %v8711_v55  ;;  %v3510_v53 = vsub.f32 1.0, %v6652_v23 }
 0x2f0   : > { %v4691_v1 = vadd.f32 %v3927_v20, %v8746_v43  ;;  %v4722_v14 = vadd.f32 %v3929_v48, %v8763_v45  ;;  %v3982_v56 = vadd.f32 %v3981_v63, %v8782_v9  ;;  %v4787_v12 = vmax.f32 %v4659_v33, 0.0 }
 0x2f1   : > { %v4723_v42 = vadd.f32 %v3931_v37, %v8776_v3  ;;  %v3984_v52 = vadd.f32 %v3983_v49, %v8782_v9  ;;  %v6654_v46 = vpop.eup %6653  ;;  %v4818_v41 = vmax.f32 %v4690_v5, 0.0  ;;  %v4692_v36 = vadd.f32 %v3978_v31, %v8735_v51 }
 0x2f2   : > { %6377 = vmatmul.mubr.msk.bf16.vlgmr.msra.gmra.mxu0 %vm1888_vm2, %v8928_v27  ;;  %v4693_v57 = vadd.f32 %v3980_v8, %v8746_v43  ;;  %v4724_v6 = vadd.f32 %v3982_v56, %v8763_v45  ;;  %v8974_v59 = vmul.f32 %v8891_v10, %v3510_v53  ;;  %v6090_v18 = vsub.f32 1.0, %v3510_v53 }
 0x2f3   : > { %v3511_v19 = vsub.f32 1.0, %v6654_v46  ;;  %v4850_v24 = vmax.f32 %v4722_v14, 0.0  ;;  %5101 = vmatprep.mubr.bf16.mxu0 %v9459_v34  ;;  %v6656_v30 = vpop.eup %6655  ;;  %v4789_v2 = vmax.f32 %v4661_v62, 0.0  ;;  %v4819_v26 = vmax.f32 %v4691_v1, 0.0 }
 0x2f4   : > { %v4851_v44 = vmax.f32 %v4723_v42, 0.0  ;;  %v4725_v58 = vadd.f32 %v3984_v52, %v8776_v3  ;;  %v6092_v38 = vadd.f32 1e-10, %v6090_v18  ;;  %v4852_v32 = vmax.f32 %v4724_v6, 0.0  ;;  %v4020_v49 = vpop.f32.mrf.mxu1 }
 0x2f5   : > { %v8979_v28 = vmul.f32 %v8899_v13, %v3511_v19  ;;  %v6091_v20 = vsub.f32 1.0, %v3511_v19  ;;  %v4820_v33 = vmax.f32 %v4692_v36, 0.0  ;;  %v4821_v5 = vmax.f32 %v4693_v57, 0.0 }
 0x2f6   : > { %v4853_v31 = vmax.f32 %v4725_v58, 0.0  ;;  %v4916_v48 = vpack.c.bf16 %v4851_v44, %v4819_v26  ;;  %v3512_v37 = vsub.f32 1.0, %v6656_v30  ;;  %v6094_v23 = vmul.f32 %v6092_v38, %v8891_v10  ;;  %v4022_v42 = vpop.f32.mrf.mxu1 }
 0x2f7   : > { %v6658_v63 = vpop.eup %6657  ;;  %v6093_v8 = vadd.f32 1e-10, %v6091_v20  ;;  %v4915_v62 = vpack.c.bf16 %v4850_v24, %v4818_v41  ;;  %v4757_v1 = vmax.f32 %v8951_v0, 0.0  ;;  %v4788_v14 = vmax.f32 %v8958_v25, 0.0 }
 0x2f8   : > { %5040 = vmatprep.subr.bf16.mxu1 %v4916_v48  ;;  %v4884_v56 = vpack.c.bf16 %v4787_v12, %v4755_v22  ;;  %v4918_v53 = vpack.c.bf16 %v4853_v31, %v4821_v5  ;;  %v8984_v52 = vmul.f32 %v6094_v23, %v3512_v37  ;;  %v3513_v46 = vsub.f32 1.0, %v6658_v63  ;;  %v4073_v6 = vpop.f32.mrf.mxu0  ;;  %v4024_v41 = vpop.f32.mrf.mxu1 }
 0x2f9   : > { %v6095_v36 = vmul.f32 %v6093_v8, %v8899_v13  ;;  %v4917_v57 = vpack.c.bf16 %v4852_v32, %v4820_v33  ;;  %5041 = vmatpush1.bf16.msra.mxu1 %v4915_v62  ;;  %v4886_v10 = vpack.c.bf16 %v4789_v2, %v4757_v1  ;;  %v4756_v0 = vmax.f32 %v8946_v16, 0.0 }
 0x2fa   : > { %5042 = vmatprep.subr.bf16.mxu1 %v4884_v56  ;;  %5081 = vmatprep.subr.bf16.mxu0 %v4918_v53  ;;  %v4883_v22 = vpack.c.bf16 %v4786_v40, %v4754_v47  ;;  %v4075_v25 = vpop.f32.mrf.mxu0  ;;  %v4026_v12 = vpop.f32.mrf.mxu1  ;;  %v4021_v26 = vadd.f32 %v4020_v49, %v9498_v11  ;;  %v4023_v16 = vadd.f32 %v4022_v42, %v9498_v11 }
 0x2fb   : > { %v8987_v18 = vmul.f32 %v6095_v36, %v3513_v46  ;;  %5082 = vmatpush1.bf16.msra.mxu0 %v4917_v57  ;;  %v4885_v19 = vpack.c.bf16 %v4788_v14, %v4756_v0  ;;  %v4027_v39 = vadd.f32 %v4026_v12, %v8800_v29  ;;  %v4025_v38 = vadd.f32 %v4024_v41, %v8800_v29 }
 0x2fc   : > { %5083 = vmatprep.subr.bf16.mxu0 %v4886_v10  ;;  %v4077_v13 = vpop.f32.mrf.mxu0  ;;  %v4030_v24 = vpop.f32.mrf.mxu1  ;;  %v4630_v5 = vadd.f32 %v4021_v26, %v8670_v4  ;;  %v4631_v31 = vadd.f32 %v4023_v16, %v8677_v50  ;;  %v4074_v14 = vadd.f32 %v4073_v6, %v9498_v11  ;;  %v4076_v56 = vadd.f32 %v4075_v25, %v9498_v11 }
 0x2fd   : > { %5043 = vmatpush1.bf16.msra.mxu1 %v4883_v22  ;;  %v4031_v58 = vadd.f32 %v4030_v24, %v9499_v7  ;;  %v4663_v48 = vadd.f32 %v4027_v39, %v8711_v55  ;;  %v4662_v46 = vadd.f32 %v4025_v38, %v8696_v15  ;;  %v4078_v36 = vadd.f32 %v4077_v13, %v8800_v29 }
 0x2fe   : > { %v4079_v30 = vpop.f32.mrf.mxu0  ;;  %v4032_v2 = vpop.f32.mrf.mxu1  ;;  %v4633_v13 = vadd.f32 %v4076_v56, %v8677_v50 }
 0x2ff   : > { %5084 = vmatpush1.bf16.msra.mxu0 %v4885_v19  ;;  %v4033_v47 = vadd.f32 %v4032_v2, %v9499_v7  ;;  %v4080_v20 = vadd.f32 %v4079_v30, %v8800_v29  ;;  %v4694_v53 = vadd.f32 %v4031_v58, %v8735_v51  ;;  %v4791_v12 = vmax.f32 %v4663_v48, 0.0 }
 0x300   : > { %6378 = vmatmul.mubr.msk.bf16.vlgmr.msra.gmra.mxu1 %vm1888_vm2, %v8928_v27  ;;  %v4083_v40 = vpop.f32.mrf.mxu0  ;;  %v4034_v44 = vpop.f32.mrf.mxu1  ;;  %v4759_v2 = vmax.f32 %v4631_v31, 0.0  ;;  %v4790_v39 = vmax.f32 %v4662_v46, 0.0  ;;  %v4758_v31 = vmax.f32 %v4630_v5, 0.0 }
 0x301   : > { %5142 = vmatprep.mubr.bf16.mxu1 %v9459_v34  ;;  %v4035_v32 = vadd.f32 %v4034_v44, %v8782_v9  ;;  %v4695_v8 = vadd.f32 %v4033_v47, %v8746_v43  ;;  %v4084_v37 = vadd.f32 %v4083_v40, %v9499_v7  ;;  %v4665_v57 = vadd.f32 %v4080_v20, %v8711_v55 }
 0x302   : > { %6379 = vmatmul.mubr.msk.bf16.vlgmr.msra.gmra.mxu0 %vm1888_vm2, %v8928_v27  ;;  %v4085_v63 = vpop.f32.mrf.mxu0  ;;  %v4036_v33 = vpop.f32.mrf.mxu1  ;;  %v4822_v26 = vmax.f32 %v4694_v53, 0.0  ;;  %v4664_v47 = vadd.f32 %v4078_v36, %v8696_v15  ;;  %v4888_v48 = vpack.c.bf16 %v4791_v12, %v4759_v2 }
 0x303   : > { %5183 = vmatprep.mubr.bf16.mxu0 %v9459_v34  ;;  %v4086_v49 = vadd.f32 %v4085_v63, %v9499_v7  ;;  %v4726_v23 = vadd.f32 %v4035_v32, %v8763_v45  ;;  %v4037_v62 = vadd.f32 %v4036_v33, %v8782_v9  ;;  %v4823_v19 = vmax.f32 %v4695_v8, 0.0 }
 0x304   : > { %v4087_v1 = vpop.f32.mrf.mxu0  ;;  %v4696_v24 = vadd.f32 %v4084_v37, %v8735_v51  ;;  %v4793_v58 = vmax.f32 %v4665_v57, 0.0  ;;  %v4632_v63 = vadd.f32 %v4074_v14, %v8670_v4  ;;  %v4792_v37 = vmax.f32 %v4664_v47, 0.0 }
 0x305   : > { %v4088_v42 = vadd.f32 %v4087_v1, %v8782_v9  ;;  %v4727_v10 = vadd.f32 %v4037_v62, %v8776_v3  ;;  %v4854_v0 = vmax.f32 %v4726_v23, 0.0  ;;  %v4697_v22 = vadd.f32 %v4086_v49, %v8746_v43 }
 0x306   : > { %v4089_v41 = vpop.f32.mrf.mxu0  ;;  %v4824_v33 = vmax.f32 %v4696_v24, 0.0  ;;  %v4761_v49 = vmax.f32 %v4633_v13, 0.0  ;;  %v4887_v62 = vpack.c.bf16 %v4790_v39, %v4758_v31  ;;  %v4760_v56 = vmax.f32 %v4632_v63, 0.0 }
 0x307   : > { %v4728_v6 = vadd.f32 %v4088_v42, %v8763_v45  ;;  %v4090_v25 = vadd.f32 %v4089_v41, %v8782_v9  ;;  %v4855_v30 = vmax.f32 %v4727_v10, 0.0  ;;  %v4919_v38 = vpack.c.bf16 %v4854_v0, %v4822_v26 }
 0x308   : > { %v4825_v20 = vmax.f32 %v4697_v22, 0.0  ;;  %v4890_v1 = vpack.c.bf16 %v4793_v58, %v4761_v49  ;;  %v4889_v53 = vpack.c.bf16 %v4792_v37, %v4760_v56 }
 0x309   : > { %v4729_v16 = vadd.f32 %v4090_v25, %v8776_v3  ;;  %v4856_v40 = vmax.f32 %v4728_v6, 0.0  ;;  %v4920_v44 = vpack.c.bf16 %v4855_v30, %v4823_v19 }
 0x30b   : > { %v4857_v32 = vmax.f32 %v4729_v16, 0.0  ;;  %5122 = vmatprep.subr.bf16.mxu1 %v4920_v44  ;;  %v4921_v23 = vpack.c.bf16 %v4856_v40, %v4824_v33 }
 0x30c   : > { %5123 = vmatpush1.bf16.msra.mxu1 %v4919_v38 }
 0x30d   : > { %v4922_v8 = vpack.c.bf16 %v4857_v32, %v4825_v20  ;;  %5124 = vmatprep.subr.bf16.mxu1 %v4888_v48 }
 0x30f   : > { %5163 = vmatprep.subr.bf16.mxu0 %v4922_v8 }
 0x310   : > { %5164 = vmatpush1.bf16.msra.mxu0 %v4921_v23  ;;  %5125 = vmatpush1.bf16.msra.mxu1 %v4887_v62 }
 0x311   : > { %5165 = vmatprep.subr.bf16.mxu0 %v4890_v1 }
 0x313   : > { %v4126_v42 = vpop.f32.mrf.mxu1  ;;  %6380 = vmatmul.mubr.msk.bf16.vlgmr.msra.gmra.mxu1 %vm1888_vm2, %v8928_v27 }
 0x314   : > { %v4179_v14 = vpop.f32.mrf.mxu0  ;;  %5166 = vmatpush1.bf16.msra.mxu0 %v4889_v53  ;;  %5224 = vmatprep.mubr.bf16.mxu1 %v9459_v34  ;;  %v4127_v0 = vadd.f32 %v4126_v42, %v9498_v11 }
 0x315   : > { %v4128_v5 = vpop.f32.mrf.mxu1  ;;  %v4180_v13 = vadd.f32 %v4179_v14, %v9498_v11 }
 0x316   : > { %v4181_v46 = vpop.f32.mrf.mxu0  ;;  %v4634_v2 = vadd.f32 %v4127_v0, %v8670_v4  ;;  %v4129_v47 = vadd.f32 %v4128_v5, %v9498_v11 }
 0x317   : > { %v4130_v36 = vpop.f32.mrf.mxu1  ;;  %6381 = vmatmul.mubr.msk.bf16.vlgmr.msra.gmra.mxu0 %vm1888_vm2, %v8928_v27  ;;  %v4182_v40 = vadd.f32 %v4181_v46, %v9498_v11 }
 0x318   : > { %v4183_v57 = vpop.f32.mrf.mxu0  ;;  %5265 = vmatprep.mubr.bf16.mxu0 %v9459_v34  ;;  %v4131_v20 = vadd.f32 %v4130_v36, %v8800_v29  ;;  %v4635_v42 = vadd.f32 %v4129_v47, %v8677_v50 }
 0x319   : > { %v4132_v10 = vpop.f32.mrf.mxu1  ;;  %v4184_v63 = vadd.f32 %v4183_v57, %v8800_v29  ;;  %v4637_v14 = vadd.f32 %v4182_v40, %v8677_v50 }
 0x31a   : > { %v4185_v41 = vpop.f32.mrf.mxu0  ;;  %v4133_v25 = vadd.f32 %v4132_v10, %v8800_v29  ;;  %v4666_v36 = vadd.f32 %v4131_v20, %v8696_v15 }
 0x31b   : > { %v4136_v22 = vpop.f32.mrf.mxu1  ;;  %v4186_v19 = vadd.f32 %v4185_v41, %v8800_v29  ;;  %v4668_v57 = vadd.f32 %v4184_v63, %v8696_v15 }
 0x31c   : > { %v4189_v6 = vpop.f32.mrf.mxu0  ;;  %v4137_v26 = vadd.f32 %v4136_v22, %v9499_v7  ;;  %v4667_v32 = vadd.f32 %v4133_v25, %v8711_v55  ;;  %v4794_v40 = vmax.f32 %v4666_v36, 0.0 }
 0x31d   : > { %v4138_v12 = vpop.f32.mrf.mxu1  ;;  %v4190_v44 = vadd.f32 %v4189_v6, %v9499_v7  ;;  %v4669_v31 = vadd.f32 %v4186_v19, %v8711_v55  ;;  %v4796_v20 = vmax.f32 %v4668_v57, 0.0 }
 0x31e   : > { %v4139_v24 = vadd.f32 %v4138_v12, %v9499_v7  ;;  %v4191_v30 = vpop.f32.mrf.mxu0  ;;  %v4698_v62 = vadd.f32 %v4137_v26, %v8735_v51  ;;  %v4795_v0 = vmax.f32 %v4667_v32, 0.0  ;;  %v4763_v26 = vmax.f32 %v4635_v42, 0.0 }
 0x31f   : > { %v4140_v16 = vpop.f32.mrf.mxu1  ;;  %v4192_v39 = vadd.f32 %v4191_v30, %v9499_v7  ;;  %v4700_v5 = vadd.f32 %v4190_v44, %v8735_v51  ;;  %v4797_v19 = vmax.f32 %v4669_v31, 0.0  ;;  %v4765_v44 = vmax.f32 %v4637_v14, 0.0 }
 0x320   : > { %v4141_v58 = vadd.f32 %v4140_v16, %v8782_v9  ;;  %v4193_v38 = vpop.f32.mrf.mxu0  ;;  %v4699_v49 = vadd.f32 %v4139_v24, %v8746_v43  ;;  %v4826_v12 = vmax.f32 %v4698_v62, 0.0  ;;  %v4636_v16 = vadd.f32 %v4180_v13, %v8670_v4 }
 0x321   : > { %v4142_v33 = vpop.f32.mrf.mxu1  ;;  %v4194_v48 = vadd.f32 %v4193_v38, %v8782_v9  ;;  %v4701_v1 = vadd.f32 %v4192_v39, %v8746_v43  ;;  %v4828_v39 = vmax.f32 %v4700_v5, 0.0  ;;  %v4892_v32 = vpack.c.bf16 %v4795_v0, %v4763_v26 }
 0x322   : > { %v4730_v8 = vadd.f32 %v4141_v58, %v8763_v45  ;;  %v4143_v37 = vadd.f32 %v4142_v33, %v8782_v9  ;;  %v4195_v23 = vpop.f32.mrf.mxu0  ;;  %v4827_v22 = vmax.f32 %v4699_v49, 0.0  ;;  %v4762_v33 = vmax.f32 %v4634_v2, 0.0 }
 0x323   : > { %v4732_v56 = vadd.f32 %v4194_v48, %v8763_v45  ;;  %v4196_v53 = vadd.f32 %v4195_v23, %v8782_v9  ;;  %v4829_v24 = vmax.f32 %v4701_v1, 0.0  ;;  %v4894_v48 = vpack.c.bf16 %v4797_v19, %v4765_v44 }
 0x324   : > { %v4731_v46 = vadd.f32 %v4143_v37, %v8776_v3  ;;  %v4858_v10 = vmax.f32 %v4730_v8, 0.0  ;;  %v4764_v31 = vmax.f32 %v4636_v16, 0.0  ;;  %v4891_v8 = vpack.c.bf16 %v4794_v40, %v4762_v33 }
 0x325   : > { %v4733_v41 = vadd.f32 %v4196_v53, %v8776_v3  ;;  %v4860_v25 = vmax.f32 %v4732_v56, 0.0 }
 0x326   : > { %v4859_v6 = vmax.f32 %v4731_v46, 0.0  ;;  %v4923_v58 = vpack.c.bf16 %v4858_v10, %v4826_v12  ;;  %v4893_v13 = vpack.c.bf16 %v4796_v20, %v4764_v31 }
 0x327   : > { %v4861_v30 = vmax.f32 %v4733_v41, 0.0  ;;  %v4925_v63 = vpack.c.bf16 %v4860_v25, %v4828_v39 }
 0x328   : > { %v4924_v47 = vpack.c.bf16 %v4859_v6, %v4827_v22 }
 0x329   : > { %v4926_v38 = vpack.c.bf16 %v4861_v30, %v4829_v24 }
 0x32a   : > { %5204 = vmatprep.subr.bf16.mxu1 %v4924_v47 }
 0x32b   : > { %5205 = vmatpush1.bf16.msra.mxu1 %v4923_v58  ;;  %5245 = vmatprep.subr.bf16.mxu0 %v4926_v38 }
 0x32c   : > { %v4232_v49 = vpop.f32.mrf.mxu1  ;;  %5206 = vmatprep.subr.bf16.mxu1 %v4892_v32  ;;  %5246 = vmatpush1.bf16.msra.mxu0 %v4925_v63 }
 0x32d   : > { %5247 = vmatprep.subr.bf16.mxu0 %v4894_v48  ;;  %v4233_v14 = vadd.f32 %v4232_v49, %v9498_v11 }
 0x32e   : > { %v4234_v37 = vpop.f32.mrf.mxu1  ;;  %v4285_v23 = vpop.f32.mrf.mxu0 }
 0x32f   : > { %5207 = vmatpush1.bf16.msra.mxu1 %v4891_v8  ;;  %v4235_v57 = vadd.f32 %v4234_v37, %v9498_v11  ;;  %v4638_v6 = vadd.f32 %v4233_v14, %v8670_v4  ;;  %v4286_v20 = vadd.f32 %v4285_v23, %v9498_v11 }
 0x330   : > { %v4236_v62 = vpop.f32.mrf.mxu1  ;;  %v4287_v1 = vpop.f32.mrf.mxu0  ;;  %5248 = vmatpush1.bf16.msra.mxu0 %v4893_v13 }
 0x331   : > { %v4237_v25 = vadd.f32 %v4236_v62, %v8800_v29  ;;  %v4639_v38 = vadd.f32 %v4235_v57, %v8677_v50  ;;  %v4288_v63 = vadd.f32 %v4287_v1, %v9498_v11 }
 0x332   : > { %v4238_v56 = vpop.f32.mrf.mxu1  ;;  %v4289_v53 = vpop.f32.mrf.mxu0  ;;  %6382 = vmatmul.mubr.msk.bf16.vlgmr.msra.gmra.mxu1 %vm1888_vm2, %v8928_v27 }
 0x333   : > { %6383 = vmatmul.mubr.msk.bf16.vlgmr.msra.gmra.mxu0 %vm1888_vm2, %v8928_v27  ;;  %5306 = vmatprep.mubr.bf16.mxu1 %v9459_v34  ;;  %v4239_v5 = vadd.f32 %v4238_v56, %v8800_v29  ;;  %v4670_v48 = vadd.f32 %v4237_v25, %v8696_v15  ;;  %v4290_v31 = vadd.f32 %v4289_v53, %v8800_v29  ;;  %v4767_v14 = vmax.f32 %v4639_v38, 0.0 }
 0x334   : > { %v4242_v2 = vpop.f32.mrf.mxu1  ;;  %v4291_v42 = vpop.f32.mrf.mxu0  ;;  %5347 = vmatprep.mubr.bf16.mxu0 %v9459_v34 }
 0x335   : > { %v4243_v10 = vadd.f32 %v4242_v2, %v9499_v7  ;;  %v4671_v19 = vadd.f32 %v4239_v5, %v8711_v55  ;;  %v4292_v24 = vadd.f32 %v4291_v42, %v8800_v29  ;;  %v4641_v5 = vadd.f32 %v4288_v63, %v8677_v50 }
 0x336   : > { %v4244_v46 = vpop.f32.mrf.mxu1  ;;  %v4295_v36 = vpop.f32.mrf.mxu0  ;;  %v4672_v57 = vadd.f32 %v4290_v31, %v8696_v15 }
 0x337   : > { %v4245_v41 = vadd.f32 %v4244_v46, %v9499_v7  ;;  %v4296_v30 = vadd.f32 %v4295_v36, %v9499_v7  ;;  %v4702_v32 = vadd.f32 %v4243_v10, %v8735_v51  ;;  %v4673_v13 = vadd.f32 %v4292_v24, %v8711_v55 }
 0x338   : > { %v4246_v0 = vpop.f32.mrf.mxu1  ;;  %v4297_v22 = vpop.f32.mrf.mxu0  ;;  %v4799_v56 = vmax.f32 %v4671_v19, 0.0  ;;  %v4798_v36 = vmax.f32 %v4670_v48, 0.0  ;;  %v4640_v19 = vadd.f32 %v4286_v20, %v8670_v4 }
 0x339   : > { %v4247_v12 = vadd.f32 %v4246_v0, %v8782_v9  ;;  %v4298_v26 = vadd.f32 %v4297_v22, %v9499_v7  ;;  %v4703_v47 = vadd.f32 %v4245_v41, %v8746_v43  ;;  %v4704_v2 = vadd.f32 %v4296_v30, %v8735_v51 }
 0x33a   : > { %v4248_v16 = vpop.f32.mrf.mxu1  ;;  %v4299_v39 = vpop.f32.mrf.mxu0  ;;  %v4830_v53 = vmax.f32 %v4702_v32, 0.0  ;;  %v4801_v0 = vmax.f32 %v4673_v13, 0.0  ;;  %v4896_v30 = vpack.c.bf16 %v4799_v56, %v4767_v14  ;;  %v4768_v63 = vmax.f32 %v4640_v19, 0.0 }
 0x33b   : > { %v4734_v40 = vadd.f32 %v4247_v12, %v8763_v45  ;;  %v4249_v44 = vadd.f32 %v4248_v16, %v8782_v9  ;;  %v4300_v58 = vadd.f32 %v4299_v39, %v8782_v9  ;;  %v4705_v62 = vadd.f32 %v4298_v26, %v8746_v43 }
 0x33c   : > { %v4301_v33 = vpop.f32.mrf.mxu0  ;;  %v4831_v1 = vmax.f32 %v4703_v47, 0.0  ;;  %v4832_v24 = vmax.f32 %v4704_v2, 0.0  ;;  %v4766_v26 = vmax.f32 %v4638_v6, 0.0  ;;  %v4769_v16 = vmax.f32 %v4641_v5, 0.0 }
 0x33d   : > { %v4735_v49 = vadd.f32 %v4249_v44, %v8776_v3  ;;  %v4736_v8 = vadd.f32 %v4300_v58, %v8763_v45  ;;  %v4862_v37 = vmax.f32 %v4734_v40, 0.0  ;;  %v4302_v23 = vadd.f32 %v4301_v33, %v8782_v9 }
 0x33e   : > { %v4833_v25 = vmax.f32 %v4705_v62, 0.0  ;;  %v4800_v47 = vmax.f32 %v4672_v57, 0.0  ;;  %v4895_v58 = vpack.c.bf16 %v4798_v36, %v4766_v26  ;;  %v4898_v38 = vpack.c.bf16 %v4801_v0, %v4769_v16 }
 0x33f   : > { %v4863_v42 = vmax.f32 %v4735_v49, 0.0  ;;  %v4737_v46 = vadd.f32 %v4302_v23, %v8776_v3  ;;  %v4864_v10 = vmax.f32 %v4736_v8, 0.0  ;;  %v4927_v22 = vpack.c.bf16 %v4862_v37, %v4830_v53 }
 0x340   : > { %v4897_v20 = vpack.c.bf16 %v4800_v47, %v4768_v63 }
 0x341   : > { %v4928_v41 = vpack.c.bf16 %v4863_v42, %v4831_v1  ;;  %v4865_v12 = vmax.f32 %v4737_v46, 0.0  ;;  %v4929_v40 = vpack.c.bf16 %v4864_v10, %v4832_v24 }
 0x343   : > { %5286 = vmatprep.subr.bf16.mxu1 %v4928_v41  ;;  %v4930_v39 = vpack.c.bf16 %v4865_v12, %v4833_v25 }
 0x344   : > { %5287 = vmatpush1.bf16.msra.mxu1 %v4927_v22 }
 0x345   : > { %v4338_v44 = vpop.f32.mrf.mxu1  ;;  %5288 = vmatprep.subr.bf16.mxu1 %v4896_v30  ;;  %5327 = vmatprep.subr.bf16.mxu0 %v4930_v39 }
 0x346   : > { %5328 = vmatpush1.bf16.msra.mxu0 %v4929_v40  ;;  %v4339_v37 = vadd.f32 %v4338_v44, %v9498_v11 }
 0x347   : > { %v4340_v32 = vpop.f32.mrf.mxu1  ;;  %v4391_v33 = vpop.f32.mrf.mxu0  ;;  %5329 = vmatprep.subr.bf16.mxu0 %v4898_v38 }
 0x348   : > { %5289 = vmatpush1.bf16.msra.mxu1 %v4895_v58  ;;  %v4341_v1 = vadd.f32 %v4340_v32, %v9498_v11  ;;  %v4642_v53 = vadd.f32 %v4339_v37, %v8670_v4  ;;  %v4392_v16 = vadd.f32 %v4391_v33, %v9498_v11 }
 0x349   : > { %v4342_v48 = vpop.f32.mrf.mxu1  ;;  %v4393_v31 = vpop.f32.mrf.mxu0 }
 0x34a   : > { %5330 = vmatpush1.bf16.msra.mxu0 %v4897_v20  ;;  %v4343_v46 = vadd.f32 %v4342_v48, %v8800_v29  ;;  %v4643_v26 = vadd.f32 %v4341_v1, %v8677_v50  ;;  %v4394_v39 = vadd.f32 %v4393_v31, %v9498_v11 }
 0x34b   : > { %v4344_v6 = vpop.f32.mrf.mxu1  ;;  %v4395_v49 = vpop.f32.mrf.mxu0  ;;  %6384 = vmatmul.mubr.msk.bf16.vlgmr.msra.gmra.mxu1 %vm1888_vm2, %v8928_v27 }
 0x34c   : > { %5388 = vmatprep.mubr.bf16.mxu1 %v9459_v34  ;;  %v4345_v62 = vadd.f32 %v4344_v6, %v8800_v29  ;;  %v4674_v44 = vadd.f32 %v4343_v46, %v8696_v15  ;;  %v4396_v58 = vadd.f32 %v4395_v49, %v8800_v29  ;;  %v4771_v37 = vmax.f32 %v4643_v26, 0.0 }
 0x34d   : > { %v4348_v8 = vpop.f32.mrf.mxu1  ;;  %v4397_v13 = vpop.f32.mrf.mxu0  ;;  %6385 = vmatmul.mubr.msk.bf16.vlgmr.msra.gmra.mxu0 %vm1888_vm2, %v8928_v27 }
 0x34e   : > { %5429 = vmatprep.mubr.bf16.mxu0 %v9459_v34  ;;  %v4349_v2 = vadd.f32 %v4348_v8, %v9499_v7  ;;  %v4675_v57 = vadd.f32 %v4345_v62, %v8711_v55  ;;  %v4398_v10 = vadd.f32 %v4397_v13, %v8800_v29  ;;  %v4645_v62 = vadd.f32 %v4394_v39, %v8677_v50 }
 0x34f   : > { %v4350_v23 = vpop.f32.mrf.mxu1  ;;  %v4401_v56 = vpop.f32.mrf.mxu0  ;;  %v4676_v1 = vadd.f32 %v4396_v58, %v8696_v15 }
 0x350   : > { %v4351_v42 = vadd.f32 %v4350_v23, %v9499_v7  ;;  %v4402_v41 = vadd.f32 %v4401_v56, %v9499_v7  ;;  %v4706_v47 = vadd.f32 %v4349_v2, %v8735_v51  ;;  %v4677_v32 = vadd.f32 %v4398_v10, %v8711_v55 }
 0x351   : > { %v4352_v14 = vpop.f32.mrf.mxu1  ;;  %v4403_v5 = vpop.f32.mrf.mxu0  ;;  %v4803_v6 = vmax.f32 %v4675_v57, 0.0  ;;  %v4802_v56 = vmax.f32 %v4674_v44, 0.0  ;;  %v4644_v57 = vadd.f32 %v4392_v16, %v8670_v4 }
 0x352   : > { %v4353_v36 = vadd.f32 %v4352_v14, %v8782_v9  ;;  %v4404_v0 = vadd.f32 %v4403_v5, %v9499_v7  ;;  %v4707_v12 = vadd.f32 %v4351_v42, %v8746_v43  ;;  %v4708_v8 = vadd.f32 %v4402_v41, %v8735_v51 }
 0x353   : > { %v4354_v22 = vpop.f32.mrf.mxu1  ;;  %v4405_v25 = vpop.f32.mrf.mxu0  ;;  %v4834_v49 = vmax.f32 %v4706_v47, 0.0  ;;  %v4805_v14 = vmax.f32 %v4677_v32, 0.0  ;;  %v4772_v47 = vmax.f32 %v4644_v57, 0.0 }
 0x354   : > { %v4738_v19 = vadd.f32 %v4353_v36, %v8763_v45  ;;  %v4355_v24 = vadd.f32 %v4354_v22, %v8782_v9  ;;  %v4406_v30 = vadd.f32 %v4405_v25, %v8782_v9  ;;  %v4709_v48 = vadd.f32 %v4404_v0, %v8746_v43 }
 0x355   : > { %v4407_v40 = vpop.f32.mrf.mxu0  ;;  %v4835_v31 = vmax.f32 %v4707_v12, 0.0  ;;  %v4836_v10 = vmax.f32 %v4708_v8, 0.0  ;;  %v4900_v0 = vpack.c.bf16 %v4803_v6, %v4771_v37  ;;  %v4770_v22 = vmax.f32 %v4642_v53, 0.0 }
 0x356   : > { %v4739_v38 = vadd.f32 %v4355_v24, %v8776_v3  ;;  %v4740_v63 = vadd.f32 %v4406_v30, %v8763_v45  ;;  %v4866_v20 = vmax.f32 %v4738_v19, 0.0  ;;  %v4408_v33 = vadd.f32 %v4407_v40, %v8782_v9 }
 0x357   : > { %v4837_v46 = vmax.f32 %v4709_v48, 0.0  ;;  %v4773_v25 = vmax.f32 %v4645_v62, 0.0  ;;  %v4804_v19 = vmax.f32 %v4676_v1, 0.0  ;;  %v4899_v26 = vpack.c.bf16 %v4802_v56, %v4770_v22 }
 0x358   : > { %v4867_v13 = vmax.f32 %v4739_v38, 0.0  ;;  %v4741_v23 = vadd.f32 %v4408_v33, %v8776_v3  ;;  %v4868_v2 = vmax.f32 %v4740_v63, 0.0  ;;  %v4931_v5 = vpack.c.bf16 %v4866_v20, %v4834_v49 }
 0x359   : > { %v4902_v39 = vpack.c.bf16 %v4805_v14, %v4773_v25  ;;  %v4901_v16 = vpack.c.bf16 %v4804_v19, %v4772_v47 }
 0x35a   : > { %v4932_v42 = vpack.c.bf16 %v4867_v13, %v4835_v31  ;;  %v4869_v36 = vmax.f32 %v4741_v23, 0.0  ;;  %v4933_v24 = vpack.c.bf16 %v4868_v2, %v4836_v10 }
 0x35c   : > { %5368 = vmatprep.subr.bf16.mxu1 %v4932_v42  ;;  %v4934_v12 = vpack.c.bf16 %v4869_v36, %v4837_v46 }
 0x35d   : > { %5369 = vmatpush1.bf16.msra.mxu1 %v4931_v5 }
 0x35e   : > { %5370 = vmatprep.subr.bf16.mxu1 %v4900_v0  ;;  %5409 = vmatprep.subr.bf16.mxu0 %v4934_v12 }
 0x35f   : > { %v4444_v41 = vpop.f32.mrf.mxu1  ;;  %5410 = vmatpush1.bf16.msra.mxu0 %v4933_v24 }
 0x360   : > { %5411 = vmatprep.subr.bf16.mxu0 %v4902_v39  ;;  %v4445_v62 = vadd.f32 %v4444_v41, %v9498_v11 }
 0x361   : > { %v4446_v30 = vpop.f32.mrf.mxu1  ;;  %5371 = vmatpush1.bf16.msra.mxu1 %v4899_v26 }
 0x362   : > { %v4447_v33 = vadd.f32 %v4446_v30, %v9498_v11  ;;  %v4646_v41 = vadd.f32 %v4445_v62, %v8670_v4 }
 0x363   : > { %v4448_v40 = vpop.f32.mrf.mxu1  ;;  %5412 = vmatpush1.bf16.msra.mxu0 %v4901_v16 }
 0x364   : > { %v4497_v58 = vpop.f32.mrf.mxu0  ;;  %6386 = vmatmul.mubr.msk.bf16.vlgmr.msra.gmra.mxu1 %vm1888_vm2, %v8928_v27  ;;  %v4449_v8 = vadd.f32 %v4448_v40, %v8800_v29  ;;  %v4647_v14 = vadd.f32 %v4447_v33, %v8677_v50 }
 0x365   : > { %v4450_v44 = vpop.f32.mrf.mxu1  ;;  %5470 = vmatprep.mubr.bf16.mxu1 %v9459_v34 }
 0x366   : > { %v4499_v38 = vpop.f32.mrf.mxu0  ;;  %v4451_v32 = vadd.f32 %v4450_v44, %v8800_v29  ;;  %6387 = vmatmul.mubr.msk.bf16.vlgmr.msra.gmra.mxu0 %vm1888_vm2, %v8928_v27  ;;  %v4678_v46 = vadd.f32 %v4449_v8, %v8696_v15  ;;  %v4775_v26 = vmax.f32 %v4647_v14, 0.0  ;;  %v4498_v8 = vadd.f32 %v4497_v58, %v9498_v11 }
 0x367   : > { %v4454_v53 = vpop.f32.mrf.mxu1  ;;  %5511 = vmatprep.mubr.bf16.mxu0 %v9459_v34  ;;  %v4500_v39 = vadd.f32 %v4499_v38, %v9498_v11 }
 0x368   : > { %v4501_v20 = vpop.f32.mrf.mxu0  ;;  %v4455_v6 = vadd.f32 %v4454_v53, %v9499_v7  ;;  %v4679_v23 = vadd.f32 %v4451_v32, %v8711_v55  ;;  %v4806_v16 = vmax.f32 %v4678_v46, 0.0  ;;  %v4648_v58 = vadd.f32 %v4498_v8, %v8670_v4 }
 0x369   : > { %v4456_v63 = vpop.f32.mrf.mxu1  ;;  %v4502_v44 = vadd.f32 %v4501_v20, %v8800_v29  ;;  %v4649_v20 = vadd.f32 %v4500_v39, %v8677_v50 }
 0x36a   : > { %v4457_v48 = vadd.f32 %v4456_v63, %v9499_v7  ;;  %v4503_v13 = vpop.f32.mrf.mxu0  ;;  %v4710_v5 = vadd.f32 %v4455_v6, %v8735_v51  ;;  %v4807_v25 = vmax.f32 %v4679_v23, 0.0 }
 0x36b   : > { %v4458_v31 = vpop.f32.mrf.mxu1  ;;  %v4504_v36 = vadd.f32 %v4503_v13, %v8800_v29 }
 0x36c   : > { %v4459_v37 = vadd.f32 %v4458_v31, %v8782_v9  ;;  %v4711_v56 = vadd.f32 %v4457_v48, %v8746_v43  ;;  %v4507_v1 = vpop.f32.mrf.mxu0  ;;  %v4838_v47 = vmax.f32 %v4710_v5, 0.0  ;;  %v4904_v13 = vpack.c.bf16 %v4807_v25, %v4775_v26  ;;  %v9188_v26 = vld [vmem:[%s9409_s10] sm:$0xf] }
 0x36d   : > { %v4460_v49 = vpop.f32.mrf.mxu1  ;;  %v4508_v19 = vadd.f32 %v4507_v1, %v9499_v7  ;;  %v4681_v53 = vadd.f32 %v4504_v36, %v8711_v55  ;;  %v4777_v5 = vmax.f32 %v4649_v20, 0.0 }
 0x36e   : > { %v4742_v2 = vadd.f32 %v4459_v37, %v8763_v45  ;;  %v4461_v42 = vadd.f32 %v4460_v49, %v8782_v9  ;;  %v4509_v57 = vpop.f32.mrf.mxu0  ;;  %v4839_v12 = vmax.f32 %v4711_v56, 0.0  ;;  %v4774_v37 = vmax.f32 %v4646_v41, 0.0 }
 0x36f   : > { %v4510_v22 = vadd.f32 %v4509_v57, %v9499_v7  ;;  %v4712_v38 = vadd.f32 %v4508_v19, %v8735_v51  ;;  %v4680_v49 = vadd.f32 %v4502_v44, %v8696_v15  ;;  %v4809_v1 = vmax.f32 %v4681_v53, 0.0 }
 0x370   : > { %v4743_v10 = vadd.f32 %v4461_v42, %v8776_v3  ;;  %v4870_v0 = vmax.f32 %v4742_v2, 0.0  ;;  %v4511_v30 = vpop.f32.mrf.mxu0  ;;  %v4903_v56 = vpack.c.bf16 %v4806_v16, %v4774_v37  ;;  %v4776_v41 = vmax.f32 %v4648_v58, 0.0 }
 0x371   : > { %v4512_v40 = vadd.f32 %v4511_v30, %v8782_v9  ;;  %v4713_v33 = vadd.f32 %v4510_v22, %v8746_v43  ;;  %v4840_v14 = vmax.f32 %v4712_v38, 0.0  ;;  %v4808_v36 = vmax.f32 %v4680_v49, 0.0 }
 0x372   : > { %v4871_v24 = vmax.f32 %v4743_v10, 0.0  ;;  %v4513_v63 = vpop.f32.mrf.mxu0  ;;  %v4935_v48 = vpack.c.bf16 %v4870_v0, %v4838_v47  ;;  %v4906_v10 = vpack.c.bf16 %v4809_v1, %v4777_v5 }
 0x373   : > { %v4744_v6 = vadd.f32 %v4512_v40, %v8763_v45  ;;  %v4514_v31 = vadd.f32 %v4513_v63, %v8782_v9  ;;  %v4841_v2 = vmax.f32 %v4713_v33, 0.0  ;;  %v4905_v22 = vpack.c.bf16 %v4808_v36, %v4776_v41 }
 0x374   : > { %v4936_v32 = vpack.c.bf16 %v4871_v24, %v4839_v12 }
 0x375   : > { %v4745_v62 = vadd.f32 %v4514_v31, %v8776_v3  ;;  %v4872_v23 = vmax.f32 %v4744_v6, 0.0 }
 0x376   : > { %5450 = vmatprep.subr.bf16.mxu1 %v4936_v32 }
 0x377   : > { %5451 = vmatpush1.bf16.msra.mxu1 %v4935_v48  ;;  %v4873_v42 = vmax.f32 %v4745_v62, 0.0  ;;  %v4937_v57 = vpack.c.bf16 %v4872_v23, %v4840_v14 }
 0x378   : > { %5452 = vmatprep.subr.bf16.mxu1 %v4904_v13 }
 0x379   : > { %v4938_v46 = vpack.c.bf16 %v4873_v42, %v4841_v2 }
 0x37b   : > { %5453 = vmatpush1.bf16.msra.mxu1 %v4903_v56  ;;  %5491 = vmatprep.subr.bf16.mxu0 %v4938_v46 }
 0x37c   : > { %v4550_v0 = vpop.f32.mrf.mxu1  ;;  %5492 = vmatpush1.bf16.msra.mxu0 %v4937_v57 }
 0x37d   : > { %5493 = vmatprep.subr.bf16.mxu0 %v4906_v10  ;;  %v4551_v16 = vadd.f32 %v4550_v0, %v9498_v11 }
 0x37e   : > { %6388 = vmatmul.mubr.msk.bf16.vlgmr.msra.gmra.mxu1 %vm1888_vm2, %v8928_v27  ;;  %v4552_v25 = vpop.f32.mrf.mxu1 }
 0x37f   : > { %5552 = vmatprep.mubr.bf16.mxu1 %v9459_v34  ;;  %v4553_v44 = vadd.f32 %v4552_v25, %v9498_v11  ;;  %v4650_v13 = vadd.f32 %v4551_v16, %v8670_v4 }
 0x380   : > { %v4603_v12 = vpop.f32.mrf.mxu0  ;;  %v4554_v19 = vpop.f32.mrf.mxu1  ;;  %5494 = vmatpush1.bf16.msra.mxu0 %v4905_v22 }
 0x381   : > { %v4555_v31 = vadd.f32 %v4554_v19, %v8800_v29  ;;  %v4651_v37 = vadd.f32 %v4553_v44, %v8677_v50  ;;  %v4604_v42 = vadd.f32 %v4603_v12, %v9498_v11 }
 0x382   : > { %v4605_v24 = vpop.f32.mrf.mxu0  ;;  %v4556_v30 = vpop.f32.mrf.mxu1 }
 0x383   : > { %6389 = vmatmul.mubr.msk.bf16.vlgmr.msra.gmra.mxu0 %vm1888_vm2, %v9188_v26  ;;  %v4557_v53 = vadd.f32 %v4556_v30, %v8800_v29  ;;  %v4606_v58 = vadd.f32 %v4605_v24, %v9498_v11  ;;  %v4682_v46 = vadd.f32 %v4555_v31, %v8696_v15  ;;  %v4779_v30 = vmax.f32 %v4651_v37, 0.0 }
 0x384   : > { %v4607_v39 = vpop.f32.mrf.mxu0  ;;  %v4560_v27 = vpop.f32.mrf.mxu1  ;;  %5593 = vmatprep.mubr.bf16.mxu0 %v9459_v34 }
 0x385   : > { %v4561_v33 = vadd.f32 %v4560_v27, %v9499_v7  ;;  %v4683_v20 = vadd.f32 %v4557_v53, %v8711_v55  ;;  %v4608_v36 = vadd.f32 %v4607_v39, %v8800_v29  ;;  %v4810_v27 = vmax.f32 %v4682_v46, 0.0 }
 0x386   : > { %v4609_v47 = vpop.f32.mrf.mxu0  ;;  %v4562_v40 = vpop.f32.mrf.mxu1  ;;  %v4652_v53 = vadd.f32 %v4604_v42, %v8670_v4 }
 0x387   : > { %v4563_v63 = vadd.f32 %v4562_v40, %v9499_v7  ;;  %v4610_v34 = vadd.f32 %v4609_v47, %v8800_v29  ;;  %v4714_v14 = vadd.f32 %v4561_v33, %v8735_v51  ;;  %v4811_v25 = vmax.f32 %v4683_v20, 0.0 }
 0x388   : > { %v4613_v32 = vpop.f32.mrf.mxu0  ;;  %v4564_v48 = vpop.f32.mrf.mxu1  ;;  %v4653_v29 = vadd.f32 %v4606_v58, %v8677_v50  ;;  %v4684_v47 = vadd.f32 %v4608_v36, %v8696_v15  ;;  %v4780_v31 = vmax.f32 %v4652_v53, 0.0 }
 0x389   : > { %v4565_v6 = vadd.f32 %v4564_v48, %v8782_v9  ;;  %v4715_v49 = vadd.f32 %v4563_v63, %v8746_v43  ;;  %v4614_v23 = vadd.f32 %v4613_v32, %v9499_v7  ;;  %v4685_v57 = vadd.f32 %v4610_v34, %v8711_v55 }
 0x38a   : > { %v4615_v8 = vpop.f32.mrf.mxu0  ;;  %v4566_v38 = vpop.f32.mrf.mxu1  ;;  %v4842_v39 = vmax.f32 %v4714_v14, 0.0  ;;  %v4778_v32 = vmax.f32 %v4650_v13, 0.0  ;;  %v4781_v48 = vmax.f32 %v4653_v29, 0.0  ;;  %v4812_v33 = vmax.f32 %v4684_v47, 0.0 }
 0x38b   : > { %v4746_v62 = vadd.f32 %v4565_v6, %v8763_v45  ;;  %v4616_v56 = vadd.f32 %v4615_v8, %v9499_v7  ;;  %v4567_v1 = vadd.f32 %v4566_v38, %v8782_v9  ;;  %v4843_v12 = vmax.f32 %v4715_v49, 0.0  ;;  %v9230_v38 = vpop.permute.xlu1 %5605 }
 0x38c   : > { %v4617_v2 = vpop.f32.mrf.mxu0  ;;  %v4716_v19 = vadd.f32 %v4614_v23, %v8735_v51  ;;  %v4813_v16 = vmax.f32 %v4685_v57, 0.0  ;;  %v4908_v51 = vpack.c.bf16 %v4811_v25, %v4779_v30  ;;  %v4907_v6 = vpack.c.bf16 %v4810_v27, %v4778_v32 }
 0x38d   : > { %v4618_v5 = vadd.f32 %v4617_v2, %v8782_v9  ;;  %v4747_v10 = vadd.f32 %v4567_v1, %v8776_v3  ;;  %v4874_v41 = vmax.f32 %v4746_v62, 0.0  ;;  %v4717_v0 = vadd.f32 %v4616_v56, %v8746_v43 }
 0x38e   : > { %v4619_v7 = vpop.f32.mrf.mxu0  ;;  %v4844_v63 = vmax.f32 %v4716_v19, 0.0  ;;  %v4910_v15 = vpack.c.bf16 %v4813_v16, %v4781_v48  ;;  %v4909_v34 = vpack.c.bf16 %v4812_v33, %v4780_v31 }
 0x38f   : > { %v4748_v22 = vadd.f32 %v4618_v5, %v8763_v45  ;;  %v4620_v11 = vadd.f32 %v4619_v7, %v8782_v9  ;;  %v4875_v24 = vmax.f32 %v4747_v10, 0.0  ;;  %v4939_v45 = vpack.c.bf16 %v4874_v41, %v4842_v39 }
 0x390   : > { %v4845_v44 = vmax.f32 %v4717_v0, 0.0 }
 0x391   : > { %v4749_v55 = vadd.f32 %v4620_v11, %v8776_v3  ;;  %v4876_v40 = vmax.f32 %v4748_v22, 0.0  ;;  %v4940_v43 = vpack.c.bf16 %v4875_v24, %v4843_v12 }
 0x393   : > { %v4877_v9 = vmax.f32 %v4749_v55, 0.0  ;;  %5532 = vmatprep.subr.bf16.mxu1 %v4940_v43  ;;  %v4941_v3 = vpack.c.bf16 %v4876_v40, %v4844_v63 }
 0x394   : > { %5533 = vmatpush1.bf16.msra.mxu1 %v4939_v45 }
 0x395   : > { %v4942_v50 = vpack.c.bf16 %v4877_v9, %v4845_v44  ;;  %5534 = vmatprep.subr.bf16.mxu1 %v4908_v51 }
 0x397   : > { %5573 = vmatprep.subr.bf16.mxu0 %v4942_v50 }
 0x398   : > { %5574 = vmatpush1.bf16.msra.mxu0 %v4941_v3  ;;  %5535 = vmatpush1.bf16.msra.mxu1 %v4907_v6 }
 0x399   : > { %5575 = vmatprep.subr.bf16.mxu0 %v4910_v15 }
 0x39b   : > { %6390 = vmatmul.mubr.msk.bf16.vlgmr.msra.gmra.mxu1 %vm1888_vm2, %v9188_v26 }
 0x39c   : > { %5576 = vmatpush1.bf16.msra.mxu0 %v4909_v34 }
 0x39f   : > { %6391 = vmatmul.mubr.msk.bf16.vlgmr.msra.gmra.mxu0 %vm1888_vm2, %v9188_v26 }
 0x3ae   : > { %v4980_v4 = vpop.f32.mrf.mxu1 }
 0x3af   : > { %v4981_v8 = vadd.f32 %v4980_v4, %v8679_v17 }
 0x3b0   : > { %v4982_v13 = vpop.f32.mrf.mxu1 }
 0x3b1   : > { %v5608_v37 = vadd.f32 %v9230_v38, %v4981_v8  ;;  %v4983_v20 = vadd.f32 %v4982_v13, %v8690_v61 }
 0x3b2   : > { %v4984_v62 = vpop.f32.mrf.mxu1  ;;  %v5021_v56 = vpop.f32.mrf.mxu0 }
 0x3b3   : > { %v5640_v49 = vsub.f32 0.0, %v5608_v37  ;;  %v5609_v23 = vadd.f32 %v9230_v38, %v4983_v20  ;;  %v5022_v26 = vadd.f32 %v5021_v56, %v8679_v17  ;;  %v9511_v37 = vld [vmem:[#allocation13_spill] sm:$0xff] }
 0x3b4   : > { %v4985_v1 = vpop.f32.mrf.mxu1  ;;  %v5023_v58 = vpop.f32.mrf.mxu0  ;;  %v9248_v20 = vsub.s32 0, %v9511_v37  ;;  %v9512_v62 = vld [vmem:[#allocation17_spill] sm:$0xff] }
 0x3b5   : > { %v5672_v2 = vmul.f32 1.442695, %v5640_v49  ;;  %v5641_v42 = vsub.f32 0.0, %v5609_v23  ;;  %v5610_v5 = vadd.f32 %v9230_v38, %v5022_v26  ;;  %v5024_v46 = vadd.f32 %v5023_v58, %v8690_v61  ;;  %v9514_v1 = vld [vmem:[#allocation18_spill] sm:$0xff] }
 0x3b6   : > { %v5025_v36 = vpop.f32.mrf.mxu0  ;;  %v9513_v49 = vsub.f32 1.0, %v9512_v62  ;;  %v9518_v62 = vld [vmem:[#allocation21_spill] sm:$0xff] }
 0x3b7   : > { %6659 = vpow2.f32 %v5672_v2  ;;  %v5674_v14 = vmul.f32 1.442695, %v5641_v42  ;;  %v5642_v57 = vsub.f32 0.0, %v5610_v5  ;;  %v5611_v10 = vadd.f32 %v9230_v38, %v5024_v46  ;;  %v9516_v36 = vld [vmem:[#allocation19_spill] sm:$0xff] }
 0x3b8   : > { %v5026_v7 = vpop.f32.mrf.mxu0  ;;  %v5803_v23 = vrot.slane %v9513_v49, %v9248_v20  ;;  %v9515_v2 = vsub.f32 1.0, %v9514_v1  ;;  %v5841_v49 = vrot.slane %v9518_v62, %v9248_v20  ;;  %v9519_v1 = vld [vmem:[#allocation22_spill] sm:$0xff] }
 0x3b9   : > { %6661 = vpow2.f32 %v5674_v14  ;;  %v5676_v41 = vmul.f32 1.442695, %v5642_v57  ;;  %v5643_v0 = vsub.f32 0.0, %v5611_v10  ;;  %v5821_v57 = vrot.slane %v9516_v36, %v9248_v20  ;;  %v9521_v36 = vld [vmem:[#allocation24_spill] sm:$0xff] }
 0x3ba   : > { %v5807_v42 = vrot.slane %v9515_v2, %v9248_v20  ;;  %v5845_v2 = vrot.slane %v9519_v1, %v9248_v20 }
 0x3bb   : > { %6663 = vpow2.f32 %v5676_v41  ;;  %v5678_v22 = vmul.f32 1.442695, %v5643_v0  ;;  %v9517_v0 = vld [vmem:[#allocation20_spill] sm:$0xff] }
 0x3bd   : > { %6665 = vpow2.f32 %v5678_v22  ;;  %v5825_v22 = vrot.slane %v9517_v0, %v9248_v20 }
 0x3c0   : > { %v5062_v11 = vpop.f32.mrf.mxu1 }
 0x3c1   : > { %v5063_v25 = vadd.f32 %v5062_v11, %v8679_v17 }
 0x3c2   : > { %v5064_v19 = vpop.f32.mrf.mxu1  ;;  %v5103_v24 = vpop.f32.mrf.mxu0 }
 0x3c3   : > { %v5612_v29 = vadd.f32 %v9230_v38, %v5063_v25  ;;  %v5065_v39 = vadd.f32 %v5064_v19, %v8690_v61  ;;  %v5104_v55 = vadd.f32 %v5103_v24, %v8679_v17 }
 0x3c4   : > { %v6660_v12 = vpop.eup %6659  ;;  %v5105_v47 = vpop.f32.mrf.mxu0 }
 0x3c5   : > { %v5736_v30 = vadd.f32 1.0, %v6660_v12  ;;  %v5066_v40 = vpop.f32.mrf.mxu1  ;;  %v5644_v16 = vsub.f32 0.0, %v5612_v29  ;;  %v5613_v45 = vadd.f32 %v9230_v38, %v5065_v39  ;;  %v5614_v44 = vadd.f32 %v9230_v38, %v5104_v55 }
 0x3c6   : > { %v6662_v27 = vpop.eup %6661  ;;  %v5106_v9 = vadd.f32 %v5105_v47, %v8690_v61  ;;  %v5107_v63 = vpop.f32.mrf.mxu0 }
 0x3c7   : > { %6667 = vrcp.f32 %v5736_v30  ;;  %v5737_v43 = vadd.f32 1.0, %v6662_v27  ;;  %v5067_v53 = vpop.f32.mrf.mxu1  ;;  %v5680_v51 = vmul.f32 1.442695, %v5644_v16  ;;  %v5645_v32 = vsub.f32 0.0, %v5613_v45 }
 0x3c8   : > { %v6664_v48 = vpop.eup %6663  ;;  %v5646_v50 = vsub.f32 0.0, %v5614_v44  ;;  %v5615_v33 = vadd.f32 %v9230_v38, %v5106_v9  ;;  %v5108_v3 = vpop.f32.mrf.mxu0 }
 0x3c9   : > { %6669 = vrcp.f32 %v5737_v43  ;;  %v5738_v6 = vadd.f32 1.0, %v6664_v48  ;;  %v5682_v15 = vmul.f32 1.442695, %v5645_v32 }
 0x3ca   : > { %6671 = vpow2.f32 %v5680_v51  ;;  %v6666_v31 = vpop.eup %6665  ;;  %v5684_v34 = vmul.f32 1.442695, %v5646_v50  ;;  %v5647_v4 = vsub.f32 0.0, %v5615_v33 }
 0x3cb   : > { %6673 = vrcp.f32 %v5738_v6  ;;  %v5739_v8 = vadd.f32 1.0, %v6666_v31 }
 0x3cc   : > { %6675 = vpow2.f32 %v5682_v15  ;;  %v5686_v13 = vmul.f32 1.442695, %v5647_v4 }
 0x3cd   : > { %6677 = vrcp.f32 %v5739_v8 }
 0x3ce   : > { %6679 = vpow2.f32 %v5684_v34 }
 0x3cf   : > { %6681 = vpow2.f32 %v5686_v13 }
 0x3d3   : > { %v5144_v46 = vpop.f32.mrf.mxu1 }
 0x3d4   : > { %v6668_v56 = vpop.eup %6667  ;;  %v5145_v7 = vadd.f32 %v5144_v46, %v8679_v17 }
 0x3d5   : > { %v5808_v26 = vmul.f32 %v6668_v56, %v5803_v23  ;;  %v5146_v11 = vpop.f32.mrf.mxu1 }
 0x3d6   : > { %v6670_v58 = vpop.eup %6669  ;;  %v5616_v19 = vadd.f32 %v9230_v38, %v5145_v7  ;;  %v5147_v24 = vadd.f32 %v5146_v11, %v8690_v61 }
 0x3d7   : > { %v5809_v14 = vmul.f32 %v6670_v58, %v5807_v42  ;;  %v6672_v5 = vpop.eup %6671  ;;  %v5185_v30 = vpop.f32.mrf.mxu0  ;;  %v9520_v58 = vld [vmem:[#allocation23_spill] sm:$0xff] }
 0x3d8   : > { %v5740_v10 = vadd.f32 1.0, %v6672_v5  ;;  %v6674_v41 = vpop.eup %6673  ;;  %v5186_v55 = vadd.f32 %v5185_v30, %v8679_v17  ;;  %v5148_v27 = vpop.f32.mrf.mxu1  ;;  %v5648_v16 = vsub.f32 0.0, %v5616_v19  ;;  %v5617_v45 = vadd.f32 %v9230_v38, %v5147_v24 }
 0x3d9   : > { %v6676_v25 = vpop.eup %6675  ;;  %v5826_v12 = vmul.f32 %v6674_v41, %v5821_v57  ;;  %v5187_v44 = vpop.f32.mrf.mxu0  ;;  %v5865_v57 = vrot.slane %v9521_v36, %v9248_v20 }
 0x3da   : > { %6683 = vrcp.f32 %v5740_v10  ;;  %v6678_v29 = vpop.eup %6677  ;;  %v5741_v39 = vadd.f32 1.0, %v6676_v25  ;;  %v5618_v63 = vadd.f32 %v9230_v38, %v5186_v55  ;;  %v5188_v51 = vadd.f32 %v5187_v44, %v8690_v61  ;;  %v5149_v32 = vpop.f32.mrf.mxu1 }
 0x3db   : > { %v6680_v47 = vpop.eup %6679  ;;  %v5828_v40 = vadd.f32 %v5826_v12, %v5808_v26  ;;  %v5827_v43 = vmul.f32 %v6678_v29, %v5825_v22  ;;  %v5688_v33 = vmul.f32 1.442695, %v5648_v16  ;;  %v5649_v3 = vsub.f32 0.0, %v5617_v45  ;;  %v5189_v6 = vpop.f32.mrf.mxu0 }
 0x3dc   : > { %v6682_v9 = vpop.eup %6681  ;;  %6685 = vrcp.f32 %v5741_v39  ;;  %v5742_v53 = vadd.f32 1.0, %v6680_v47  ;;  %v5650_v15 = vsub.f32 0.0, %v5618_v63  ;;  %v5619_v31 = vadd.f32 %v9230_v38, %v5188_v51 }
 0x3dd   : > { %v5829_v48 = vadd.f32 %v5827_v43, %v5809_v14  ;;  %v5743_v50 = vadd.f32 1.0, %v6682_v9  ;;  %v5690_v34 = vmul.f32 1.442695, %v5649_v3  ;;  %v5190_v4 = vpop.f32.mrf.mxu0  ;;  %v5861_v14 = vrot.slane %v9520_v58, %v9248_v20 }
 0x3de   : > { %6687 = vrcp.f32 %v5742_v53  ;;  %v5692_v8 = vmul.f32 1.442695, %v5650_v15  ;;  %v5651_v13 = vsub.f32 0.0, %v5619_v31  ;;  %v9522_v4 = vld [vmem:[#allocation25_spill] sm:$0xff] }
 0x3df   : > { %6689 = vrcp.f32 %v5743_v50 }
 0x3e0   : > { %6691 = vpow2.f32 %v5688_v33  ;;  %v5694_v37 = vmul.f32 1.442695, %v5651_v13 }
 0x3e1   : > { %6693 = vpow2.f32 %v5690_v34 }
 0x3e2   : > { %6695 = vpow2.f32 %v5692_v8  ;;  %v5881_v8 = vrot.slane %v9522_v4, %v9248_v20 }
 0x3e3   : > { %6697 = vpow2.f32 %v5694_v37 }
 0x3e7   : > { %v6684_v23 = vpop.eup %6683 }
 0x3e8   : > { %v5846_v56 = vmul.f32 %v6684_v23, %v5841_v49  ;;  %v9523_v49 = vld [vmem:[#allocation26_spill] sm:$0xff] }
 0x3e9   : > { %v6686_v42 = vpop.eup %6685  ;;  %v5885_v23 = vrot.slane %v9523_v49, %v9248_v20 }
 0x3ea   : > { %v5848_v26 = vadd.f32 %v5846_v56, %v5828_v40  ;;  %v5847_v5 = vmul.f32 %v6686_v42, %v5845_v2  ;;  %v9524_v2 = vld [vmem:[#allocation27_spill] sm:$0xff] }
 0x3eb   : > { %v6688_v46 = vpop.eup %6687  ;;  %v5901_v42 = vrot.slane %v9524_v2, %v9248_v20 }
 0x3ec   : > { %v6690_v10 = vpop.eup %6689  ;;  %v5849_v7 = vadd.f32 %v5847_v5, %v5829_v48  ;;  %v5866_v41 = vmul.f32 %v6688_v46, %v5861_v14  ;;  %v9525_v46 = vld [vmem:[#allocation28_spill] sm:$0xff] }
 0x3ed   : > { %v6692_v0 = vpop.eup %6691  ;;  %v5867_v22 = vmul.f32 %v6690_v10, %v5865_v57  ;;  %v5905_v36 = vrot.slane %v9525_v46, %v9248_v20 }
 0x3ee   : > { %v6694_v11 = vpop.eup %6693  ;;  %v5868_v25 = vadd.f32 %v5866_v41, %v5848_v26  ;;  %v5744_v12 = vadd.f32 1.0, %v6692_v0 }
 0x3ef   : > { %v6696_v19 = vpop.eup %6695  ;;  %v5869_v24 = vadd.f32 %v5867_v22, %v5849_v7  ;;  %v5745_v30 = vadd.f32 1.0, %v6694_v11 }
 0x3f0   : > { %6699 = vrcp.f32 %v5744_v12  ;;  %v5746_v29 = vadd.f32 1.0, %v6696_v19  ;;  %v6698_v39 = vpop.eup %6697 }
 0x3f1   : > { %6701 = vrcp.f32 %v5745_v30  ;;  %v5747_v55 = vadd.f32 1.0, %v6698_v39 }
 0x3f2   : > { %6703 = vrcp.f32 %v5746_v29  ;;  %v5226_v27 = vpop.f32.mrf.mxu1 }
 0x3f3   : > { %6705 = vrcp.f32 %v5747_v55  ;;  %v5227_v47 = vadd.f32 %v5226_v27, %v8679_v17  ;;  %v5267_v40 = vpop.f32.mrf.mxu0 }
 0x3f4   : > { %v5228_v43 = vpop.f32.mrf.mxu1  ;;  %v5268_v16 = vadd.f32 %v5267_v40, %v8679_v17 }
 0x3f5   : > { %v5620_v45 = vadd.f32 %v9230_v38, %v5227_v47  ;;  %v5229_v44 = vadd.f32 %v5228_v43, %v8690_v61  ;;  %v5269_v9 = vpop.f32.mrf.mxu0 }
 0x3f6   : > { %v5622_v53 = vadd.f32 %v9230_v38, %v5268_v16  ;;  %v5270_v63 = vadd.f32 %v5269_v9, %v8690_v61  ;;  %v5230_v51 = vpop.f32.mrf.mxu1 }
 0x3f7   : > { %v5652_v32 = vsub.f32 0.0, %v5620_v45  ;;  %v5621_v48 = vadd.f32 %v9230_v38, %v5229_v44  ;;  %v5271_v50 = vpop.f32.mrf.mxu0 }
 0x3f8   : > { %v5654_v33 = vsub.f32 0.0, %v5622_v53  ;;  %v5623_v3 = vadd.f32 %v9230_v38, %v5270_v63  ;;  %v5231_v6 = vpop.f32.mrf.mxu1 }
 0x3f9   : > { %v5696_v15 = vmul.f32 1.442695, %v5652_v32  ;;  %v5653_v31 = vsub.f32 0.0, %v5621_v48  ;;  %v5272_v34 = vpop.f32.mrf.mxu0 }
 0x3fa   : > { %v5700_v13 = vmul.f32 1.442695, %v5654_v33  ;;  %v5655_v37 = vsub.f32 0.0, %v5623_v3 }
 0x3fb   : > { %6707 = vpow2.f32 %v5696_v15  ;;  %v5698_v56 = vmul.f32 1.442695, %v5653_v31 }
 0x3fc   : > { %6709 = vpow2.f32 %v5700_v13  ;;  %v5702_v58 = vmul.f32 1.442695, %v5655_v37  ;;  %v9526_v37 = vld [vmem:[#allocation30_spill] sm:$0xff] }
 0x3fd   : > { %v6700_v62 = vpop.eup %6699  ;;  %6711 = vpow2.f32 %v5698_v56  ;;  %v9527_v56 = vld [vmem:[#allocation32_spill] sm:$0xff] }
 0x3fe   : > { %v6702_v1 = vpop.eup %6701  ;;  %v5886_v26 = vmul.f32 %v6700_v62, %v5881_v8  ;;  %6713 = vpow2.f32 %v5702_v58  ;;  %v5921_v62 = vrot.slane %v9526_v37, %v9248_v20  ;;  %v9530_v37 = vld [vmem:[#allocation29_spill] sm:$0xff] }
 0x3ff   : > { %v6704_v14 = vpop.eup %6703  ;;  %v5887_v5 = vmul.f32 %v6702_v1, %v5885_v23  ;;  %v5941_v1 = vrot.slane %v9527_v56, %v9248_v20  ;;  %v9531_v56 = vld [vmem:[#allocation37_spill] sm:$0xff] }
 0x400   : > { %v5888_v57 = vadd.f32 %v5886_v26, %v5868_v25  ;;  %v5906_v10 = vmul.f32 %v6704_v14, %v5901_v42  ;;  %v6706_v7 = vpop.eup %6705  ;;  %v9528_v42 = vld [vmem:[#allocation31_spill] sm:$0xff] }
 0x401   : > { %v5889_v41 = vadd.f32 %v5887_v5, %v5869_v24  ;;  %v5907_v22 = vmul.f32 %v6706_v7, %v5905_v36  ;;  %v5925_v26 = vrot.slane %v9528_v42, %v9248_v20  ;;  %v9529_v5 = vld [vmem:[#allocation33_spill] sm:$0xff] }
 0x402   : > { %v5908_v0 = vadd.f32 %v5906_v10, %v5888_v57  ;;  %v5945_v46 = vrot.slane %v9529_v5, %v9248_v20 }
 0x403   : > { %v5909_v11 = vadd.f32 %v5907_v22, %v5889_v41 }
 0x408   : > { %v6708_v12 = vpop.eup %6707 }
 0x409   : > { %v6710_v19 = vpop.eup %6709  ;;  %v5748_v30 = vadd.f32 1.0, %v6708_v12 }
 0x40a   : > { %v6712_v29 = vpop.eup %6711  ;;  %v5750_v39 = vadd.f32 1.0, %v6710_v19 }
 0x40b   : > { %v6714_v55 = vpop.eup %6713  ;;  %6715 = vrcp.f32 %v5748_v30  ;;  %v5749_v27 = vadd.f32 1.0, %v6712_v29  ;;  %v5308_v47 = vpop.f32.mrf.mxu1 }
 0x40c   : > { %6717 = vrcp.f32 %v5750_v39  ;;  %v5751_v40 = vadd.f32 1.0, %v6714_v55  ;;  %v5309_v25 = vadd.f32 %v5308_v47, %v8679_v17 }
 0x40d   : > { %6719 = vrcp.f32 %v5749_v27  ;;  %v5310_v43 = vpop.f32.mrf.mxu1  ;;  %v5349_v45 = vpop.f32.mrf.mxu0 }
 0x40e   : > { %6721 = vrcp.f32 %v5751_v40  ;;  %v5624_v24 = vadd.f32 %v9230_v38, %v5309_v25  ;;  %v5311_v16 = vadd.f32 %v5310_v43, %v8690_v61  ;;  %v5350_v44 = vadd.f32 %v5349_v45, %v8679_v17 }
 0x40f   : > { %v5312_v9 = vpop.f32.mrf.mxu1  ;;  %v5351_v51 = vpop.f32.mrf.mxu0 }
 0x410   : > { %v5656_v53 = vsub.f32 0.0, %v5624_v24  ;;  %v5625_v63 = vadd.f32 %v9230_v38, %v5311_v16  ;;  %v5626_v32 = vadd.f32 %v9230_v38, %v5350_v44  ;;  %v5352_v48 = vadd.f32 %v5351_v51, %v8690_v61 }
 0x411   : > { %v5313_v50 = vpop.f32.mrf.mxu1  ;;  %v5353_v6 = vpop.f32.mrf.mxu0 }
 0x412   : > { %v5704_v33 = vmul.f32 1.442695, %v5656_v53  ;;  %v5657_v3 = vsub.f32 0.0, %v5625_v63  ;;  %v5658_v15 = vsub.f32 0.0, %v5626_v32  ;;  %v5627_v31 = vadd.f32 %v9230_v38, %v5352_v48 }
 0x413   : > { %v5354_v4 = vpop.f32.mrf.mxu0 }
 0x414   : > { %6723 = vpow2.f32 %v5704_v33  ;;  %v5706_v34 = vmul.f32 1.442695, %v5657_v3  ;;  %v5708_v8 = vmul.f32 1.442695, %v5658_v15  ;;  %v5659_v13 = vsub.f32 0.0, %v5627_v31 }
 0x416   : > { %6725 = vpow2.f32 %v5706_v34  ;;  %v5710_v49 = vmul.f32 1.442695, %v5659_v13 }
 0x417   : > { %6727 = vpow2.f32 %v5708_v8 }
 0x418   : > { %v6716_v23 = vpop.eup %6715  ;;  %6729 = vpow2.f32 %v5710_v49 }
 0x419   : > { %v6718_v2 = vpop.eup %6717  ;;  %v5926_v58 = vmul.f32 %v6716_v23, %v5921_v62  ;;  %v5961_v62 = vrot.slane %v9530_v37, %v9248_v20 }
 0x41a   : > { %v6720_v14 = vpop.eup %6719  ;;  %v5946_v36 = vmul.f32 %v6718_v2, %v5941_v1  ;;  %v5965_v1 = vrot.slane %v9531_v56, %v9248_v20  ;;  %v9534_v56 = vld [vmem:[#allocation16_spill] sm:$0xff] }
 0x41b   : > { %v6722_v57 = vpop.eup %6721  ;;  %v5928_v10 = vadd.f32 %v5926_v58, %v5908_v0  ;;  %v5927_v7 = vmul.f32 %v6720_v14, %v5925_v26  ;;  %v5981_v26 = vrot.slane %v8673_v60, %v9248_v20 }
 0x41c   : > { %v5947_v41 = vmul.f32 %v6722_v57, %v5945_v46  ;;  %v5985_v46 = vrot.slane %v8681_v35, %v9248_v20 }
 0x41d   : > { %v5929_v22 = vadd.f32 %v5927_v7, %v5909_v11  ;;  %v5948_v12 = vadd.f32 %v5946_v36, %v5928_v10 }
 0x41f   : > { %v5949_v19 = vadd.f32 %v5947_v41, %v5929_v22 }
 0x421   : > { %v6724_v30 = vpop.eup %6723 }
 0x422   : > { %v5752_v29 = vadd.f32 1.0, %v6724_v30 }
 0x423   : > { %v6726_v39 = vpop.eup %6725 }
 0x424   : > { %v6728_v55 = vpop.eup %6727  ;;  %6731 = vrcp.f32 %v5752_v29  ;;  %v5753_v27 = vadd.f32 1.0, %v6726_v39  ;;  %v5390_v47 = vpop.f32.mrf.mxu1 }
 0x425   : > { %v5754_v40 = vadd.f32 1.0, %v6728_v55  ;;  %v5391_v25 = vadd.f32 %v5390_v47, %v8679_v17  ;;  %v6730_v43 = vpop.eup %6729 }
 0x426   : > { %6733 = vrcp.f32 %v5753_v27  ;;  %v5392_v24 = vpop.f32.mrf.mxu1  ;;  %v5755_v0 = vadd.f32 1.0, %v6730_v43  ;;  %v5431_v45 = vpop.f32.mrf.mxu0 }
 0x427   : > { %6735 = vrcp.f32 %v5754_v40  ;;  %v5628_v16 = vadd.f32 %v9230_v38, %v5391_v25  ;;  %v5393_v11 = vadd.f32 %v5392_v24, %v8690_v61  ;;  %v5432_v44 = vadd.f32 %v5431_v45, %v8679_v17 }
 0x428   : > { %v5394_v9 = vpop.f32.mrf.mxu1  ;;  %6737 = vrcp.f32 %v5755_v0  ;;  %v5433_v51 = vpop.f32.mrf.mxu0 }
 0x429   : > { %v5660_v53 = vsub.f32 0.0, %v5628_v16  ;;  %v5629_v63 = vadd.f32 %v9230_v38, %v5393_v11  ;;  %v5630_v32 = vadd.f32 %v9230_v38, %v5432_v44  ;;  %v5434_v48 = vadd.f32 %v5433_v51, %v8690_v61 }
 0x42a   : > { %v5395_v50 = vpop.f32.mrf.mxu1  ;;  %v5435_v6 = vpop.f32.mrf.mxu0 }
 0x42b   : > { %v5712_v33 = vmul.f32 1.442695, %v5660_v53  ;;  %v5661_v3 = vsub.f32 0.0, %v5629_v63  ;;  %v5662_v15 = vsub.f32 0.0, %v5630_v32  ;;  %v5631_v31 = vadd.f32 %v9230_v38, %v5434_v48 }
 0x42c   : > { %v5436_v4 = vpop.f32.mrf.mxu0 }
 0x42d   : > { %6739 = vpow2.f32 %v5712_v33  ;;  %v5714_v34 = vmul.f32 1.442695, %v5661_v3  ;;  %v5716_v8 = vmul.f32 1.442695, %v5662_v15  ;;  %v5663_v13 = vsub.f32 0.0, %v5631_v31  ;;  %v9532_v15 = vld [vmem:[#allocation38_spill] sm:$0xff] }
 0x42e   : > { %v6001_v31 = vrot.slane %v9532_v15, %v9248_v20 }
 0x42f   : > { %6741 = vpow2.f32 %v5714_v34  ;;  %v5718_v49 = vmul.f32 1.442695, %v5663_v13  ;;  %v9533_v13 = vld [vmem:[#allocation34_spill] sm:$0xff] }
 0x430   : > { %6743 = vpow2.f32 %v5716_v8  ;;  %v6005_v37 = vrot.slane %v9533_v13, %v9248_v20 }
 0x431   : > { %v6732_v23 = vpop.eup %6731  ;;  %6745 = vpow2.f32 %v5718_v49 }
 0x432   : > { %v5966_v2 = vmul.f32 %v6732_v23, %v5961_v62 }
 0x433   : > { %v6734_v42 = vpop.eup %6733 }
 0x434   : > { %v6736_v58 = vpop.eup %6735  ;;  %v5968_v14 = vadd.f32 %v5966_v2, %v5948_v12  ;;  %v5967_v5 = vmul.f32 %v6734_v42, %v5965_v1  ;;  %v6021_v1 = vrot.slane %v9534_v56, %v9248_v20 }
 0x435   : > { %v5986_v36 = vmul.f32 %v6736_v58, %v5981_v26  ;;  %v6738_v57 = vpop.eup %6737  ;;  %v9535_v58 = vld [vmem:[#allocation35_spill] sm:$0xff] }
 0x436   : > { %v5969_v10 = vadd.f32 %v5967_v5, %v5949_v19  ;;  %v5987_v41 = vmul.f32 %v6738_v57, %v5985_v46 }
 0x437   : > { %v5988_v7 = vadd.f32 %v5986_v36, %v5968_v14  ;;  %v6025_v14 = vrot.slane %v9535_v58, %v9248_v20 }
 0x438   : > { %v5989_v22 = vadd.f32 %v5987_v41, %v5969_v10 }
 0x43a   : > { %v6740_v30 = vpop.eup %6739 }
 0x43b   : > { %v5756_v29 = vadd.f32 1.0, %v6740_v30 }
 0x43c   : > { %v6742_v55 = vpop.eup %6741 }
 0x43d   : > { %v6744_v47 = vpop.eup %6743  ;;  %6747 = vrcp.f32 %v5756_v29  ;;  %v5757_v60 = vadd.f32 1.0, %v6742_v55 }
 0x43e   : > { %v5472_v39 = vpop.f32.mrf.mxu1  ;;  %v5758_v40 = vadd.f32 1.0, %v6744_v47  ;;  %v6746_v43 = vpop.eup %6745 }
 0x43f   : > { %v5473_v27 = vadd.f32 %v5472_v39, %v8679_v17  ;;  %6749 = vrcp.f32 %v5757_v60  ;;  %v5759_v24 = vadd.f32 1.0, %v6746_v43 }
 0x440   : > { %v5474_v12 = vpop.f32.mrf.mxu1  ;;  %6751 = vrcp.f32 %v5758_v40 }
 0x441   : > { %v5632_v25 = vadd.f32 %v9230_v38, %v5473_v27  ;;  %v5475_v35 = vadd.f32 %v5474_v12, %v8690_v61  ;;  %6753 = vrcp.f32 %v5759_v24 }
 0x442   : > { %v5476_v19 = vpop.f32.mrf.mxu1 }
 0x443   : > { %v5664_v0 = vsub.f32 0.0, %v5632_v25  ;;  %v5633_v16 = vadd.f32 %v9230_v38, %v5475_v35  ;;  %v5513_v9 = vpop.f32.mrf.mxu0 }
 0x444   : > { %v5477_v11 = vpop.f32.mrf.mxu1  ;;  %v5514_v53 = vadd.f32 %v5513_v9, %v8679_v17 }
 0x445   : > { %v5720_v45 = vmul.f32 1.442695, %v5664_v0  ;;  %v5665_v44 = vsub.f32 0.0, %v5633_v16  ;;  %v5515_v51 = vpop.f32.mrf.mxu0  ;;  %v9536_v0 = vld [vmem:[#allocation36_spill] sm:$0xff] }
 0x446   : > { %v5634_v32 = vadd.f32 %v9230_v38, %v5514_v53  ;;  %v5516_v48 = vadd.f32 %v5515_v51, %v8690_v61  ;;  %v6041_v16 = vrot.slane %v9536_v0, %v9248_v20 }
 0x447   : > { %6755 = vpow2.f32 %v5720_v45  ;;  %v5722_v63 = vmul.f32 1.442695, %v5665_v44  ;;  %v5517_v50 = vpop.f32.mrf.mxu0 }
 0x448   : > { %v5666_v33 = vsub.f32 0.0, %v5634_v32  ;;  %v5635_v3 = vadd.f32 %v9230_v38, %v5516_v48  ;;  %v9537_v32 = vld [vmem:[#allocation15_spill] sm:$0xff] }
 0x449   : > { %6757 = vpow2.f32 %v5722_v63  ;;  %v5518_v6 = vpop.f32.mrf.mxu0  ;;  %v6045_v48 = vrot.slane %v9537_v32, %v9248_v20 }
 0x44a   : > { %v5724_v34 = vmul.f32 1.442695, %v5666_v33  ;;  %v5667_v4 = vsub.f32 0.0, %v5635_v3  ;;  %v6748_v8 = vpop.eup %6747 }
 0x44b   : > { %v6006_v62 = vmul.f32 %v6748_v8, %v6001_v31 }
 0x44c   : > { %6759 = vpow2.f32 %v5724_v34  ;;  %v5726_v49 = vmul.f32 1.442695, %v5667_v4  ;;  %v6750_v23 = vpop.eup %6749 }
 0x44d   : > { %v6752_v2 = vpop.eup %6751  ;;  %v6007_v42 = vmul.f32 %v6750_v23, %v6005_v37  ;;  %v6008_v26 = vadd.f32 %v6006_v62, %v5988_v7 }
 0x44e   : > { %6761 = vpow2.f32 %v5726_v49  ;;  %v6026_v5 = vmul.f32 %v6752_v2, %v6021_v1  ;;  %v6754_v46 = vpop.eup %6753  ;;  %v6061_v49 = vrot.slane %v8883_v54, %v9248_v20  ;;  %v6065_v1 = vrot.slane %v8889_v21, %v9248_v20 }
 0x44f   : > { %v6009_v36 = vadd.f32 %v6007_v42, %v5989_v22  ;;  %v6027_v57 = vmul.f32 %v6754_v46, %v6025_v14  ;;  %v6081_v21 = vrot.slane %v8974_v59, %v9248_v20 }
 0x450   : > { %v6028_v10 = vadd.f32 %v6026_v5, %v6008_v26 }
 0x451   : > { %v6029_v29 = vadd.f32 %v6027_v57, %v6009_v36 }
 0x454   : > { %v6756_v41 = vpop.eup %6755 }
 0x455   : > { %v5760_v30 = vadd.f32 1.0, %v6756_v41 }
 0x456   : > { %v6758_v39 = vpop.eup %6757 }
 0x457   : > { %6763 = vrcp.f32 %v5760_v30  ;;  %v5761_v55 = vadd.f32 1.0, %v6758_v39 }
 0x459   : > { %6765 = vrcp.f32 %v5761_v55  ;;  %v6760_v27 = vpop.eup %6759 }
 0x45a   : > { %v5762_v47 = vadd.f32 1.0, %v6760_v27  ;;  %v6101_v27 = vrot.slane %v8984_v52, %v9248_v20 }
 0x45b   : > { %v6762_v60 = vpop.eup %6761  ;;  %v5554_v12 = vpop.f32.mrf.mxu1 }
 0x45c   : > { %6767 = vrcp.f32 %v5762_v47  ;;  %v5763_v7 = vadd.f32 1.0, %v6762_v60  ;;  %v5555_v40 = vadd.f32 %v5554_v12, %v8679_v17  ;;  %v6105_v12 = vrot.slane %v8987_v18, %v9248_v20 }
 0x45d   : > { %v5556_v25 = vpop.f32.mrf.mxu1 }
 0x45e   : > { %6769 = vrcp.f32 %v5763_v7  ;;  %v5636_v22 = vadd.f32 %v9230_v38, %v5555_v40  ;;  %v5557_v35 = vadd.f32 %v5556_v25, %v8690_v61 }
 0x45f   : > { %v5595_v43 = vpop.f32.mrf.mxu0  ;;  %v5558_v24 = vpop.f32.mrf.mxu1 }
 0x460   : > { %v5596_v19 = vadd.f32 %v5595_v43, %v8679_v17  ;;  %v5668_v11 = vsub.f32 0.0, %v5636_v22  ;;  %v5637_v45 = vadd.f32 %v9230_v38, %v5557_v35 }
 0x461   : > { %v5597_v44 = vpop.f32.mrf.mxu0  ;;  %v5559_v51 = vpop.f32.mrf.mxu1 }
 0x462   : > { %v5638_v53 = vadd.f32 %v9230_v38, %v5596_v19  ;;  %v5598_v63 = vadd.f32 %v5597_v44, %v8690_v61  ;;  %v5728_v50 = vmul.f32 1.442695, %v5668_v11  ;;  %v5669_v33 = vsub.f32 0.0, %v5637_v45 }
 0x463   : > { %v5599_v17 = vpop.f32.mrf.mxu0 }
 0x464   : > { %v6764_v9 = vpop.eup %6763  ;;  %v5670_v15 = vsub.f32 0.0, %v5638_v53  ;;  %v5639_v31 = vadd.f32 %v9230_v38, %v5598_v63  ;;  %6771 = vpow2.f32 %v5728_v50  ;;  %v5730_v34 = vmul.f32 1.442695, %v5669_v33 }
 0x465   : > { %v6046_v3 = vmul.f32 %v6764_v9, %v6041_v16  ;;  %v5600_v4 = vpop.f32.mrf.mxu0 }
 0x466   : > { %v6766_v6 = vpop.eup %6765  ;;  %v5732_v37 = vmul.f32 1.442695, %v5670_v15  ;;  %v5671_v62 = vsub.f32 0.0, %v5639_v31  ;;  %6773 = vpow2.f32 %v5730_v34 }
 0x467   : > { %v6047_v8 = vmul.f32 %v6766_v6, %v6045_v48  ;;  %v6048_v13 = vadd.f32 %v6046_v3, %v6028_v10 }
 0x468   : > { %6775 = vpow2.f32 %v5732_v37  ;;  %v5734_v23 = vmul.f32 1.442695, %v5671_v62 }
 0x469   : > { %v6049_v61 = vadd.f32 %v6047_v8, %v6029_v29  ;;  %v6768_v56 = vpop.eup %6767  ;;  %v6085_v29 = vrot.slane %v8979_v28, %v9248_v20 }
 0x46a   : > { %6777 = vpow2.f32 %v5734_v23  ;;  %v6066_v38 = vmul.f32 %v6768_v56, %v6061_v49 }
 0x46b   : > { %v6770_v2 = vpop.eup %6769 }
 0x46c   : > { %v6067_v42 = vmul.f32 %v6770_v2, %v6065_v1  ;;  %v6068_v26 = vadd.f32 %v6066_v38, %v6048_v13 }
 0x46e   : > { %v6069_v58 = vadd.f32 %v6067_v42, %v6049_v61 }
 0x471   : > { %v6772_v14 = vpop.eup %6771 }
 0x472   : > { %v5764_v5 = vadd.f32 1.0, %v6772_v14 }
 0x473   : > { %v6774_v46 = vpop.eup %6773 }
 0x474   : > { %6779 = vrcp.f32 %v5764_v5  ;;  %v5765_v57 = vadd.f32 1.0, %v6774_v46 }
 0x475   : > { %v6776_v36 = vpop.eup %6775 }
 0x476   : > { %v5766_v54 = vadd.f32 1.0, %v6776_v36  ;;  %6781 = vrcp.f32 %v5765_v57 }
 0x477   : > { %v6778_v10 = vpop.eup %6777 }
 0x478   : > { %6783 = vrcp.f32 %v5766_v54  ;;  %v5767_v41 = vadd.f32 1.0, %v6778_v10 }
 0x47a   : > { %6785 = vrcp.f32 %v5767_v41 }
 0x481   : > { %v6780_v30 = vpop.eup %6779 }
 0x482   : > { %v6086_v39 = vmul.f32 %v6780_v30, %v6081_v21 }
 0x483   : > { %v6782_v55 = vpop.eup %6781 }
 0x484   : > { %v6087_v60 = vmul.f32 %v6782_v55, %v6085_v29  ;;  %v6088_v7 = vadd.f32 %v6086_v39, %v6068_v26 }
 0x485   : > { %v6784_v47 = vpop.eup %6783 }
 0x486   : > { %v6106_v40 = vmul.f32 %v6784_v47, %v6101_v27  ;;  %v6089_v25 = vadd.f32 %v6087_v60, %v6069_v58 }
 0x487   : > { %v6786_v59 = vpop.eup %6785 }
 0x488   : > { %v6107_v28 = vmul.f32 %v6786_v59, %v6105_v12  ;;  %v6108_v22 = vadd.f32 %v6106_v40, %v6088_v7 }
 0x48a   : > { %v6109_v35 = vadd.f32 %v6107_v28, %v6089_v25  ;;  %6110 = vst [vmem:[%s488_s23] sm:$0xff] %v6108_v22 }
 0x48c   : > { %6111 = vst [vmem:[%s488_s23 + $0x8] sm:$0xff] %v6109_v35 }
 0x48d   : > { %6841 = shalt.err (!%p6838_p1)
}
 0x48e   : > { %s6842_s22 = scalar_lea.hbm %s6125_s17, 256  ;;  %s6846_s23 = scalar_lea.hbm %s9539_s14, 2048 }
 0x48f   : > { %p6843_p3 = scmp.ne.s32.totalorder %s6125_s17, %s6842_s22  ;;  %p6847_p13 = scmp.lt.s32.totalorder %s6125_s17, %s9539_s14 }
 0x490   : > { %p6848_p6 = scmp.lt.s32.totalorder %s6846_s23, %s6842_s22 }
 0x491   : > { %p6844_p4 = pnand %p6843_p3, %p9540_p12 }
 0x492   : > { %p6849_p10 = por %p6848_p6, %p6847_p13 }
 0x493   : > { %p6845_p5 = pneg %p6844_p4 }
 0x495   : > { %p6850_p11 = pnand %p6849_p10, %p6845_p5 }
 0x497   : > { %6853 = shalt.err (!%p6850_p11)
}
 0x498   : > { %6401 = dma.vmem_to_hbm [thread:$0]  (%p9540_p12), %s6128_s13, 256, %s6125_s17, %s6113_s18  }
 0x499 PF: > { %s9541_s27 = sld [smem:[#allocation8_spill]]  ;;  %p6412_p0 = scmp.ge.s32.totalorder %s6892_s28, 2 }
 0x49a   : > { %s9542_s19 = sld [smem:[#allocation12_spill]] }
 0x49f   : > { %s6139_s15 = sand.u32 1, %s9541_s27  }
 0x4a0   : > { %p9543_p2 = scmp.ne.s32.totalorder %s9542_s19, 0  ;;  %s6140_s29 = scalar_lea.sflag [#allocation4], %s6139_s15 }
 0x4a2   : > { %p6408_p7 = pnand %p6412_p0, %p9543_p2 }
 0x4a4   : > { %p6409_p8 = pneg %p6408_p7 }
 0x4a6   : > { %6875 = dma.done.wait (%p6409_p8), %s6140_s29, 256  }
 0x4a7   : > { %6877 = vsyncadd (%p6409_p8), %s6140_s29, 4294967040  ;;  %s9544_s28 = sld [smem:[#allocation10_spill]]  ;;  %s9547_s25 = smov %s6884_s26 }
 0x4a8   : > { %s9545_s16 = sld [smem:[#allocation9_spill]] }
 0x4a9   : > { %s9546_s27 = sld [smem:[#allocation11_spill]] }
 0x4ad   : > { %p26_p9 = scmp.ge.s32.totalorder %s9544_s28, 10  }
 0x4ae   : > { %s9548_s26 = smov %s9545_s16 }
 0x4af   :  { %28 = sbr.rel (!%p26_p9) target bundleno = 7 (0x7), region = 123 }
 0x4b4   :  { %6145 = vsyncpa [#allocation3], 1 }
 0x4b5   :  { %6147 = vsyncpa [#allocation3 + $0x1], 1 }
 0x4b6   :  { %6148 = vsyncpa [#allocation4], 1 }
 0x4b7   :  { %6150 = vsyncpa [#allocation4 + $0x1], 1 }

</bundles_post_ra>
